<compile_context>
chip_gen: v7x
topology: tpu7x:2x2x1
jax: 0.10.0
libtpu: 0.0.40
codegen_flags: <defaults>
</compile_context>

<pallas_src>
import numpy as np
import jax
import jax.numpy as jnp
from jax.experimental import pallas as pl
from jax.experimental.pallas import tpu as pltpu


def _round_up(n, m):
    return ((n + m - 1) // m) * m


# ---------------------------------------------------------------------------
# Fused forward: conv1 + conv2 + body-FC + rot/pos/value heads in one kernel
# ---------------------------------------------------------------------------

def pg_forward_fused(kp, x_nchw):
    """Returns a lane-dense (B, 128) slab: [:, :4]=rot probs, [:, 4:14]=pos probs,
    [:, 14]=state value, rest zero."""
    B, C, H, W = x_nchw.shape
    Lin = kp["w1"].shape[1]          # W*C       (conv1 input lanes)
    L1 = kp["w1"].shape[2]           # X1*C1     (conv1 output lanes)
    L2 = kp["w2"].shape[2]           # Wo*C2     (conv2 output lanes == FC input lanes)
    F = kp["bfc"].shape[1]           # 128       (body feature width)
    NH = kp["wh"].shape[1]           # 128       (padded head width)
    ZW = kp["wfc"].shape[1]          # Ho*F      (wide FC output lanes)
    Ho = ZW // F                     # 12        (valid output rows per image)
    assert Lin == W * C

    R2 = B * H                       # conv2 rows computed (full (b, y) grid)
    R1 = _round_up(R2 + 2, 8)        # conv1 rows needed by conv2's y-shifts
    R0 = _round_up(R1 + 2, 8)        # padded input rows needed by conv1's y-shifts

    # NCHW -> rows=(b, y), lanes=(x, c); zero-pad tail rows (feed only invalid rows).
    x2d = jnp.transpose(x_nchw, (0, 2, 3, 1)).reshape(R2, Lin).astype(jnp.float32)
    x2d = jnp.pad(x2d, ((0, R0 - R2), (0, 0)))

    def kernel(x_ref, w1_ref, b1_ref, w2_ref, b2_ref, wfc_ref, bfc_ref,
               wh_ref, bh_ref, o_ref, h1_ref, z_ref, feat_ref):
        # ---- conv1: y-taps = row shifts, x-taps/channels folded into block weights
        acc1 = jnp.dot(x_ref[0:R1, :], w1_ref[0].astype(jnp.float32),
                       preferred_element_type=jnp.float32)
        for i in (1, 2):
            acc1 = acc1 + jnp.dot(x_ref[i:i + R1, :], w1_ref[i].astype(jnp.float32),
                                  preferred_element_type=jnp.float32)
        h1_ref[...] = jnp.maximum(acc1 + b1_ref[...], 0.0)        # (R1, L1)

        # ---- conv2 (same trick on conv1's output)
        acc2 = jnp.dot(h1_ref[0:R2, :], w2_ref[0].astype(jnp.float32),
                       preferred_element_type=jnp.float32)
        for i in (1, 2):
            acc2 = acc2 + jnp.dot(h1_ref[i:i + R2, :], w2_ref[i].astype(jnp.float32),
                                  preferred_element_type=jnp.float32)
        h2 = jnp.maximum(acc2 + b2_ref[...], 0.0)                 # (R2, L2) FC-ready

        # ---- body FC over the valid Ho x Wo window:
        # one wide bf16 matmul, then gather the y-diagonal (1,128) blocks per batch.
        z_ref[...] = jnp.dot(h2.astype(jnp.bfloat16), wfc_ref[...],
                             preferred_element_type=jnp.float32)  # (R2, Ho*F)
        for b in range(B):
            acc = z_ref[b * H:b * H + 1, 0:F]
            for y in range(1, Ho):
                acc = acc + z_ref[b * H + y:b * H + y + 1, y * F:(y + 1) * F]
            feat_ref[b:b + 1, :] = acc
        feat = jnp.maximum(feat_ref[...] + bfc_ref[...], 0.0)     # F.relu(net_body(x))

        # ---- fused heads: one lane-dense matmul (cols 0:4 rot, 4:14 pos, 14 value)
        logits = jnp.dot(feat, wh_ref[...],
                         preferred_element_type=jnp.float32) + bh_ref[...]
        col = jax.lax.broadcasted_iota(jnp.int32, (B, NH), 1)
        rot_mask = col < 4
        pos_mask = jnp.logical_and(col >= 4, col < 14)

        def masked_softmax(mask):
            zl = jnp.where(mask, logits, -1e30)
            zl = zl - jnp.max(zl, axis=-1, keepdims=True)
            e = jnp.where(mask, jnp.exp(zl), 0.0)
            return e * pl.reciprocal(jnp.sum(e, axis=-1, keepdims=True), approx=True)

        out = masked_softmax(rot_mask) + masked_softmax(pos_mask)
        out = out + jnp.where(col == 14, logits, 0.0)
        o_ref[...] = out                                          # single dense store

    vmem = pl.BlockSpec(memory_space=pltpu.MemorySpace.VMEM)
    return pl.pallas_call(
        kernel,
        out_shape=jax.ShapeDtypeStruct((B, NH), jnp.float32),
        in_specs=[vmem] * 9,
        out_specs=vmem,
        scratch_shapes=[pltpu.VMEM((R1, L1), jnp.float32),   # conv1 activations
                        pltpu.VMEM((R2, ZW), jnp.float32),   # wide FC products
                        pltpu.VMEM((B, F), jnp.float32)],    # body features
    )(x2d, kp["w1"], kp["b1"], kp["w2"], kp["b2"],
      kp["wfc"], kp["bfc"], kp["wh"], kp["bh"])


@jax.jit
def pg_baseline_v2_forward(kp, x_nchw):
    """Returns (rot_probs (B,4), pos_probs (B,10), state_values (B,1))."""
    out = pg_forward_fused(kp, x_nchw)
    return out[:, 0:4], out[:, 4:14], out[:, 14:15]


# ---------------------------------------------------------------------------
# Parameter init (PyTorch layout) + one-time host-side re-layout for the kernel
# ---------------------------------------------------------------------------

def init_torch_layout_params(key, input_shape=(4, 16, 16), feat_dim=128):
    """Random init in PyTorch's native layouts (Conv2d (OC,C,kh,kw), Linear (out,in))."""
    C, H, W = input_shape
    flat = 32 * (H - 4) * (W - 4)
    ks = jax.random.split(key, 12)

    def unif(k, shape, fan_in):
        bound = 1.0 / (fan_in ** 0.5)
        return jax.random.uniform(k, shape, jnp.float32, -bound, bound)

    return {
        "conv1_w": unif(ks[0], (16, C, 3, 3), C * 9),
        "conv1_b": unif(ks[1], (16,), C * 9),
        "conv2_w": unif(ks[2], (32, 16, 3, 3), 16 * 9),
        "conv2_b": unif(ks[3], (32,), 16 * 9),
        "fc_w":    unif(ks[4], (feat_dim, flat), flat),
        "fc_b":    unif(ks[5], (feat_dim,), flat),
        "rot_w":   unif(ks[6], (4, feat_dim), feat_dim),
        "rot_b":   unif(ks[7], (4,), feat_dim),
        "pos_w":   unif(ks[8], (10, feat_dim), feat_dim),
        "pos_b":   unif(ks[9], (10,), feat_dim),
        "val_w":   unif(ks[10], (1, feat_dim), feat_dim),
        "val_b":   unif(ks[11], (1,), feat_dim),
    }


def prepare_params(tp, input_shape=(4, 16, 16), head_pad=128):
    """One-time host-side re-layout of PyTorch-style params.
    Returns (kernel_params, reference_params); both use identical bf16-rounded
    conv/fc weight values so the correctness check isolates kernel error."""
    C, H, W = input_shape
    C1 = tp["conv1_w"].shape[0]            # 16
    C2 = tp["conv2_w"].shape[0]            # 32
    Ho, Wo = H - 4, W - 4                  # 12, 12 (conv2 valid window)
    X1 = W - 2                             # 14     (conv1 x-positions kept)
    F = tp["fc_w"].shape[0]                # 128

    def bf16_round(a):                     # round once; shared by kernel & reference
        return np.asarray(jnp.asarray(a, jnp.bfloat16).astype(jnp.float32))

    w1t = bf16_round(jnp.transpose(tp["conv1_w"], (2, 3, 1, 0)))   # (3,3,Cin,C1)
    w2t = bf16_round(jnp.transpose(tp["conv2_w"], (2, 3, 1, 0)))   # (3,3,C1,C2)

    # fc_w: (F, C2*Ho*Wo) in NCHW-flatten order -> NHWC-flatten rows (y,x,c), (4608,F)
    fcw = np.asarray(tp["fc_w"]).reshape(F, C2, Ho, Wo)
    fcw = bf16_round(np.transpose(fcw, (2, 3, 1, 0)).reshape(Ho * Wo * C2, F))

    # Shifted-block-diagonal conv weights for the rows=(b,y), lanes=(x,c) layout.
    W1big = np.zeros((3, W * C, X1 * C1), np.float32)
    for i in range(3):
        for j in range(3):
            for xo in range(X1):
                xi = xo + j
                if xi < W:
                    W1big[i, xi * C:(xi + 1) * C, xo * C1:(xo + 1) * C1] = w1t[i, j]

    W2big = np.zeros((3, X1 * C1, Wo * C2), np.float32)
    for i in range(3):
        for j in range(3):
            for xo in range(Wo):
                xi = xo + j                                    # always < X1
                W2big[i, xi * C1:(xi + 1) * C1, xo * C2:(xo + 1) * C2] = w2t[i, j]

    # Wide FC weight: wfc_wide[(x,c), y*F + f] = fcw[(y,x,c), f]
    wfc_wide = fcw.reshape(Ho, Wo * C2, F).transpose(1, 0, 2).reshape(Wo * C2, Ho * F)

    b1big = np.tile(np.asarray(tp["conv1_b"]), X1).reshape(1, X1 * C1)
    b2big = np.tile(np.asarray(tp["conv2_b"]), Wo).reshape(1, Wo * C2)

    hw = np.zeros((F, head_pad), np.float32)
    hw[:, 0:4] = np.asarray(tp["rot_w"]).T
    hw[:, 4:14] = np.asarray(tp["pos_w"]).T
    hw[:, 14:15] = np.asarray(tp["val_w"]).T
    hb = np.zeros((1, head_pad), np.float32)
    hb[0, 0:4] = np.asarray(tp["rot_b"])
    hb[0, 4:14] = np.asarray(tp["pos_b"])
    hb[0, 14:15] = np.asarray(tp["val_b"])

    kparams = {
        "w1": jnp.asarray(W1big, jnp.bfloat16),
        "b1": jnp.asarray(b1big, jnp.float32),
        "w2": jnp.asarray(W2big, jnp.bfloat16),
        "b2": jnp.asarray(b2big, jnp.float32),
        "wfc": jnp.asarray(wfc_wide, jnp.bfloat16),
        "bfc": jnp.asarray(np.asarray(tp["fc_b"]).reshape(1, F), jnp.float32),
        "wh": jnp.asarray(hw, jnp.float32),
        "bh": jnp.asarray(hb, jnp.float32),
    }
    rparams = {   # compact (independent-path) forms with identical rounded values
        "conv1_w": jnp.asarray(w1t.reshape(9, C, C1), jnp.float32),
        "conv1_b": jnp.asarray(tp["conv1_b"]).reshape(1, -1),
        "conv2_w": jnp.asarray(w2t.reshape(9, C1, C2), jnp.float32),
        "conv2_b": jnp.asarray(tp["conv2_b"]).reshape(1, -1),
        "fc_w": jnp.asarray(fcw, jnp.float32),
        "fc_b": jnp.asarray(tp["fc_b"]).reshape(1, -1),
        "heads_w": jnp.asarray(hw, jnp.float32),
        "heads_b": jnp.asarray(hb, jnp.float32),
    }
    return kparams, rparams


# ---------------------------------------------------------------------------
# Pure-JAX f32 reference (independent formulation) for the correctness check
# ---------------------------------------------------------------------------

def reference_forward(rp, x_nchw):
    x = jnp.transpose(x_nchw, (0, 2, 3, 1)).astype(jnp.float32)   # NHWC

    def conv_relu(a, taps, b):
        B, H, W, _ = a.shape
        Ho, Wo = H - 2, W - 2
        out = jnp.zeros((B, Ho, Wo, taps.shape[-1]), jnp.float32)
        for i in range(3):
            for j in range(3):
                out = out + jnp.einsum("bhwc,co->bhwo",
                                       a[:, i:i + Ho, j:j + Wo, :], taps[i * 3 + j])
        return jnp.maximum(out + b.reshape(1, 1, 1, -1), 0.0)

    h = conv_relu(x, rp["conv1_w"], rp["conv1_b"])
    h = conv_relu(h, rp["conv2_w"], rp["conv2_b"])
    xf = h.reshape(x.shape[0], -1)                                # NHWC (y,x,c) flatten
    feat = jnp.maximum(xf @ rp["fc_w"] + rp["fc_b"], 0.0)
    logits = feat @ rp["heads_w"] + rp["heads_b"]
    rot = jax.nn.softmax(logits[:, 0:4], axis=-1)
    pos = jax.nn.softmax(logits[:, 4:14], axis=-1)
    return rot, pos, logits[:, 14:15]


# ---------------------------------------------------------------------------

if __name__ == "__main__":
    key = jax.random.PRNGKey(0)
    kx, kw = jax.random.split(key)

    # Small shapes matching the module: batch=2, channels=4, 16x16 board (NCHW).
    x = jax.random.normal(kx, (2, 4, 16, 16), dtype=jnp.float32)
    kparams, rparams = prepare_params(init_torch_layout_params(kw, (4, 16, 16)),
                                      (4, 16, 16))

    rot_probs, pos_probs, state_values = jax.block_until_ready(
        pg_baseline_v2_forward(kparams, x))

    assert rot_probs.shape == (2, 4)
    assert pos_probs.shape == (2, 10)
    assert state_values.shape == (2, 1)
    assert jnp.allclose(jnp.sum(rot_probs, axis=-1), 1.0, atol=1e-2)
    assert jnp.allclose(jnp.sum(pos_probs, axis=-1), 1.0, atol=1e-2)

    # Cross-check vs. pure-JAX f32 reference (bf16 FC activations + approx recip
    # in-kernel -> loose tolerance).
    rot_r, pos_r, val_r = reference_forward(rparams, x)
    assert jnp.allclose(rot_probs, rot_r, atol=3e-2)
    assert jnp.allclose(pos_probs, pos_r, atol=3e-2)
    assert jnp.allclose(state_values, val_r, atol=3e-2)

    # TODO(synk): select_action (Categorical sampling + saved_log_probs/rewards
    # bookkeeping) is host-side RL plumbing, not part of forward -> not kernelized.
    print("KERNEL_OK")
</pallas_src>

<mosaic_0001>
module attributes {stable_mosaic.version = 11 : i64} {
  func.func @kernel(%arg0: memref<48x64xf32, #tpu.memory_space<vmem>>, %arg1: memref<3x64x224xbf16, #tpu.memory_space<vmem>>, %arg2: memref<1x224xf32, #tpu.memory_space<vmem>>, %arg3: memref<3x224x384xbf16, #tpu.memory_space<vmem>>, %arg4: memref<1x384xf32, #tpu.memory_space<vmem>>, %arg5: memref<384x1536xbf16, #tpu.memory_space<vmem>>, %arg6: memref<1x128xf32, #tpu.memory_space<vmem>>, %arg7: memref<128x128xf32, #tpu.memory_space<vmem>>, %arg8: memref<1x128xf32, #tpu.memory_space<vmem>>, %arg9: memref<2x128xf32, #tpu.memory_space<vmem>>, %arg10: memref<40x224xf32, #tpu.memory_space<vmem>>, %arg11: memref<32x1536xf32, #tpu.memory_space<vmem>>, %arg12: memref<2x128xf32, #tpu.memory_space<vmem>>) attributes {dimension_semantics = [], scalar_prefetch = 0 : i64, scratch_operands = 3 : i64, tpu.core_type = #tpu.core_type<tc>} {
    %c0 = arith.constant 0 : index
    %c0_0 = arith.constant 0 : index
    %0 = vector.load %arg0[%c0, %c0_0] : memref<48x64xf32, #tpu.memory_space<vmem>>, vector<40x64xf32>
    %c0_1 = arith.constant 0 : index
    %c0_2 = arith.constant 0 : index
    %c0_3 = arith.constant 0 : index
    %1 = vector.load %arg1[%c0_1, %c0_2, %c0_3] : memref<3x64x224xbf16, #tpu.memory_space<vmem>>, vector<1x64x224xbf16>
    %2 = vector.shape_cast %1 : vector<1x64x224xbf16> to vector<64x224xbf16>
    %3 = arith.extf %2 : vector<64x224xbf16> to vector<64x224xf32>
    %cst = arith.constant dense<0.000000e+00> : vector<40x224xf32>
    %4 = tpu.matmul %0, %3, %cst {dimension_numbers = #tpu.dot_dimension_numbers<[1], [0], [0], [1], [0, 0, 1, 1], [], []>} : vector<40x64xf32>, vector<64x224xf32>, vector<40x224xf32> -> vector<40x224xf32>
    %c1 = arith.constant 1 : index
    %c0_4 = arith.constant 0 : index
    %5 = vector.load %arg0[%c1, %c0_4] : memref<48x64xf32, #tpu.memory_space<vmem>>, vector<40x64xf32>
    %c1_5 = arith.constant 1 : index
    %c0_6 = arith.constant 0 : index
    %c0_7 = arith.constant 0 : index
    %6 = vector.load %arg1[%c1_5, %c0_6, %c0_7] : memref<3x64x224xbf16, #tpu.memory_space<vmem>>, vector<1x64x224xbf16>
    %7 = vector.shape_cast %6 : vector<1x64x224xbf16> to vector<64x224xbf16>
    %8 = arith.extf %7 : vector<64x224xbf16> to vector<64x224xf32>
    %cst_8 = arith.constant dense<0.000000e+00> : vector<40x224xf32>
    %9 = tpu.matmul %5, %8, %cst_8 {dimension_numbers = #tpu.dot_dimension_numbers<[1], [0], [0], [1], [0, 0, 1, 1], [], []>} : vector<40x64xf32>, vector<64x224xf32>, vector<40x224xf32> -> vector<40x224xf32>
    %10 = arith.addf %4, %9 : vector<40x224xf32>
    %c2 = arith.constant 2 : index
    %c0_9 = arith.constant 0 : index
    %11 = vector.load %arg0[%c2, %c0_9] : memref<48x64xf32, #tpu.memory_space<vmem>>, vector<40x64xf32>
    %c2_10 = arith.constant 2 : index
    %c0_11 = arith.constant 0 : index
    %c0_12 = arith.constant 0 : index
    %12 = vector.load %arg1[%c2_10, %c0_11, %c0_12] : memref<3x64x224xbf16, #tpu.memory_space<vmem>>, vector<1x64x224xbf16>
    %13 = vector.shape_cast %12 : vector<1x64x224xbf16> to vector<64x224xbf16>
    %14 = arith.extf %13 : vector<64x224xbf16> to vector<64x224xf32>
    %cst_13 = arith.constant dense<0.000000e+00> : vector<40x224xf32>
    %15 = tpu.matmul %11, %14, %cst_13 {dimension_numbers = #tpu.dot_dimension_numbers<[1], [0], [0], [1], [0, 0, 1, 1], [], []>} : vector<40x64xf32>, vector<64x224xf32>, vector<40x224xf32> -> vector<40x224xf32>
    %16 = arith.addf %10, %15 : vector<40x224xf32>
    %c0_14 = arith.constant 0 : index
    %c0_15 = arith.constant 0 : index
    %17 = vector.load %arg2[%c0_14, %c0_15] : memref<1x224xf32, #tpu.memory_space<vmem>>, vector<1x224xf32>
    %18 = vector.broadcast %17 : vector<1x224xf32> to vector<40x224xf32>
    %19 = arith.addf %16, %18 : vector<40x224xf32>
    %cst_16 = arith.constant 0.000000e+00 : f32
    %20 = vector.broadcast %cst_16 : f32 to vector<40x224xf32>
    %21 = arith.maximumf %19, %20 : vector<40x224xf32>
    %c0_17 = arith.constant 0 : index
    %c0_18 = arith.constant 0 : index
    %22 = vector.load %arg10[%c0_17, %c0_18] : memref<40x224xf32, #tpu.memory_space<vmem>>, vector<40x224xf32>
    tpu.vector_store %arg10[%c0_17, %c0_18], %21 {strides = array<i32>} : memref<40x224xf32, #tpu.memory_space<vmem>>, vector<40x224xf32>,
    %c0_19 = arith.constant 0 : index
    %c0_20 = arith.constant 0 : index
    %23 = vector.load %arg10[%c0_19, %c0_20] : memref<40x224xf32, #tpu.memory_space<vmem>>, vector<32x224xf32>
    %c0_21 = arith.constant 0 : index
    %c0_22 = arith.constant 0 : index
    %c0_23 = arith.constant 0 : index
    %24 = vector.load %arg3[%c0_21, %c0_22, %c0_23] : memref<3x224x384xbf16, #tpu.memory_space<vmem>>, vector<1x224x384xbf16>
    %25 = vector.shape_cast %24 : vector<1x224x384xbf16> to vector<224x384xbf16>
    %26 = arith.extf %25 : vector<224x384xbf16> to vector<224x384xf32>
    %cst_24 = arith.constant dense<0.000000e+00> : vector<32x384xf32>
    %27 = tpu.matmul %23, %26, %cst_24 {dimension_numbers = #tpu.dot_dimension_numbers<[1], [0], [0], [1], [0, 0, 1, 1], [], []>} : vector<32x224xf32>, vector<224x384xf32>, vector<32x384xf32> -> vector<32x384xf32>
    %c1_25 = arith.constant 1 : index
    %c0_26 = arith.constant 0 : index
    %28 = vector.load %arg10[%c1_25, %c0_26] : memref<40x224xf32, #tpu.memory_space<vmem>>, vector<32x224xf32>
    %c1_27 = arith.constant 1 : index
    %c0_28 = arith.constant 0 : index
    %c0_29 = arith.constant 0 : index
    %29 = vector.load %arg3[%c1_27, %c0_28, %c0_29] : memref<3x224x384xbf16, #tpu.memory_space<vmem>>, vector<1x224x384xbf16>
    %30 = vector.shape_cast %29 : vector<1x224x384xbf16> to vector<224x384xbf16>
    %31 = arith.extf %30 : vector<224x384xbf16> to vector<224x384xf32>
    %cst_30 = arith.constant dense<0.000000e+00> : vector<32x384xf32>
    %32 = tpu.matmul %28, %31, %cst_30 {dimension_numbers = #tpu.dot_dimension_numbers<[1], [0], [0], [1], [0, 0, 1, 1], [], []>} : vector<32x224xf32>, vector<224x384xf32>, vector<32x384xf32> -> vector<32x384xf32>
    %33 = arith.addf %27, %32 : vector<32x384xf32>
    %c2_31 = arith.constant 2 : index
    %c0_32 = arith.constant 0 : index
    %34 = vector.load %arg10[%c2_31, %c0_32] : memref<40x224xf32, #tpu.memory_space<vmem>>, vector<32x224xf32>
    %c2_33 = arith.constant 2 : index
    %c0_34 = arith.constant 0 : index
    %c0_35 = arith.constant 0 : index
    %35 = vector.load %arg3[%c2_33, %c0_34, %c0_35] : memref<3x224x384xbf16, #tpu.memory_space<vmem>>, vector<1x224x384xbf16>
    %36 = vector.shape_cast %35 : vector<1x224x384xbf16> to vector<224x384xbf16>
    %37 = arith.extf %36 : vector<224x384xbf16> to vector<224x384xf32>
    %cst_36 = arith.constant dense<0.000000e+00> : vector<32x384xf32>
    %38 = tpu.matmul %34, %37, %cst_36 {dimension_numbers = #tpu.dot_dimension_numbers<[1], [0], [0], [1], [0, 0, 1, 1], [], []>} : vector<32x224xf32>, vector<224x384xf32>, vector<32x384xf32> -> vector<32x384xf32>
    %39 = arith.addf %33, %38 : vector<32x384xf32>
    %c0_37 = arith.constant 0 : index
    %c0_38 = arith.constant 0 : index
    %40 = vector.load %arg4[%c0_37, %c0_38] : memref<1x384xf32, #tpu.memory_space<vmem>>, vector<1x384xf32>
    %41 = vector.broadcast %40 : vector<1x384xf32> to vector<32x384xf32>
    %42 = arith.addf %39, %41 : vector<32x384xf32>
    %cst_39 = arith.constant 0.000000e+00 : f32
    %43 = vector.broadcast %cst_39 : f32 to vector<32x384xf32>
    %44 = arith.maximumf %42, %43 : vector<32x384xf32>
    %45 = arith.truncf %44 : vector<32x384xf32> to vector<32x384xbf16>
    %c0_40 = arith.constant 0 : index
    %c0_41 = arith.constant 0 : index
    %46 = vector.load %arg5[%c0_40, %c0_41] : memref<384x1536xbf16, #tpu.memory_space<vmem>>, vector<384x1536xbf16>
    %cst_42 = arith.constant dense<0.000000e+00> : vector<32x1536xf32>
    %47 = tpu.matmul %45, %46, %cst_42 {dimension_numbers = #tpu.dot_dimension_numbers<[1], [0], [0], [1], [0, 0, 1, 1], [], []>} : vector<32x384xbf16>, vector<384x1536xbf16>, vector<32x1536xf32> -> vector<32x1536xf32>
    %c0_43 = arith.constant 0 : index
    %c0_44 = arith.constant 0 : index
    %48 = vector.load %arg11[%c0_43, %c0_44] : memref<32x1536xf32, #tpu.memory_space<vmem>>, vector<32x1536xf32>
    tpu.vector_store %arg11[%c0_43, %c0_44], %47 {strides = array<i32>} : memref<32x1536xf32, #tpu.memory_space<vmem>>, vector<32x1536xf32>,
    %c0_45 = arith.constant 0 : index
    %c0_46 = arith.constant 0 : index
    %49 = vector.load %arg11[%c0_45, %c0_46] : memref<32x1536xf32, #tpu.memory_space<vmem>>, vector<1x128xf32>
    %c1_47 = arith.constant 1 : index
    %c128 = arith.constant 128 : index
    %50 = vector.load %arg11[%c1_47, %c128] : memref<32x1536xf32, #tpu.memory_space<vmem>>, vector<1x128xf32>
    %51 = arith.addf %49, %50 : vector<1x128xf32>
    %c2_48 = arith.constant 2 : index
    %c256 = arith.constant 256 : index
    %52 = vector.load %arg11[%c2_48, %c256] : memref<32x1536xf32, #tpu.memory_space<vmem>>, vector<1x128xf32>
    %53 = arith.addf %51, %52 : vector<1x128xf32>
    %c3 = arith.constant 3 : index
    %c384 = arith.constant 384 : index
    %54 = vector.load %arg11[%c3, %c384] : memref<32x1536xf32, #tpu.memory_space<vmem>>, vector<1x128xf32>
    %55 = arith.addf %53, %54 : vector<1x128xf32>
    %c4 = arith.constant 4 : index
    %c512 = arith.constant 512 : index
    %56 = vector.load %arg11[%c4, %c512] : memref<32x1536xf32, #tpu.memory_space<vmem>>, vector<1x128xf32>
    %57 = arith.addf %55, %56 : vector<1x128xf32>
    %c5 = arith.constant 5 : index
    %c640 = arith.constant 640 : index
    %58 = vector.load %arg11[%c5, %c640] : memref<32x1536xf32, #tpu.memory_space<vmem>>, vector<1x128xf32>
    %59 = arith.addf %57, %58 : vector<1x128xf32>
    %c6 = arith.constant 6 : index
    %c768 = arith.constant 768 : index
    %60 = vector.load %arg11[%c6, %c768] : memref<32x1536xf32, #tpu.memory_space<vmem>>, vector<1x128xf32>
    %61 = arith.addf %59, %60 : vector<1x128xf32>
    %c7 = arith.constant 7 : index
    %c896 = arith.constant 896 : index
    %62 = vector.load %arg11[%c7, %c896] : memref<32x1536xf32, #tpu.memory_space<vmem>>, vector<1x128xf32>
    %63 = arith.addf %61, %62 : vector<1x128xf32>
    %c8 = arith.constant 8 : index
    %c1024 = arith.constant 1024 : index
    %64 = vector.load %arg11[%c8, %c1024] : memref<32x1536xf32, #tpu.memory_space<vmem>>, vector<1x128xf32>
    %65 = arith.addf %63, %64 : vector<1x128xf32>
    %c9 = arith.constant 9 : index
    %c1152 = arith.constant 1152 : index
    %66 = vector.load %arg11[%c9, %c1152] : memref<32x1536xf32, #tpu.memory_space<vmem>>, vector<1x128xf32>
    %67 = arith.addf %65, %66 : vector<1x128xf32>
    %c10 = arith.constant 10 : index
    %c1280 = arith.constant 1280 : index
    %68 = vector.load %arg11[%c10, %c1280] : memref<32x1536xf32, #tpu.memory_space<vmem>>, vector<1x128xf32>
    %69 = arith.addf %67, %68 : vector<1x128xf32>
    %c11 = arith.constant 11 : index
    %c1408 = arith.constant 1408 : index
    %70 = vector.load %arg11[%c11, %c1408] : memref<32x1536xf32, #tpu.memory_space<vmem>>, vector<1x128xf32>
    %71 = arith.addf %69, %70 : vector<1x128xf32>
    %c0_49 = arith.constant 0 : index
    %c0_50 = arith.constant 0 : index
    %72 = vector.load %arg12[%c0_49, %c0_50] : memref<2x128xf32, #tpu.memory_space<vmem>>, vector<1x128xf32>
    tpu.vector_store %arg12[%c0_49, %c0_50], %71 {strides = array<i32>} : memref<2x128xf32, #tpu.memory_space<vmem>>, vector<1x128xf32>,
    %c16 = arith.constant 16 : index
    %c0_51 = arith.constant 0 : index
    %73 = vector.load %arg11[%c16, %c0_51] : memref<32x1536xf32, #tpu.memory_space<vmem>>, vector<1x128xf32>
    %c17 = arith.constant 17 : index
    %c128_52 = arith.constant 128 : index
    %74 = vector.load %arg11[%c17, %c128_52] : memref<32x1536xf32, #tpu.memory_space<vmem>>, vector<1x128xf32>
    %75 = arith.addf %73, %74 : vector<1x128xf32>
    %c18 = arith.constant 18 : index
    %c256_53 = arith.constant 256 : index
    %76 = vector.load %arg11[%c18, %c256_53] : memref<32x1536xf32, #tpu.memory_space<vmem>>, vector<1x128xf32>
    %77 = arith.addf %75, %76 : vector<1x128xf32>
    %c19 = arith.constant 19 : index
    %c384_54 = arith.constant 384 : index
    %78 = vector.load %arg11[%c19, %c384_54] : memref<32x1536xf32, #tpu.memory_space<vmem>>, vector<1x128xf32>
    %79 = arith.addf %77, %78 : vector<1x128xf32>
    %c20 = arith.constant 20 : index
    %c512_55 = arith.constant 512 : index
    %80 = vector.load %arg11[%c20, %c512_55] : memref<32x1536xf32, #tpu.memory_space<vmem>>, vector<1x128xf32>
    %81 = arith.addf %79, %80 : vector<1x128xf32>
    %c21 = arith.constant 21 : index
    %c640_56 = arith.constant 640 : index
    %82 = vector.load %arg11[%c21, %c640_56] : memref<32x1536xf32, #tpu.memory_space<vmem>>, vector<1x128xf32>
    %83 = arith.addf %81, %82 : vector<1x128xf32>
    %c22 = arith.constant 22 : index
    %c768_57 = arith.constant 768 : index
    %84 = vector.load %arg11[%c22, %c768_57] : memref<32x1536xf32, #tpu.memory_space<vmem>>, vector<1x128xf32>
    %85 = arith.addf %83, %84 : vector<1x128xf32>
    %c23 = arith.constant 23 : index
    %c896_58 = arith.constant 896 : index
    %86 = vector.load %arg11[%c23, %c896_58] : memref<32x1536xf32, #tpu.memory_space<vmem>>, vector<1x128xf32>
    %87 = arith.addf %85, %86 : vector<1x128xf32>
    %c24 = arith.constant 24 : index
    %c1024_59 = arith.constant 1024 : index
    %88 = vector.load %arg11[%c24, %c1024_59] : memref<32x1536xf32, #tpu.memory_space<vmem>>, vector<1x128xf32>
    %89 = arith.addf %87, %88 : vector<1x128xf32>
    %c25 = arith.constant 25 : index
    %c1152_60 = arith.constant 1152 : index
    %90 = vector.load %arg11[%c25, %c1152_60] : memref<32x1536xf32, #tpu.memory_space<vmem>>, vector<1x128xf32>
    %91 = arith.addf %89, %90 : vector<1x128xf32>
    %c26 = arith.constant 26 : index
    %c1280_61 = arith.constant 1280 : index
    %92 = vector.load %arg11[%c26, %c1280_61] : memref<32x1536xf32, #tpu.memory_space<vmem>>, vector<1x128xf32>
    %93 = arith.addf %91, %92 : vector<1x128xf32>
    %c27 = arith.constant 27 : index
    %c1408_62 = arith.constant 1408 : index
    %94 = vector.load %arg11[%c27, %c1408_62] : memref<32x1536xf32, #tpu.memory_space<vmem>>, vector<1x128xf32>
    %95 = arith.addf %93, %94 : vector<1x128xf32>
    %c1_63 = arith.constant 1 : index
    %c0_64 = arith.constant 0 : index
    %96 = vector.load %arg12[%c1_63, %c0_64] : memref<2x128xf32, #tpu.memory_space<vmem>>, vector<1x128xf32>
    tpu.vector_store %arg12[%c1_63, %c0_64], %95 {strides = array<i32>} : memref<2x128xf32, #tpu.memory_space<vmem>>, vector<1x128xf32>,
    %c0_65 = arith.constant 0 : index
    %c0_66 = arith.constant 0 : index
    %97 = vector.load %arg12[%c0_65, %c0_66] : memref<2x128xf32, #tpu.memory_space<vmem>>, vector<2x128xf32>
    %c0_67 = arith.constant 0 : index
    %c0_68 = arith.constant 0 : index
    %98 = vector.load %arg6[%c0_67, %c0_68] : memref<1x128xf32, #tpu.memory_space<vmem>>, vector<1x128xf32>
    %99 = vector.broadcast %98 : vector<1x128xf32> to vector<2x128xf32>
    %100 = arith.addf %97, %99 : vector<2x128xf32>
    %cst_69 = arith.constant 0.000000e+00 : f32
    %101 = vector.broadcast %cst_69 : f32 to vector<2x128xf32>
    %102 = arith.maximumf %100, %101 : vector<2x128xf32>
    %c0_70 = arith.constant 0 : index
    %c0_71 = arith.constant 0 : index
    %103 = vector.load %arg7[%c0_70, %c0_71] : memref<128x128xf32, #tpu.memory_space<vmem>>, vector<128x128xf32>
    %cst_72 = arith.constant dense<0.000000e+00> : vector<2x128xf32>
    %104 = tpu.matmul %102, %103, %cst_72 {dimension_numbers = #tpu.dot_dimension_numbers<[1], [0], [0], [1], [0, 0, 1, 1], [], []>} : vector<2x128xf32>, vector<128x128xf32>, vector<2x128xf32> -> vector<2x128xf32>
    %c0_73 = arith.constant 0 : index
    %c0_74 = arith.constant 0 : index
    %105 = vector.load %arg8[%c0_73, %c0_74] : memref<1x128xf32, #tpu.memory_space<vmem>>, vector<1x128xf32>
    %106 = vector.broadcast %105 : vector<1x128xf32> to vector<2x128xf32>
    %107 = arith.addf %104, %106 : vector<2x128xf32>
    %108 = tpu.iota {dimensions = array<i32: 1>} : vector<2x128xi32>
    %c4_i32 = arith.constant 4 : i32
    %109 = vector.broadcast %c4_i32 : i32 to vector<2x128xi32>
    %110 = arith.cmpi slt, %108, %109 : vector<2x128xi32>
    %c4_i32_75 = arith.constant 4 : i32
    %111 = vector.broadcast %c4_i32_75 : i32 to vector<2x128xi32>
    %112 = arith.cmpi sge, %108, %111 : vector<2x128xi32>
    %c14_i32 = arith.constant 14 : i32
    %113 = vector.broadcast %c14_i32 : i32 to vector<2x128xi32>
    %114 = arith.cmpi slt, %108, %113 : vector<2x128xi32>
    %115 = arith.andi %112, %114 : vector<2x128xi1>
    %cst_76 = arith.constant -1.000000e+30 : f32
    %116 = vector.broadcast %cst_76 : f32 to vector<2x128xf32>
    %117 = arith.select %110, %107, %116 : vector<2x128xi1>, vector<2x128xf32>
    %cst_77 = arith.constant dense<0xFF800000> : vector<2xf32>
    %118 = vector.multi_reduction <maximumf>, %117, %cst_77 [1] : vector<2x128xf32> to vector<2xf32>
    %119 = vector.shape_cast %118 : vector<2xf32> to vector<2x1xf32>
    %120 = vector.broadcast %119 : vector<2x1xf32> to vector<2x128xf32>
    %121 = arith.subf %117, %120 : vector<2x128xf32>
    %122 = math.exp %121 : vector<2x128xf32>
    %cst_78 = arith.constant 0.000000e+00 : f32
    %123 = vector.broadcast %cst_78 : f32 to vector<2x128xf32>
    %124 = arith.select %110, %122, %123 : vector<2x128xi1>, vector<2x128xf32>
    %cst_79 = arith.constant dense<0.000000e+00> : vector<2xf32>
    %125 = vector.multi_reduction <add>, %124, %cst_79 [1] : vector<2x128xf32> to vector<2xf32>
    %126 = vector.shape_cast %125 : vector<2xf32> to vector<2x1xf32>
    %127 = tpu.reciprocal %126 {approx = true} : vector<2x1xf32> -> vector<2x1xf32>
    %128 = vector.broadcast %127 : vector<2x1xf32> to vector<2x128xf32>
    %129 = arith.mulf %124, %128 : vector<2x128xf32>
    %cst_80 = arith.constant -1.000000e+30 : f32
    %130 = vector.broadcast %cst_80 : f32 to vector<2x128xf32>
    %131 = arith.select %115, %107, %130 : vector<2x128xi1>, vector<2x128xf32>
    %cst_81 = arith.constant dense<0xFF800000> : vector<2xf32>
    %132 = vector.multi_reduction <maximumf>, %131, %cst_81 [1] : vector<2x128xf32> to vector<2xf32>
    %133 = vector.shape_cast %132 : vector<2xf32> to vector<2x1xf32>
    %134 = vector.broadcast %133 : vector<2x1xf32> to vector<2x128xf32>
    %135 = arith.subf %131, %134 : vector<2x128xf32>
    %136 = math.exp %135 : vector<2x128xf32>
    %cst_82 = arith.constant 0.000000e+00 : f32
    %137 = vector.broadcast %cst_82 : f32 to vector<2x128xf32>
    %138 = arith.select %115, %136, %137 : vector<2x128xi1>, vector<2x128xf32>
    %cst_83 = arith.constant dense<0.000000e+00> : vector<2xf32>
    %139 = vector.multi_reduction <add>, %138, %cst_83 [1] : vector<2x128xf32> to vector<2xf32>
    %140 = vector.shape_cast %139 : vector<2xf32> to vector<2x1xf32>
    %141 = tpu.reciprocal %140 {approx = true} : vector<2x1xf32> -> vector<2x1xf32>
    %142 = vector.broadcast %141 : vector<2x1xf32> to vector<2x128xf32>
    %143 = arith.mulf %138, %142 : vector<2x128xf32>
    %144 = arith.addf %129, %143 : vector<2x128xf32>
    %c14_i32_84 = arith.constant 14 : i32
    %145 = vector.broadcast %c14_i32_84 : i32 to vector<2x128xi32>
    %146 = arith.cmpi eq, %108, %145 : vector<2x128xi32>
    %cst_85 = arith.constant 0.000000e+00 : f32
    %147 = vector.broadcast %cst_85 : f32 to vector<2x128xf32>
    %148 = arith.select %146, %107, %147 : vector<2x128xi1>, vector<2x128xf32>
    %149 = arith.addf %144, %148 : vector<2x128xf32>
    %c0_86 = arith.constant 0 : index
    %c0_87 = arith.constant 0 : index
    %150 = vector.load %arg9[%c0_86, %c0_87] : memref<2x128xf32, #tpu.memory_space<vmem>>, vector<2x128xf32>
    tpu.vector_store %arg9[%c0_86, %c0_87], %149 {strides = array<i32>} : memref<2x128xf32, #tpu.memory_space<vmem>>, vector<2x128xf32>,
    return
  }
}

</mosaic_0001>

<bundles_post_ra>
// kernel: pg_baseline_v2_forward.1
= control target key start
LH: loop header
LB: loop body
LE: loop exit
PB: predicated region body
PF: predicated region fallthrough
CT: control target
= control target key end

     0   :  { %14 = vsyncpa [#allocation6], 0  ;;  %s6647_s0 = inlined_call_operand.vmem [shape: f32[48,64], index: 0, kind: input, shape index: {}]   ;;  %s6648_s1 = inlined_call_operand.hbm [shape: bf16[3,64,224], index: 1, kind: input, shape index: {}]   ;;  %s6649_s2 = inlined_call_operand.hbm [shape: f32[1,224], index: 2, kind: input, shape index: {}]   ;;  %s6650_s3 = inlined_call_operand.hbm [shape: bf16[3,224,384], index: 3, kind: input, shape index: {}]   ;;  %s6651_s4 = inlined_call_operand.hbm [shape: f32[1,384], index: 4, kind: input, shape index: {}]   ;;  %s6652_s5 = inlined_call_operand.hbm [shape: bf16[384,1536], index: 5, kind: input, shape index: {}]   ;;  %s6653_s6 = inlined_call_operand.hbm [shape: f32[1,128], index: 6, kind: input, shape index: {}]   ;;  %s6654_s7 = inlined_call_operand.hbm [shape: f32[128,128], index: 7, kind: input, shape index: {}]   ;;  %s6655_s8 = inlined_call_operand.hbm [shape: f32[1,128], index: 8, kind: input, shape index: {}]   ;;  %s6656_s9 = inlined_call_operand.vmem [shape: f32[2,128], index: 9, kind: output, shape index: {}]  }
   0x1   :  { %15 = vsyncpa [#allocation8], 0 }
   0x2   :  { %16 = vsyncpa [#allocation11], 0 }
   0x3   :  { %17 = vsyncpa [#allocation14], 0 }
   0x4   :  { %18 = vsyncpa [#allocation17], 0  ;;  %s6150_s30 = smov [#allocation7]   ;;  %s6151_s11 = smov [#allocation10]  }
   0x5   :  { %s39_s10 = sshll.u32 %s6150_s30, 4  ;;  %s61_s12 = sshll.u32 %s6151_s11, 4  ;;  %s40_s10 = int_to_ptr.vmem [resolvable:$true] %s39_s10  ;;  %s62_s12 = int_to_ptr.vmem [resolvable:$true] %s61_s12 }
   0x6   :  { %s5964_s15 = scalar_lea.hbm %s6649_s2, 32 }
   0x7   :  { %p5965_p0 = scmp.ne.s32.totalorder %s6649_s2, %s5964_s15  ;;  %p5968_p1 = scmp.lt.u32.totalorder %s5964_s15, %s6649_s2 }
   0x9   :  { %p5970_p2 = pnand %p5968_p1, %p5965_p0 }
   0xb   :  { %5973 = shalt.err (!%p5970_p2)
}
   0xc   :  { %s5974_s20 = scalar_lea.vmem %s40_s10, 32  ;;  %p5979_p4 = scmp.lt.s32.totalorder %s40_s10, %s40_s10 }
   0xd   :  { %p5975_p3 = scmp.ne.s32.totalorder %s40_s10, %s5974_s20  ;;  %p5980_p5 = scmp.lt.s32.totalorder %s5974_s20, %s5974_s20 }
   0xf   :  { %p5981_p6 = por %p5980_p5, %p5979_p4 }
  0x11   :  { %p5982_p7 = pnand %p5981_p6, %p5975_p3 }
  0x13   :  { %5985 = shalt.err (!%p5982_p7)
}
  0x14   :  { %42 = dma.hbm_to_vmem [thread:$0]  %s6649_s2, 32, %s40_s10, [#allocation8]  }
  0x15   :  { %s5986_s25 = scalar_lea.hbm %s6651_s4, 48 }
  0x16   :  { %p5987_p8 = scmp.ne.s32.totalorder %s6651_s4, %s5986_s25  ;;  %p5990_p9 = scmp.lt.u32.totalorder %s5986_s25, %s6651_s4 }
  0x18   :  { %p5992_p10 = pnand %p5990_p9, %p5987_p8 }
  0x1a   :  { %5995 = shalt.err (!%p5992_p10)
}
  0x1b   :  { %s5996_s30 = scalar_lea.vmem %s62_s12, 48  ;;  %s6000_s11 = scalar_lea.vmem %s62_s12, 64 }
  0x1c   :  { %p5997_p11 = scmp.ne.s32.totalorder %s62_s12, %s5996_s30  ;;  %p6001_p12 = scmp.lt.s32.totalorder %s62_s12, %s62_s12 }
  0x1d   :  { %p6002_p13 = scmp.lt.s32.totalorder %s6000_s11, %s5996_s30 }
  0x1f   :  { %p6003_p0 = por %p6002_p13, %p6001_p12 }
  0x21   :  { %p6004_p1 = pnand %p6003_p0, %p5997_p11 }
  0x23   :  { %6007 = shalt.err (!%p6004_p1)
}
  0x24   :  { %64 = dma.hbm_to_vmem [thread:$0]  %s6651_s4, 48, %s62_s12, [#allocation11]  }
  0x25   :  { %s6152_s13 = smov [#allocation13]   ;;  %s6153_s15 = smov [#allocation5]  }
  0x26   :  { %s83_s14 = sshll.u32 %s6152_s13, 4  ;;  %s26_s16 = sshll.u32 %s6153_s15, 4  ;;  %s84_s14 = int_to_ptr.vmem [resolvable:$true] %s83_s14  ;;  %s6242_s16 = int_to_ptr.vmem [resolvable:$true] %s26_s16 }
  0x27   :  { %s6008_s19 = scalar_lea.hbm %s6653_s6, 16 }
  0x28   :  { %p6009_p2 = scmp.ne.s32.totalorder %s6653_s6, %s6008_s19  ;;  %p6012_p3 = scmp.lt.u32.totalorder %s6008_s19, %s6653_s6 }
  0x2a   :  { %p6014_p4 = pnand %p6012_p3, %p6009_p2 }
  0x2c   :  { %6017 = shalt.err (!%p6014_p4)
}
  0x2d   :  { %s6018_s4 = scalar_lea.vmem %s84_s14, 16  ;;  %s6022_s12 = scalar_lea.vmem %s84_s14, 32 }
  0x2e   :  { %p6019_p5 = scmp.ne.s32.totalorder %s84_s14, %s6018_s4  ;;  %p6023_p6 = scmp.lt.s32.totalorder %s84_s14, %s84_s14 }
  0x2f   :  { %p6024_p7 = scmp.lt.s32.totalorder %s6022_s12, %s6018_s4 }
  0x31   :  { %p6025_p8 = por %p6024_p7, %p6023_p6 }
  0x33   :  { %p6026_p9 = pnand %p6025_p8, %p6019_p5 }
  0x35   :  { %6029 = shalt.err (!%p6026_p9)
}
  0x36   :  { %86 = dma.hbm_to_vmem [thread:$0]  %s6653_s6, 16, %s84_s14, [#allocation14]  }
  0x37   :  { %s6030_s28 = scalar_lea.hbm %s6648_s1, 3072 }
  0x38   :  { %p6031_p10 = scmp.ne.s32.totalorder %s6648_s1, %s6030_s28  ;;  %p6034_p11 = scmp.lt.u32.totalorder %s6030_s28, %s6648_s1 }
  0x3a   :  { %p6036_p12 = pnand %p6034_p11, %p6031_p10 }
  0x3c   :  { %6039 = shalt.err (!%p6036_p12)
}
  0x3d   :  { %s6040_s10 = scalar_lea.vmem %s6242_s16, 3072  ;;  %p6045_p0 = scmp.lt.s32.totalorder %s6242_s16, %s6242_s16 }
  0x3e   :  { %p6041_p13 = scmp.ne.s32.totalorder %s6242_s16, %s6040_s10  ;;  %p6046_p1 = scmp.lt.s32.totalorder %s6040_s10, %s6040_s10 }
  0x40   :  { %p6047_p2 = por %p6046_p1, %p6045_p0 }
  0x42   :  { %p6048_p3 = pnand %p6047_p2, %p6041_p13 }
  0x44   :  { %6051 = shalt.err (!%p6048_p3)
}
  0x45   :  { %s6154_s6 = smov 128   ;;  %s6155_s13 = smov 8  }
  0x46   :  { %32 = dma.hbm_to_vmem [thread:$0]  %s6648_s1, 3072, %s6242_s16, [#allocation6], %s6154_s6, %s6154_s6, %s6155_s13  }
  0x47   :  { %s6156_s17 = smov [#allocation9]   ;;  %s6052_s21 = scalar_lea.hbm %s6650_s3, 16128 }
  0x48   :  { %s48_s18 = sshll.u32 %s6156_s17, 4  ;;  %p6053_p4 = scmp.ne.s32.totalorder %s6650_s3, %s6052_s21  ;;  %s49_s18 = int_to_ptr.vmem [resolvable:$true] %s48_s18 }
  0x49   :  { %p6056_p5 = scmp.lt.u32.totalorder %s6052_s21, %s6650_s3 }
  0x4b   :  { %p6058_p6 = pnand %p6056_p5, %p6053_p4 }
  0x4d   :  { %6061 = shalt.err (!%p6058_p6)
}
  0x4e   :  { %s6062_s24 = scalar_lea.vmem %s49_s18, 16128  ;;  %p6067_p8 = scmp.lt.s32.totalorder %s49_s18, %s49_s18 }
  0x4f   :  { %p6063_p7 = scmp.ne.s32.totalorder %s49_s18, %s6062_s24  ;;  %p6068_p9 = scmp.lt.s32.totalorder %s6062_s24, %s6062_s24 }
  0x51   :  { %p6069_p10 = por %p6068_p9, %p6067_p8 }
  0x53   :  { %p6070_p11 = pnand %p6069_p10, %p6063_p7 }
  0x55   :  { %6073 = shalt.err (!%p6070_p11)
}
  0x56   :  { %s6157_s1 = smov 192   ;;  %s6158_s16 = smov 12  }
  0x57   :  { %54 = dma.hbm_to_vmem [thread:$0]  %s6650_s3, 16128, %s49_s18, [#allocation8], %s6157_s1, %s6157_s1, %s6158_s16  }
  0x58   :  { %s6159_s27 = smov [#allocation12]   ;;  %s6074_s11 = scalar_lea.hbm %s6652_s5, 36864 }
  0x59   :  { %s70_s28 = sshll.u32 %s6159_s27, 4  ;;  %p6075_p12 = scmp.ne.s32.totalorder %s6652_s5, %s6074_s11  ;;  %s71_s28 = int_to_ptr.vmem [resolvable:$true] %s70_s28 }
  0x5a   :  { %p6078_p13 = scmp.lt.u32.totalorder %s6074_s11, %s6652_s5 }
  0x5c   :  { %p6080_p0 = pnand %p6078_p13, %p6075_p12 }
  0x5e   :  { %6083 = shalt.err (!%p6080_p0)
}
  0x5f   :  { %s6084_s17 = scalar_lea.vmem %s71_s28, 36864  ;;  %p6089_p2 = scmp.lt.s32.totalorder %s71_s28, %s71_s28 }
  0x60   :  { %p6085_p1 = scmp.ne.s32.totalorder %s71_s28, %s6084_s17  ;;  %p6090_p3 = scmp.lt.s32.totalorder %s6084_s17, %s6084_s17 }
  0x62   :  { %p6091_p4 = por %p6090_p3, %p6089_p2 }
  0x64   :  { %p6092_p5 = pnand %p6091_p4, %p6085_p1 }
  0x66   :  { %6095 = shalt.err (!%p6092_p5)
}
  0x67   :  { %s6160_s3 = smov 768   ;;  %s6161_s18 = smov 48  }
  0x68   :  { %76 = dma.hbm_to_vmem [thread:$0]  %s6652_s5, 36864, %s71_s28, [#allocation11], %s6160_s3, %s6160_s3, %s6161_s18  }
  0x69   :  { %s6162_s21 = smov [#allocation15]   ;;  %s6163_s23 = smov [#allocation16]  }
  0x6a   :  { %s92_s22 = sshll.u32 %s6162_s21, 4  ;;  %s105_s4 = sshll.u32 %s6163_s23, 4  ;;  %s93_s22 = int_to_ptr.vmem [resolvable:$true] %s92_s22  ;;  %s106_s4 = int_to_ptr.vmem [resolvable:$true] %s105_s4 }
  0x6b   :  { %s6096_s1 = scalar_lea.hbm %s6654_s7, 2048 }
  0x6c   :  { %p6097_p6 = scmp.ne.s32.totalorder %s6654_s7, %s6096_s1  ;;  %p6100_p7 = scmp.lt.u32.totalorder %s6096_s1, %s6654_s7 }
  0x6e   :  { %p6102_p8 = pnand %p6100_p7, %p6097_p6 }
  0x70   :  { %6105 = shalt.err (!%p6102_p8)
}
  0x71   :  { %s6106_s5 = scalar_lea.vmem %s93_s22, 2048  ;;  %p6111_p10 = scmp.lt.s32.totalorder %s93_s22, %s93_s22 }
  0x72   :  { %p6107_p9 = scmp.ne.s32.totalorder %s93_s22, %s6106_s5  ;;  %p6112_p11 = scmp.lt.s32.totalorder %s6106_s5, %s6106_s5 }
  0x74   :  { %p6113_p12 = por %p6112_p11, %p6111_p10 }
  0x76   :  { %p6114_p13 = pnand %p6113_p12, %p6107_p9 }
  0x78   :  { %6117 = shalt.err (!%p6114_p13)
}
  0x79   :  { %98 = dma.hbm_to_vmem [thread:$0]  %s6654_s7, 2048, %s93_s22, [#allocation14], %s6154_s6, %s6154_s6, %s6155_s13  }
  0x7a   :  { %s6118_s2 = scalar_lea.hbm %s6655_s8, 16 }
  0x7b   :  { %p6119_p0 = scmp.ne.s32.totalorder %s6655_s8, %s6118_s2  ;;  %p6122_p1 = scmp.lt.u32.totalorder %s6118_s2, %s6655_s8 }
  0x7d   :  { %p6124_p2 = pnand %p6122_p1, %p6119_p0 }
  0x7f   :  { %6127 = shalt.err (!%p6124_p2)
}
  0x80   :  { %s6128_s3 = scalar_lea.vmem %s106_s4, 16  ;;  %s6132_s18 = scalar_lea.vmem %s106_s4, 32 }
  0x81   :  { %p6129_p3 = scmp.ne.s32.totalorder %s106_s4, %s6128_s3  ;;  %p6133_p4 = scmp.lt.s32.totalorder %s106_s4, %s106_s4 }
  0x82   :  { %p6134_p5 = scmp.lt.s32.totalorder %s6132_s18, %s6128_s3 }
  0x84   :  { %p6135_p6 = por %p6134_p5, %p6133_p4 }
  0x86   :  { %p6136_p7 = pnand %p6135_p6, %p6129_p3 }
  0x88   :  { %6139 = shalt.err (!%p6136_p7)
}
  0x89   :  { %108 = dma.hbm_to_vmem [thread:$0]  %s6655_s8, 16, %s106_s4, [#allocation17]  }
  0x8a   :  { %6140 = dma.done.wait [#allocation6], 3072  }
  0x8b   :  { %6141 = vsyncadd [#allocation6], 4294964224 }
  0x8c   :  { %6142 = dma.done.wait [#allocation8], 16160  }
  0x8d   :  { %6143 = vsyncadd [#allocation8], 4294951136 }
  0x8e   :  { %6144 = dma.done.wait [#allocation11], 36912  }
  0x8f   :  { %6145 = vsyncadd [#allocation11], 4294930384 }
  0x90   :  { %6146 = dma.done.wait [#allocation14], 2064  }
  0x91   :  { %6147 = vsyncadd [#allocation14], 4294965232 }
  0x92   :  { %6148 = dma.done.wait [#allocation17], 16  }
  0x93   :  { %6149 = vsyncadd [#allocation17], 4294967280  ;;  %v6164_v0 = vmov 0.0   ;;  %v5320_v1 = vld [vmem:[#allocation5 + $0x4] ss:$8 sps:$4 sm:$0xff]   ;;  %vm193_vm0 = vcmask 523264  }
  0x94   :  { %383 = vmatprep.mubr.f32.mxu0 %v6164_v0  ;;  %273 = vmatprep.mubr.f32.mxu1 %v6164_v0  ;;  %v5322_v2 = vld [vmem:[#allocation5] ss:$8 sps:$4 sm:$0xff]   ;;  %v5323_v3 = vld [vmem:[#allocation5 + $0x14] ss:$8 sps:$4 sm:$0xff]   ;;  %v5325_v4 = vld [vmem:[#allocation5 + $0x10] ss:$8 sps:$4 sm:$0xff]  }
  0x95   :  { %4719 = vmatprep.subr.bf16.mxu0 %v5320_v1  ;;  %v5326_v5 = vld [vmem:[#allocation5 + $0x24] ss:$8 sps:$4 sm:$0xff]   ;;  %v5328_v6 = vld [vmem:[#allocation5 + $0x20] ss:$8 sps:$4 sm:$0xff]   ;;  %v5329_v8 = vld [vmem:[#allocation5 + $0x34] ss:$8 sps:$4 sm:$0xff]  }
  0x96   :  { %4721 = vmatpush1.bf16.msra.mxu0 %v5322_v2  ;;  %v5335_v7 = vld [vmem:[#allocation5 + $0x44] ss:$8 sps:$4 sm:$0xff]   ;;  %v5337_v9 = vld [vmem:[#allocation5 + $0x40] ss:$8 sps:$4 sm:$0xff]   ;;  %v5341_v10 = vld [vmem:[#allocation5 + $0x54] ss:$8 sps:$4 sm:$0xff]  }
  0x97   :  { %4723 = vmatprep.subr.bf16.mxu0 %v5323_v3  ;;  %4703 = vmatprep.subr.bf16.mxu1 %v5335_v7  ;;  %v5331_v11 = vld [vmem:[#allocation5 + $0x30] ss:$8 sps:$4 sm:$0xff]   ;;  %v5332_v13 = vld [vmem:[#allocation5 + $0x84] ss:$8 sps:$4 sm:$0xff]   ;;  %v5349_v16 = vld [vmem:[#allocation5 + $0x60] ss:$8 sps:$4 sm:$0xff]  }
  0x98   :  { %4705 = vmatpush1.bf16.msra.mxu1 %v5337_v9  ;;  %v5343_v12 = vld [vmem:[#allocation5 + $0x50] ss:$8 sps:$4 sm:$0xff]   ;;  %v5347_v14 = vld [vmem:[#allocation5 + $0x64] ss:$8 sps:$4 sm:$0xff]   ;;  %v5334_v17 = vld [vmem:[#allocation5 + $0x80] ss:$8 sps:$4 sm:$0xff]  }
  0x99   :  { %4707 = vmatprep.subr.bf16.mxu1 %v5341_v10  ;;  %v134_v15 = vld [vmem:[%s6647_s0] sm:$0xff]  ;;  %v135_v21 = vld [vmem:[%s6647_s0 + $0x8] sm:$0xff]  ;;  %v136_v24 = vld [vmem:[%s6647_s0 + $0x10] sm:$0xff]  ;;  %v6165_v38 = vmov 0.0|0.0   ;;  %vm597_vm1 = vcmask 785408   ;;  %vm910_vm2 = vcmask 1046528  }
  0x9a   :  { %4725 = vmatpush1.bf16.msra.mxu0 %v5325_v4  ;;  %v5338_v18 = vld [vmem:[#allocation5 + $0x94] ss:$8 sps:$4 sm:$0xff]   ;;  %v5355_v20 = vld [vmem:[#allocation5 + $0x70] ss:$8 sps:$4 sm:$0xff]   ;;  %v5344_v23 = vld [vmem:[#allocation5 + $0xa4] ss:$8 sps:$4 sm:$0xff]  }
  0x9b   :  { %4727 = vmatprep.subr.bf16.mxu0 %v5326_v5  ;;  %v5353_v19 = vld [vmem:[#allocation5 + $0x74] ss:$8 sps:$4 sm:$0xff]   ;;  %v5340_v22 = vld [vmem:[#allocation5 + $0x90] ss:$8 sps:$4 sm:$0xff]   ;;  %v5346_v27 = vld [vmem:[#allocation5 + $0xa0] ss:$8 sps:$4 sm:$0xff]  }
  0x9c   :  { %4709 = vmatpush1.bf16.msra.mxu1 %v5343_v12  ;;  %v5356_v25 = vld [vmem:[#allocation9 + $0x154] ss:$12 sps:$4 sm:$0xff]   ;;  %v5358_v29 = vld [vmem:[#allocation9 + $0x150] ss:$12 sps:$4 sm:$0xff]   ;;  %v5360_v30 = vld [vmem:[#allocation9 + $0x16c] ss:$12 sps:$4 sm:$0xff]  }
  0x9d   :  { %4711 = vmatprep.subr.bf16.mxu1 %v5347_v14  ;;  %v163_v26 = vld [vmem:[%s6647_s0 + $0x1] sm:$0xff]  ;;  %v137_v31 = vld [vmem:[%s6647_s0 + $0x18] sm:$0xff]  ;;  %v164_v32 = vld [vmem:[%s6647_s0 + $0x9] sm:$0xff]  ;;  %vm1447_vm3 = vcmask 1045504   ;;  %vm6167_vm4 = vmmov 0   ;;  %vm4281_vm9 = vcmask 1041408  }
  0x9e   :  { %4729 = vmatpush1.bf16.msra.mxu0 %v5328_v6  ;;  %v5350_v28 = vld [vmem:[#allocation5 + $0xb4] ss:$8 sps:$4 sm:$0xff]   ;;  %v5352_v33 = vld [vmem:[#allocation5 + $0xb0] ss:$8 sps:$4 sm:$0xff]   ;;  %v166_v42 = vld [vmem:[%s6647_s0 + $0x19] sm:$0xff] }
  0x9f   :  { %4731 = vmatprep.subr.bf16.mxu0 %v5329_v8  ;;  %v5362_v34 = vld [vmem:[#allocation9 + $0x168] ss:$12 sps:$4 sm:$0xff]   ;;  %v5364_v35 = vld [vmem:[#allocation9 + $0x184] ss:$12 sps:$4 sm:$0xff]   ;;  %v5366_v39 = vld [vmem:[#allocation9 + $0x180] ss:$12 sps:$4 sm:$0xff]  }
  0xa0   :  { %4713 = vmatpush1.bf16.msra.mxu1 %v5349_v16  ;;  %v165_v36 = vld [vmem:[%s6647_s0 + $0x11] sm:$0xff]  ;;  %v138_v37 = vld [vmem:[%s6647_s0 + $0x20] sm:$0xff]  ;;  %v5367_v52 = vld [vmem:[#allocation9 + $0x188] ss:$12 sps:$4 sm:$0xff]  }
  0xa1   :  { %4715 = vmatprep.subr.bf16.mxu1 %v5353_v19  ;;  %v414_v40 = vld [vmem:[%s6647_s0 + $0x2] sm:$0xff]  ;;  %v5368_v41 = vld [vmem:[#allocation9 + $0x19c] ss:$12 sps:$4 sm:$0xff]   ;;  %v5359_v43 = vld [vmem:[#allocation9 + $0x158] ss:$12 sps:$4 sm:$0xff]  }
  0xa2   :  { %4733 = vmatpush1.bf16.msra.mxu0 %v5331_v11  ;;  %v5370_v44 = vld [vmem:[#allocation9 + $0x198] ss:$12 sps:$4 sm:$0xff]   ;;  %v5372_v45 = vld [vmem:[#allocation9 + $0x1b4] ss:$12 sps:$4 sm:$0xff]   ;;  %v5363_v48 = vld [vmem:[#allocation9 + $0x170] ss:$12 sps:$4 sm:$0xff]  }
  0xa3   :  { %4735 = vmatprep.subr.bf16.mxu0 %v5332_v13  ;;  %v415_v46 = vld [vmem:[%s6647_s0 + $0xa] sm:$0xff]  ;;  %v167_v47 = vld [vmem:[%s6647_s0 + $0x21] sm:$0xff]  ;;  %v416_v51 = vld [vmem:[%s6647_s0 + $0x12] sm:$0xff] }
  0xa4   :  { %4717 = vmatpush1.bf16.msra.mxu1 %v5355_v20  ;;  %v5374_v49 = vld [vmem:[#allocation9 + $0x1b0] ss:$12 sps:$4 sm:$0xff]   ;;  %v5376_v50 = vld [vmem:[#allocation9 + $0x1cc] ss:$12 sps:$4 sm:$0xff]   ;;  %v5378_v53 = vld [vmem:[#allocation9 + $0x1c8] ss:$12 sps:$4 sm:$0xff]  }
  0xa5   :  { %4326 = vmatmul.mubr.msk.f32.vlgmr.msra.gmra.mrb[0].mxu0 %vm193_vm0, %v134_v15  ;;  %4751 = vmatprep.subr.bf16.mxu1 %v5356_v25  ;;  %v5380_v54 = vld [vmem:[#allocation9 + $0x1e4] ss:$12 sps:$4 sm:$0xff]   ;;  %v5371_v56 = vld [vmem:[#allocation9 + $0x1a0] ss:$12 sps:$4 sm:$0xff]   ;;  %v5384_v58 = vld [vmem:[#allocation9 + $0x1fc] ss:$12 sps:$4 sm:$0xff]  }
  0xa6   :  { %4737 = vmatpush1.bf16.msra.mxu0 %v5334_v17  ;;  %389 = vmatprep.mubr.f32.mxu0 %v6164_v0  ;;  %v417_v55 = vld [vmem:[%s6647_s0 + $0x1a] sm:$0xff]  ;;  %v418_v59 = vld [vmem:[%s6647_s0 + $0x22] sm:$0xff] }
  0xa7   :  { %4739 = vmatprep.subr.bf16.mxu0 %v5338_v18  ;;  %4321 = vmatmul.mubr.msk.f32.vlgmr.msra.gmra.mrb[0].mxu1 %vm193_vm0, %v163_v26  ;;  %v5382_v57 = vld [vmem:[#allocation9 + $0x1e0] ss:$12 sps:$4 sm:$0xff]   ;;  %v5375_v60 = vld [vmem:[#allocation9 + $0x1b8] ss:$12 sps:$4 sm:$0xff]   ;;  %v5379_v63 = vld [vmem:[#allocation9 + $0x1d0] ss:$12 sps:$4 sm:$0xff]  }
  0xa8   :  { %279 = vmatprep.mubr.f32.mxu1 %v6164_v0  ;;  %4753 = vmatpush1.bf16.msra.mxu1 %v5358_v29  ;;  %v5386_v61 = vld [vmem:[#allocation9 + $0x1f8] ss:$12 sps:$4 sm:$0xff]   ;;  %v5388_v62 = vld [vmem:[#allocation9 + $0x214] ss:$12 sps:$4 sm:$0xff]   ;;  %v5390_v1 = vld [vmem:[#allocation9 + $0x210] ss:$12 sps:$4 sm:$0xff]  }
  0xa9   :  { %4327 = vmatmul.mubr.msk.f32.gmra.mrb[2].mxu0 %vm193_vm0, %v135_v21  ;;  %4755 = vmatprep.subr.bf16.mxu1 %v5360_v30  ;;  %v5383_v2 = vld [vmem:[#allocation9 + $0x1e8] ss:$12 sps:$4 sm:$0xff]   ;;  %v5387_v3 = vld [vmem:[#allocation9 + $0x200] ss:$12 sps:$4 sm:$0xff]   ;;  %v5391_v4 = vld [vmem:[#allocation9 + $0x218] ss:$12 sps:$4 sm:$0xff]  }
  0xaa   :  { %4741 = vmatpush1.bf16.msra.mxu0 %v5340_v22  ;;  %395 = vmatprep.mubr.f32.mxu0 %v6164_v0  ;;  %v5392_v5 = vld [vmem:[#allocation9 + $0x22c] ss:$12 sps:$4 sm:$0xff]   ;;  %v5394_v6 = vld [vmem:[#allocation9 + $0x228] ss:$12 sps:$4 sm:$0xff]   ;;  %v5395_v7 = vld [vmem:[#allocation9 + $0x230] ss:$12 sps:$4 sm:$0xff]   ;;  %v566_v22 = vlaneseq }
  0xab   :  { %4743 = vmatprep.subr.bf16.mxu0 %v5344_v23  ;;  %4322 = vmatmul.mubr.msk.f32.gmra.mrb[2].mxu1 %vm193_vm0, %v164_v32  ;;  %v5396_v8 = vld [vmem:[#allocation9 + $0x244] ss:$12 sps:$4 sm:$0xff]   ;;  %v5398_v9 = vld [vmem:[#allocation9 + $0x240] ss:$12 sps:$4 sm:$0xff]   ;;  %v5399_v10 = vld [vmem:[#allocation9 + $0x248] ss:$12 sps:$4 sm:$0xff]  }
  0xac   :  { %285 = vmatprep.mubr.f32.mxu1 %v6164_v0  ;;  %4757 = vmatpush1.bf16.msra.mxu1 %v5362_v34  ;;  %v5400_v11 = vld [vmem:[#allocation9 + $0x25c] ss:$12 sps:$4 sm:$0xff]   ;;  %v5402_v12 = vld [vmem:[#allocation9 + $0x258] ss:$12 sps:$4 sm:$0xff]   ;;  %v5403_v13 = vld [vmem:[#allocation9 + $0x260] ss:$12 sps:$4 sm:$0xff]  }
  0xad   :  { %4328 = vmatmul.mubr.msk.f32.gmra.mrb[4].mxu0 %vm193_vm0, %v136_v24  ;;  %4759 = vmatprep.subr.bf16.mxu1 %v5364_v35  ;;  %v5404_v14 = vld [vmem:[#allocation9 + $0x274] ss:$12 sps:$4 sm:$0xff]   ;;  %v5406_v15 = vld [vmem:[#allocation9 + $0x270] ss:$12 sps:$4 sm:$0xff]   ;;  %v5407_v16 = vld [vmem:[#allocation9 + $0x278] ss:$12 sps:$4 sm:$0xff]  }
  0xae   :  { %401 = vmatprep.mubr.f32.mxu0 %v6164_v0  ;;  %4745 = vmatpush1.bf16.msra.mxu0 %v5346_v27  ;;  %v5408_v17 = vld [vmem:[#allocation9 + $0x28c] ss:$12 sps:$4 sm:$0xff]   ;;  %v5410_v18 = vld [vmem:[#allocation9 + $0x288] ss:$12 sps:$4 sm:$0xff]   ;;  %v5411_v19 = vld [vmem:[#allocation9 + $0x290] ss:$12 sps:$4 sm:$0xff]  }
  0xaf   :  { %4747 = vmatprep.subr.bf16.mxu0 %v5350_v28  ;;  %4323 = vmatmul.mubr.msk.f32.gmra.mrb[4].mxu1 %vm193_vm0, %v165_v36  ;;  %v5412_v20 = vld [vmem:[#allocation9 + $0x4] ss:$12 sps:$4 sm:$0xff]   ;;  %v6418_v24 = vshrl.u32 %v566_v22, 7  ;;  %v564_v29 = vld [vmem:[#allocation7] sm:$0x3] }
  0xb0   :  { %291 = vmatprep.mubr.f32.mxu1 %v6164_v0  ;;  %4761 = vmatpush1.bf16.msra.mxu1 %v5366_v39 }
  0xb1   :  { %4329 = vmatmul.mubr.msk.f32.gmra.mrb[6].mxu0 %vm193_vm0, %v137_v31  ;;  %4763 = vmatprep.subr.bf16.mxu1 %v5368_v41  ;;  %v568_v27 = vsub.s32 0, %v6418_v24  ;;  %v572_v30 = vsub.s32 1, %v6418_v24 }
  0xb2   :  { %407 = vmatprep.mubr.f32.mxu0 %v6164_v0  ;;  %4749 = vmatpush1.bf16.msra.mxu0 %v5352_v33 }
  0xb3   :  { %4806 = vmatprep.subr.bf16.mxu0 %v6165_v38  ;;  %4324 = vmatmul.mubr.msk.f32.gmra.mrb[6].mxu1 %vm193_vm0, %v166_v42  ;;  %v569_v32 = vrot.slane %v564_v29, %v568_v27  ;;  %v573_v35 = vrot.slane %v564_v29, %v572_v30  ;;  %v5416_v29 = vld [vmem:[#allocation9 + $0x1c] ss:$12 sps:$4 sm:$0xff]  }
  0xb4   :  { %297 = vmatprep.mubr.f32.mxu1 %v6164_v0  ;;  %4765 = vmatpush1.bf16.msra.mxu1 %v5370_v44 }
  0xb5   :  { %4330 = vmatmul.mubr.msk.f32.gmra.mrb[8].mxu0 %vm193_vm0, %v138_v37  ;;  %4767 = vmatprep.subr.bf16.mxu1 %v5372_v45 }
  0xb6   :  { %523 = vmatprep.mubr.f32.mxu0 %v6164_v0 }
  0xb7   :  { %4325 = vmatmul.mubr.msk.f32.gmra.mrb[8].mxu1 %vm193_vm0, %v167_v47 }
  0xb8   :  { %4769 = vmatpush1.bf16.msra.mxu1 %v5374_v49 }
  0xb9   :  { %4331 = vmatmul.mubr.msk.f32.vlgmr.msra.gmra.mrb[0].mxu0 %vm193_vm0, %v414_v40  ;;  %4771 = vmatprep.subr.bf16.mxu1 %v5376_v50 }
  0xba   :  { %529 = vmatprep.mubr.f32.mxu0 %v6164_v0  ;;  %4808 = vmatpush1.bf16.msra.mxu0 %v5359_v43 }
  0xbb   :  { %4809 = vmatprep.subr.bf16.mxu0 %v6165_v38 }
  0xbc   :  { %4773 = vmatpush1.bf16.msra.mxu1 %v5378_v53 }
  0xbd   :  { %4332 = vmatmul.mubr.msk.f32.gmra.mrb[2].mxu0 %vm193_vm0, %v415_v46  ;;  %4775 = vmatprep.subr.bf16.mxu1 %v5380_v54 }
  0xbe   :  { %535 = vmatprep.mubr.f32.mxu0 %v6164_v0  ;;  %4811 = vmatpush1.bf16.msra.mxu0 %v5363_v48 }
  0xbf   :  { %4812 = vmatprep.subr.bf16.mxu0 %v6165_v38 }
  0xc0   :  { %4777 = vmatpush1.bf16.msra.mxu1 %v5382_v57 }
  0xc1   :  { %4333 = vmatmul.mubr.msk.f32.gmra.mrb[4].mxu0 %vm193_vm0, %v416_v51  ;;  %4779 = vmatprep.subr.bf16.mxu1 %v5384_v58 }
  0xc2   :  { %541 = vmatprep.mubr.f32.mxu0 %v6164_v0  ;;  %4814 = vmatpush1.bf16.msra.mxu0 %v5367_v52 }
  0xc3   :  { %4815 = vmatprep.subr.bf16.mxu0 %v6165_v38 }
  0xc4   :  { %4781 = vmatpush1.bf16.msra.mxu1 %v5386_v61 }
  0xc5   :  { %4334 = vmatmul.mubr.msk.f32.gmra.mrb[6].mxu0 %vm193_vm0, %v417_v55  ;;  %4783 = vmatprep.subr.bf16.mxu1 %v5388_v62 }
  0xc6   :  { %547 = vmatprep.mubr.f32.mxu0 %v6164_v0  ;;  %4817 = vmatpush1.bf16.msra.mxu0 %v5371_v56 }
  0xc7   :  { %4818 = vmatprep.subr.bf16.mxu0 %v6165_v38 }
  0xc8   :  { %4785 = vmatpush1.bf16.msra.mxu1 %v5390_v1 }
  0xc9   :  { %4335 = vmatmul.mubr.msk.f32.gmra.mrb[8].mxu0 %vm193_vm0, %v418_v59  ;;  %4787 = vmatprep.subr.bf16.mxu1 %v5392_v5 }
  0xca   :  { %4820 = vmatpush1.bf16.msra.mxu0 %v5375_v60 }
  0xcb   :  { %4821 = vmatprep.subr.bf16.mxu0 %v6165_v38 }
  0xcc   :  { %4789 = vmatpush1.bf16.msra.mxu1 %v5394_v6 }
  0xcd   :  { %4791 = vmatprep.subr.bf16.mxu1 %v5396_v8 }
  0xce   :  { %4823 = vmatpush1.bf16.msra.mxu0 %v5379_v63 }
  0xcf   :  { %4824 = vmatprep.subr.bf16.mxu0 %v6165_v38 }
  0xd0   :  { %4793 = vmatpush1.bf16.msra.mxu1 %v5398_v9 }
  0xd1   :  { %4795 = vmatprep.subr.bf16.mxu1 %v5400_v11 }
  0xd2   :  { %4826 = vmatpush1.bf16.msra.mxu0 %v5383_v2 }
  0xd3   :  { %4827 = vmatprep.subr.bf16.mxu0 %v6165_v38 }
  0xd4   :  { %4797 = vmatpush1.bf16.msra.mxu1 %v5402_v12 }
  0xd5   :  { %4799 = vmatprep.subr.bf16.mxu1 %v5404_v14 }
  0xd6   :  { %4829 = vmatpush1.bf16.msra.mxu0 %v5387_v3 }
  0xd7   :  { %4830 = vmatprep.subr.bf16.mxu0 %v6165_v38 }
  0xd8   :  { %4801 = vmatpush1.bf16.msra.mxu1 %v5406_v15 }
  0xd9   :  { %4803 = vmatprep.subr.bf16.mxu1 %v5408_v17 }
  0xda   :  { %4832 = vmatpush1.bf16.msra.mxu0 %v5391_v4 }
  0xdb   :  { %4833 = vmatprep.subr.bf16.mxu0 %v6165_v38 }
  0xdc   :  { %4805 = vmatpush1.bf16.msra.mxu1 %v5410_v18 }
  0xdd   :  { %4849 = vmatprep.subr.bf16.mxu1 %v5412_v20 }
  0xde   :  { %4835 = vmatpush1.bf16.msra.mxu0 %v5395_v7 }
  0xdf   :  { %4836 = vmatprep.subr.bf16.mxu0 %v6165_v38 }
  0xe2   :  { %4838 = vmatpush1.bf16.msra.mxu0 %v5399_v10 }
  0xe3   :  { %4839 = vmatprep.subr.bf16.mxu0 %v6165_v38 }
  0xe6   :  { %4841 = vmatpush1.bf16.msra.mxu0 %v5403_v13 }
  0xe7   :  { %4842 = vmatprep.subr.bf16.mxu0 %v6165_v38 }
  0xea   :  { %4844 = vmatpush1.bf16.msra.mxu0 %v5407_v16 }
  0xeb   :  { %4845 = vmatprep.subr.bf16.mxu0 %v6165_v38 }
  0xee   :  { %4847 = vmatpush1.bf16.msra.mxu0 %v5411_v19 }
  0xef   :  { %4904 = vmatprep.subr.bf16.mxu0 %v6165_v38 }
 0x17a   :  { %v275_v21 = vpop.f32.mrb[0].mxu1 }
 0x17b   :  { %v277_v23 = vpop.f32.mrb[1].mxu1 }
 0x17e   :  { %v281_v25 = vpop.f32.mrb[2].mxu1 }
 0x17f   :  { %v283_v26 = vpop.f32.mrb[3].mxu1 }
 0x182   :  { %v287_v28 = vpop.f32.mrb[4].mxu1 }
 0x183   :  { %v289_v31 = vpop.f32.mrb[5].mxu1 }
 0x186   :  { %v293_v33 = vpop.f32.mrb[6].mxu1 }
 0x187   :  { %v295_v36 = vpop.f32.mrb[7].mxu1 }
 0x18a   :  { %v299_v42 = vpop.f32.mrb[8].mxu1 }
 0x18b   :  { %v301_v45 = vpop.f32.mrb[9].mxu1 }
 0x18c   :  { %v525_v34 = vpop.f32.mrb[0].mxu0 }
 0x18d   :  { %v5068_v37 = vadd.f32 %v525_v34, %v275_v21  ;;  %v527_v39 = vpop.f32.mrb[1].mxu0  ;;  %v5414_v21 = vld [vmem:[#allocation9] ss:$12 sps:$4 sm:$0xff]  }
 0x18e   :  { %v5069_v40 = vadd.f32 %v527_v39, %v277_v23  ;;  %v5419_v39 = vld [vmem:[#allocation9 + $0x20] ss:$12 sps:$4 sm:$0xff]  }
 0x18f   :  { %v576_v41 = vadd.f32 %v5068_v37, %v569_v32  ;;  %v5418_v37 = vld [vmem:[#allocation9 + $0x18] ss:$12 sps:$4 sm:$0xff]  }
 0x190   :  { %v577_v43 = vadd.f32 %v5069_v40, %v573_v35  ;;  %v531_v44 = vpop.f32.mrb[2].mxu0 }
 0x191   :  { %v6426_v46 = vmax.f32 %v576_v41, 0.0  ;;  %v5070_v47 = vadd.f32 %v531_v44, %v281_v25  ;;  %v533_v48 = vpop.f32.mrb[3].mxu0  ;;  %v5415_v25 = vld [vmem:[#allocation9 + $0x8] ss:$12 sps:$4 sm:$0xff]  }
 0x192   :  { %v587_v49 = vmax.f32 %v577_v43, 0.0  ;;  %v5071_v50 = vadd.f32 %v533_v48, %v283_v26  ;;  %v5420_v41 = vld [vmem:[#allocation9 + $0x34] ss:$12 sps:$4 sm:$0xff]  }
 0x193   :  { %596 = vst [vmem:[#allocation2] sm:$0xff] %v6426_v46  ;;  %v578_v51 = vadd.f32 %v5070_v47, %v569_v32 }
 0x194   :  { %598 = vst.msk [vmem:[#allocation2 + $0x8] sm:$0xff] %vm597_vm1, %v587_v49  ;;  %v579_v52 = vadd.f32 %v5071_v50, %v573_v35  ;;  %v537_v53 = vpop.f32.mrb[4].mxu0  ;;  %v5422_v49 = vld [vmem:[#allocation9 + $0x30] ss:$12 sps:$4 sm:$0xff]   ;;  %v5423_v50 = vld [vmem:[#allocation9 + $0x38] ss:$12 sps:$4 sm:$0xff]  }
 0x195   :  { %v6430_v54 = vmax.f32 %v578_v51, 0.0  ;;  %v5072_v55 = vadd.f32 %v537_v53, %v287_v28  ;;  %v539_v56 = vpop.f32.mrb[5].mxu0 }
 0x196   :  { %v589_v57 = vmax.f32 %v579_v52, 0.0  ;;  %v5073_v58 = vadd.f32 %v539_v56, %v289_v31  ;;  %v5424_v52 = vld [vmem:[#allocation9 + $0x4c] ss:$12 sps:$4 sm:$0xff]  }
 0x197   :  { %v580_v59 = vadd.f32 %v5072_v55, %v569_v32  ;;  %v912_v23 = vrot.slane %v6430_v54, 1 }
 0x198   :  { %600 = vst.msk [vmem:[#allocation2 + $0x18] sm:$0xff] %vm597_vm1, %v589_v57  ;;  %v581_v60 = vadd.f32 %v5073_v58, %v573_v35  ;;  %v543_v61 = vpop.f32.mrb[6].mxu0 }
 0x199   :  { %v6433_v62 = vmax.f32 %v580_v59, 0.0  ;;  %v5074_v63 = vadd.f32 %v543_v61, %v293_v33  ;;  %v545_v1 = vpop.f32.mrb[7].mxu0  ;;  %v5427_v61 = vld [vmem:[#allocation9 + $0x50] ss:$12 sps:$4 sm:$0xff]  }
 0x19a   :  { %v591_v2 = vmax.f32 %v581_v60, 0.0  ;;  %v5075_v3 = vadd.f32 %v545_v1, %v295_v36  ;;  %v755_v7 = vld [vmem:[#allocation2] sm:$0xfe]  ;;  %v5426_v60 = vld [vmem:[#allocation9 + $0x48] ss:$12 sps:$4 sm:$0xff]  }
 0x19b   :  { %v582_v4 = vadd.f32 %v5074_v63, %v569_v32  ;;  %v756_v11 = vld [vmem:[#allocation2 + $0x8] sm:$0xfe]  ;;  %v911_v16 = vrot.slane %v755_v7, 1  ;;  %v917_v33 = vrot.slane %v6433_v62, 1 }
 0x19c   :  { %602 = vst.msk [vmem:[#allocation2 + $0x28] sm:$0xff] %vm597_vm1, %v591_v2  ;;  %v583_v5 = vadd.f32 %v5075_v3, %v573_v35  ;;  %v549_v6 = vpop.f32.mrb[8].mxu0  ;;  %v914_v18 = vrot.slane %v756_v11, 1  ;;  %v5428_v2 = vld [vmem:[#allocation9 + $0x64] ss:$12 sps:$4 sm:$0xff]   ;;  %v608_v3 = vld [vmem:[#allocation2 + $0x8] sm:$0xff] }
 0x19d   :  { %v6436_v8 = vmax.f32 %v582_v4, 0.0  ;;  %v5076_v9 = vadd.f32 %v549_v6, %v299_v42  ;;  %v551_v10 = vpop.f32.mrb[9].mxu0  ;;  %v913_v31 = vsel %vm910_vm2, %v911_v16, %v912_v23  ;;  %v918_v43 = vsel %vm910_vm2, %v912_v23, %v917_v33  ;;  %v5430_v4 = vld [vmem:[#allocation9 + $0x60] ss:$12 sps:$4 sm:$0xff]   ;;  %v5432_v6 = vld [vmem:[#allocation9 + $0x7c] ss:$12 sps:$4 sm:$0xff]  }
 0x19e   :  { %v593_v12 = vmax.f32 %v583_v5, 0.0  ;;  %v5077_v13 = vadd.f32 %v551_v10, %v301_v45  ;;  %v5431_v5 = vld [vmem:[#allocation9 + $0x68] ss:$12 sps:$4 sm:$0xff]   ;;  %v5434_v7 = vld [vmem:[#allocation9 + $0x78] ss:$12 sps:$4 sm:$0xff]  }
 0x19f   :  { %v584_v14 = vadd.f32 %v5076_v9, %v569_v32  ;;  %v6438_v15 = vld [vmem:[#allocation2 + $0x18] sm:$0xff]  ;;  %v921_v45 = vrot.slane %v6436_v8, 1  ;;  %v5435_v9 = vld [vmem:[#allocation9 + $0x80] ss:$12 sps:$4 sm:$0xff]   ;;  %v5438_v11 = vld [vmem:[#allocation9 + $0x90] ss:$12 sps:$4 sm:$0xff]  }
 0x1a0   :  { %604 = vst.msk [vmem:[#allocation2 + $0x38] sm:$0xff] %vm597_vm1, %v593_v12  ;;  %v585_v17 = vadd.f32 %v5077_v13, %v573_v35  ;;  %v915_v19 = vrot.slane %v6438_v15, 1  ;;  %v1452_v35 = vrot.slane %v6438_v15, 2  ;;  %v5436_v10 = vld [vmem:[#allocation9 + $0x94] ss:$12 sps:$4 sm:$0xff]  }
 0x1a1   :  { %v594_v20 = vmax.f32 %v584_v14, 0.0  ;;  %v922_v56 = vsel %vm910_vm2, %v917_v33, %v921_v45  ;;  %v5439_v12 = vld [vmem:[#allocation9 + $0x98] ss:$12 sps:$4 sm:$0xff]   ;;  %v5442_v14 = vld [vmem:[#allocation9 + $0xa8] ss:$12 sps:$4 sm:$0xff]  }
 0x1a2   :  { %v595_v26 = vmax.f32 %v585_v17, 0.0  ;;  %v916_v28 = vsel %vm910_vm2, %v914_v18, %v915_v19  ;;  %v5440_v13 = vld [vmem:[#allocation9 + $0xac] ss:$12 sps:$4 sm:$0xff]   ;;  %v5443_v16 = vld [vmem:[#allocation9 + $0xb0] ss:$12 sps:$4 sm:$0xff]  }
 0x1a3   :  { %605 = vst [vmem:[#allocation2 + $0x40] sm:$0xff] %v594_v20  ;;  %4336 = vmatprep.mubr.msk.f32.mxu1 %vm597_vm1, %v916_v28  ;;  %4340 = vmatprep.mubr.msk.f32.mxu0 %vm597_vm1, %v916_v28  ;;  %v6447_v32 = vld [vmem:[#allocation2 + $0x28] sm:$0xff]  ;;  %v5444_v17 = vld [vmem:[#allocation9 + $0xc4] ss:$12 sps:$4 sm:$0xff]   ;;  %v5446_v18 = vld [vmem:[#allocation9 + $0xc0] ss:$12 sps:$4 sm:$0xff]  }
 0x1a4   :  { %606 = vst.msk [vmem:[#allocation2 + $0x48] sm:$0xff] %vm597_vm1, %v595_v26  ;;  %1006 = vmatmul.mubr.f32.vlgmr.msra.gmra.mrb[10].mxu1 %v913_v31  ;;  %1095 = vmatmul.mubr.f32.vlgmr.msra.gmra.mrb[10].mxu0 %v913_v31  ;;  %v919_v34 = vrot.slane %v6447_v32, 1  ;;  %v1456_v36 = vrot.slane %v6447_v32, 2  ;;  %v5448_v20 = vld [vmem:[#allocation9 + $0xdc] ss:$12 sps:$4 sm:$0xff]  }
 0x1a5   :  { %4851 = vmatpush1.bf16.msra.mxu1 %v5414_v21  ;;  %4906 = vmatpush1.bf16.msra.mxu0 %v5415_v25  ;;  %v5450_v21 = vld [vmem:[#allocation9 + $0xd8] ss:$12 sps:$4 sm:$0xff]   ;;  %v5451_v23 = vld [vmem:[#allocation9 + $0xe0] ss:$12 sps:$4 sm:$0xff]   ;;  %v5454_v26 = vld [vmem:[#allocation9 + $0xf0] ss:$12 sps:$4 sm:$0xff]  }
 0x1a6   :  { %v920_v40 = vsel %vm910_vm2, %v915_v19, %v919_v34  ;;  %4853 = vmatprep.subr.bf16.mxu1 %v5416_v29  ;;  %4907 = vmatprep.subr.bf16.mxu0 %v6165_v38  ;;  %v6459_v42 = vsel %vm1447_vm3, %v1452_v35, %v1456_v36  ;;  %v5447_v19 = vld [vmem:[#allocation9 + $0xc8] ss:$12 sps:$4 sm:$0xff]   ;;  %v5455_v28 = vld [vmem:[#allocation9 + $0xf8] ss:$12 sps:$4 sm:$0xff]   ;;  %v5459_v33 = vld [vmem:[#allocation9 + $0x110] ss:$12 sps:$4 sm:$0xff]  }
 0x1a7   :  { %4337 = vmatprep.mubr.msk.f32.mxu1 %vm597_vm1, %v920_v40  ;;  %4341 = vmatprep.mubr.msk.f32.mxu0 %vm597_vm1, %v920_v40  ;;  %v6464_v44 = vld [vmem:[#allocation2 + $0x38] sm:$0xff]  ;;  %v5452_v25 = vld [vmem:[#allocation9 + $0xf4] ss:$12 sps:$4 sm:$0xff]   ;;  %v5456_v29 = vld [vmem:[#allocation9 + $0x10c] ss:$12 sps:$4 sm:$0xff]  }
 0x1a8   :  { %1012 = vmatmul.mubr.f32.gmra.mrb[12].mxu1 %v918_v43  ;;  %1100 = vmatmul.mubr.f32.gmra.mrb[12].mxu0 %v918_v43  ;;  %v923_v47 = vrot.slane %v6464_v44, 1  ;;  %v1460_v48 = vrot.slane %v6464_v44, 2  ;;  %v5458_v31 = vld [vmem:[#allocation9 + $0x108] ss:$12 sps:$4 sm:$0xff]   ;;  %v5466_v40 = vld [vmem:[#allocation9 + $0x138] ss:$12 sps:$4 sm:$0xff]  }
 0x1a9   :  { %4855 = vmatpush1.bf16.msra.mxu1 %v5418_v37  ;;  %4909 = vmatpush1.bf16.msra.mxu0 %v5419_v39  ;;  %v5463_v37 = vld [vmem:[#allocation9 + $0x128] ss:$12 sps:$4 sm:$0xff]   ;;  %v5468_v43 = vld [vmem:[#allocation9 + $0x2a4] ss:$12 sps:$4 sm:$0xff]  }
 0x1aa   :  { %v924_v51 = vsel %vm910_vm2, %v919_v34, %v923_v47  ;;  %4857 = vmatprep.subr.bf16.mxu1 %v5420_v41  ;;  %4910 = vmatprep.subr.bf16.mxu0 %v6165_v38  ;;  %v757_v53 = vld [vmem:[#allocation2 + $0x40] sm:$0x1]  ;;  %v6474_v55 = vsel %vm1447_vm3, %v1456_v36, %v1460_v48  ;;  %v5460_v34 = vld [vmem:[#allocation9 + $0x124] ss:$12 sps:$4 sm:$0xff]   ;;  %v5464_v39 = vld [vmem:[#allocation9 + $0x13c] ss:$12 sps:$4 sm:$0xff]  }
 0x1ab   :  { %4338 = vmatprep.mubr.msk.f32.mxu1 %vm597_vm1, %v924_v51  ;;  %4342 = vmatprep.mubr.msk.f32.mxu0 %vm597_vm1, %v924_v51  ;;  %v758_v57 = vld [vmem:[#allocation2 + $0x48] sm:$0x1]  ;;  %v925_v58 = vrot.slane %v757_v53, 1  ;;  %v5462_v36 = vld [vmem:[#allocation9 + $0x120] ss:$12 sps:$4 sm:$0xff]  }
 0x1ac   :  { %1018 = vmatmul.mubr.f32.gmra.mrb[14].mxu1 %v922_v56  ;;  %1105 = vmatmul.mubr.f32.gmra.mrb[14].mxu0 %v922_v56  ;;  %v927_v59 = vrot.slane %v758_v57, 1  ;;  %v5467_v41 = vld [vmem:[#allocation9 + $0x140] ss:$12 sps:$4 sm:$0xff]   ;;  %v5479_v53 = vld [vmem:[#allocation9 + $0x2d8] ss:$12 sps:$4 sm:$0xff]  }
 0x1ad   :  { %4859 = vmatpush1.bf16.msra.mxu1 %v5422_v49  ;;  %4912 = vmatpush1.bf16.msra.mxu0 %v5423_v50  ;;  %v926_v1 = vsel %vm910_vm2, %v921_v45, %v925_v58  ;;  %v5470_v45 = vld [vmem:[#allocation9 + $0x2a0] ss:$12 sps:$4 sm:$0xff]   ;;  %v5472_v49 = vld [vmem:[#allocation9 + $0x2bc] ss:$12 sps:$4 sm:$0xff]   ;;  %v5474_v50 = vld [vmem:[#allocation9 + $0x2b8] ss:$12 sps:$4 sm:$0xff]  }
 0x1ae   :  { %v928_v63 = vsel %vm910_vm2, %v923_v47, %v927_v59  ;;  %4861 = vmatprep.subr.bf16.mxu1 %v5424_v52  ;;  %4913 = vmatprep.subr.bf16.mxu0 %v6165_v38  ;;  %v5471_v47 = vld [vmem:[#allocation9 + $0x2a8] ss:$12 sps:$4 sm:$0xff]   ;;  %v5475_v51 = vld [vmem:[#allocation9 + $0x2c0] ss:$12 sps:$4 sm:$0xff]   ;;  %v5483_v59 = vld [vmem:[#allocation9 + $0x2f0] ss:$12 sps:$4 sm:$0xff]  }
 0x1af   :  { %4339 = vmatprep.mubr.msk.f32.mxu1 %vm597_vm1, %v928_v63  ;;  %4343 = vmatprep.mubr.msk.f32.mxu0 %vm597_vm1, %v928_v63  ;;  %v5476_v52 = vld [vmem:[#allocation9 + $0x2d4] ss:$12 sps:$4 sm:$0xff]   ;;  %v5480_v56 = vld [vmem:[#allocation9 + $0x2ec] ss:$12 sps:$4 sm:$0xff]  }
 0x1b0   :  { %1024 = vmatmul.mubr.f32.gmra.mrb[16].mxu1 %v926_v1  ;;  %1110 = vmatmul.mubr.f32.gmra.mrb[16].mxu0 %v926_v1  ;;  %v1299_v57 = vld [vmem:[#allocation2 + $0x8] sm:$0xfc]  ;;  %v5486_v63 = vld [vmem:[#allocation9 + $0x300] ss:$12 sps:$4 sm:$0xff]  }
 0x1b1   :  { %4863 = vmatpush1.bf16.msra.mxu1 %v5426_v60  ;;  %4915 = vmatpush1.bf16.msra.mxu0 %v5427_v61  ;;  %v1451_v58 = vrot.slane %v1299_v57, 2  ;;  %v5484_v60 = vld [vmem:[#allocation9 + $0x304] ss:$12 sps:$4 sm:$0xff]   ;;  %v5487_v1 = vld [vmem:[#allocation9 + $0x308] ss:$12 sps:$4 sm:$0xff]  }
 0x1b2   :  { %4344 = vmatprep.mubr.msk.f32.mxu1 %vm597_vm1, %v608_v3  ;;  %4348 = vmatprep.mubr.msk.f32.mxu0 %vm597_vm1, %v608_v3  ;;  %v5490_v3 = vld [vmem:[#allocation9 + $0x318] ss:$12 sps:$4 sm:$0xff]   ;;  %v5541_v57 = vld [vmem:[#allocation12 + $0xcc] ss:$48 sps:$4 sm:$0xff]  }
 0x1b3   :  { %4865 = vmatprep.subr.bf16.mxu1 %v5428_v2  ;;  %4916 = vmatprep.subr.bf16.mxu0 %v6165_v38  ;;  %v1453_v61 = vsel %vm1447_vm3, %v1451_v58, %v1452_v35  ;;  %v5488_v2 = vld [vmem:[#allocation9 + $0x31c] ss:$12 sps:$4 sm:$0xff]  }
 0x1b4   :  { %v5494_v35 = vld [vmem:[#allocation9 + $0x330] ss:$12 sps:$4 sm:$0xff]  }
 0x1b5   :  { %4867 = vmatpush1.bf16.msra.mxu1 %v5430_v4  ;;  %4918 = vmatpush1.bf16.msra.mxu0 %v5431_v5  ;;  %v5491_v4 = vld [vmem:[#allocation9 + $0x320] ss:$12 sps:$4 sm:$0xff]   ;;  %v5495_v5 = vld [vmem:[#allocation9 + $0x338] ss:$12 sps:$4 sm:$0xff]  }
 0x1b6   :  { %4869 = vmatprep.subr.bf16.mxu1 %v5432_v6  ;;  %4919 = vmatprep.subr.bf16.mxu0 %v6165_v38  ;;  %v5496_v6 = vld [vmem:[#allocation9 + $0x34c] ss:$12 sps:$4 sm:$0xff]  }
 0x1b7   :  { %v5539_v58 = vld [vmem:[#allocation12 + $0xc8] ss:$48 sps:$4 sm:$0xff]  }
 0x1b9   :  { %4871 = vmatpush1.bf16.msra.mxu1 %v5434_v7  ;;  %4921 = vmatpush1.bf16.msra.mxu0 %v5435_v9  ;;  %v5498_v7 = vld [vmem:[#allocation9 + $0x348] ss:$12 sps:$4 sm:$0xff]   ;;  %v5499_v9 = vld [vmem:[#allocation9 + $0x350] ss:$12 sps:$4 sm:$0xff]  }
 0x1ba   :  { %4873 = vmatprep.subr.bf16.mxu1 %v5436_v10  ;;  %4922 = vmatprep.subr.bf16.mxu0 %v6165_v38  ;;  %v5500_v10 = vld [vmem:[#allocation9 + $0x364] ss:$12 sps:$4 sm:$0xff]  }
 0x1bd   :  { %4875 = vmatpush1.bf16.msra.mxu1 %v5438_v11  ;;  %4924 = vmatpush1.bf16.msra.mxu0 %v5439_v12  ;;  %v5502_v11 = vld [vmem:[#allocation9 + $0x360] ss:$12 sps:$4 sm:$0xff]   ;;  %v5503_v12 = vld [vmem:[#allocation9 + $0x368] ss:$12 sps:$4 sm:$0xff]  }
 0x1be   :  { %4877 = vmatprep.subr.bf16.mxu1 %v5440_v13  ;;  %4925 = vmatprep.subr.bf16.mxu0 %v6165_v38  ;;  %v5504_v13 = vld [vmem:[#allocation9 + $0x37c] ss:$12 sps:$4 sm:$0xff]  }
 0x1c1   :  { %4879 = vmatpush1.bf16.msra.mxu1 %v5442_v14  ;;  %4927 = vmatpush1.bf16.msra.mxu0 %v5443_v16  ;;  %v5506_v14 = vld [vmem:[#allocation9 + $0x378] ss:$12 sps:$4 sm:$0xff]   ;;  %v5507_v16 = vld [vmem:[#allocation9 + $0x380] ss:$12 sps:$4 sm:$0xff]  }
 0x1c2   :  { %4881 = vmatprep.subr.bf16.mxu1 %v5444_v17  ;;  %4928 = vmatprep.subr.bf16.mxu0 %v6165_v38  ;;  %v5508_v17 = vld [vmem:[#allocation9 + $0x394] ss:$12 sps:$4 sm:$0xff]  }
 0x1c5   :  { %4883 = vmatpush1.bf16.msra.mxu1 %v5446_v18  ;;  %4930 = vmatpush1.bf16.msra.mxu0 %v5447_v19  ;;  %v5510_v18 = vld [vmem:[#allocation9 + $0x390] ss:$12 sps:$4 sm:$0xff]   ;;  %v5511_v19 = vld [vmem:[#allocation9 + $0x398] ss:$12 sps:$4 sm:$0xff]  }
 0x1c6   :  { %4885 = vmatprep.subr.bf16.mxu1 %v5448_v20  ;;  %4931 = vmatprep.subr.bf16.mxu0 %v6165_v38  ;;  %v5512_v20 = vld [vmem:[#allocation9 + $0x3ac] ss:$12 sps:$4 sm:$0xff]  }
 0x1c9   :  { %4887 = vmatpush1.bf16.msra.mxu1 %v5450_v21  ;;  %4933 = vmatpush1.bf16.msra.mxu0 %v5451_v23  ;;  %v5514_v21 = vld [vmem:[#allocation9 + $0x3a8] ss:$12 sps:$4 sm:$0xff]   ;;  %v5515_v23 = vld [vmem:[#allocation9 + $0x3b0] ss:$12 sps:$4 sm:$0xff]  }
 0x1ca   :  { %4889 = vmatprep.subr.bf16.mxu1 %v5452_v25  ;;  %4934 = vmatprep.subr.bf16.mxu0 %v6165_v38  ;;  %v5516_v25 = vld [vmem:[#allocation9 + $0x3c4] ss:$12 sps:$4 sm:$0xff]  }
 0x1cd   :  { %4891 = vmatpush1.bf16.msra.mxu1 %v5454_v26  ;;  %4936 = vmatpush1.bf16.msra.mxu0 %v5455_v28  ;;  %v5518_v26 = vld [vmem:[#allocation9 + $0x3c0] ss:$12 sps:$4 sm:$0xff]   ;;  %v5519_v28 = vld [vmem:[#allocation9 + $0x3c8] ss:$12 sps:$4 sm:$0xff]  }
 0x1ce   :  { %4893 = vmatprep.subr.bf16.mxu1 %v5456_v29  ;;  %4937 = vmatprep.subr.bf16.mxu0 %v6165_v38  ;;  %v5520_v29 = vld [vmem:[#allocation9 + $0x3dc] ss:$12 sps:$4 sm:$0xff]  }
 0x1d1   :  { %4895 = vmatpush1.bf16.msra.mxu1 %v5458_v31  ;;  %4939 = vmatpush1.bf16.msra.mxu0 %v5459_v33  ;;  %v1298_v31 = vld [vmem:[#allocation2] sm:$0xfc]  ;;  %v5522_v33 = vld [vmem:[#allocation9 + $0x3d8] ss:$12 sps:$4 sm:$0xff]  }
 0x1d2   :  { %4897 = vmatprep.subr.bf16.mxu1 %v5460_v34  ;;  %4940 = vmatprep.subr.bf16.mxu0 %v6165_v38  ;;  %v5523_v34 = vld [vmem:[#allocation9 + $0x3e0] ss:$12 sps:$4 sm:$0xff]  }
 0x1d5   :  { %4899 = vmatpush1.bf16.msra.mxu1 %v5462_v36  ;;  %4942 = vmatpush1.bf16.msra.mxu0 %v5463_v37  ;;  %v1448_v36 = vrot.slane %v1298_v31, 2  ;;  %v1449_v37 = vrot.slane %v6430_v54, 2  ;;  %v5584_v31 = vld [vmem:[#allocation12 + $0x3c0] ss:$48 sps:$4 sm:$0xff]  }
 0x1d6   :  { %4901 = vmatprep.subr.bf16.mxu1 %v5464_v39  ;;  %4943 = vmatprep.subr.bf16.mxu0 %v6165_v38 }
 0x1d7   :  { %v1450_v39 = vsel %vm1447_vm3, %v1448_v36, %v1449_v37  ;;  %v5595_v36 = vld [vmem:[#allocation12 + $0x42c] ss:$48 sps:$4 sm:$0xff]  }
 0x1d9   :  { %4903 = vmatpush1.bf16.msra.mxu1 %v5466_v40  ;;  %4945 = vmatpush1.bf16.msra.mxu0 %v5467_v41  ;;  %v1454_v40 = vrot.slane %v6433_v62, 2  ;;  %v1301_v41 = vld [vmem:[#allocation2 + $0x48] sm:$0x3] }
 0x1da   :  { %4947 = vmatprep.subr.bf16.mxu1 %v5468_v43  ;;  %5002 = vmatprep.subr.bf16.mxu0 %v6165_v38 }
 0x1db   :  { %v1455_v43 = vsel %vm1447_vm3, %v1449_v37, %v1454_v40  ;;  %v5590_v37 = vld [vmem:[#allocation12 + $0x420] ss:$48 sps:$4 sm:$0xff]  }
 0x1dc   :  { %1189 = vmatmul.mubr.f32.vlgmr.msra.gmra.mrb[10].mxu1 %v6426_v46  ;;  %1278 = vmatmul.mubr.f32.vlgmr.msra.gmra.mrb[18].mxu0 %v6426_v46  ;;  %v5478_v46 = vld [vmem:[#allocation9 + $0x2d0] ss:$12 sps:$4 sm:$0xff]  }
 0x1dd   :  { %4345 = vmatprep.mubr.msk.f32.mxu1 %vm597_vm1, %v6438_v15  ;;  %4349 = vmatprep.mubr.msk.f32.mxu0 %vm597_vm1, %v6438_v15  ;;  %v5492_v15 = vld [vmem:[#allocation9 + $0x334] ss:$12 sps:$4 sm:$0xff]  }
 0x1de   :  { %4949 = vmatpush1.bf16.msra.mxu1 %v5470_v45  ;;  %5004 = vmatpush1.bf16.msra.mxu0 %v5471_v47  ;;  %v1458_v45 = vrot.slane %v6436_v8, 2  ;;  %v1300_v47 = vld [vmem:[#allocation2 + $0x40] sm:$0x3] }
 0x1df   :  { %4951 = vmatprep.subr.bf16.mxu1 %v5472_v49  ;;  %5005 = vmatprep.subr.bf16.mxu0 %v6165_v38  ;;  %v1462_v49 = vrot.slane %v1300_v47, 2  ;;  %v5607_v47 = vld [vmem:[#allocation12 + $0x4ec] ss:$48 sps:$4 sm:$0xff]  }
 0x1e0   :  { %1195 = vmatmul.mubr.f32.gmra.mrb[12].mxu1 %v6430_v54  ;;  %1283 = vmatmul.mubr.f32.gmra.mrb[20].mxu0 %v6430_v54  ;;  %v1464_v54 = vrot.slane %v1301_v41, 2  ;;  %v5601_v41 = vld [vmem:[#allocation12 + $0x48c] ss:$48 sps:$4 sm:$0xff]  }
 0x1e1   :  { %4346 = vmatprep.mubr.msk.f32.mxu1 %vm597_vm1, %v6447_v32  ;;  %4350 = vmatprep.mubr.msk.f32.mxu0 %vm597_vm1, %v6447_v32  ;;  %v5482_v32 = vld [vmem:[#allocation9 + $0x2e8] ss:$12 sps:$4 sm:$0xff]  }
 0x1e2   :  { %4953 = vmatpush1.bf16.msra.mxu1 %v5474_v50  ;;  %5007 = vmatpush1.bf16.msra.mxu0 %v5475_v51  ;;  %v5526_v50 = vld [vmem:[#allocation12 + $0x4] ss:$48 sps:$4 sm:$0xff]   ;;  %v5529_v51 = vld [vmem:[#allocation12 + $0xc] ss:$48 sps:$4 sm:$0xff]  }
 0x1e3   :  { %4955 = vmatprep.subr.bf16.mxu1 %v5476_v52  ;;  %5008 = vmatprep.subr.bf16.mxu0 %v6165_v38  ;;  %v5527_v52 = vld [vmem:[#allocation12 + $0x8] ss:$48 sps:$4 sm:$0xff]  }
 0x1e4   :  { %1201 = vmatmul.mubr.f32.gmra.mrb[14].mxu1 %v6433_v62  ;;  %1288 = vmatmul.mubr.f32.gmra.mrb[22].mxu0 %v6433_v62  ;;  %v1459_v62 = vsel %vm1447_vm3, %v1454_v40, %v1458_v45  ;;  %v5598_v40 = vld [vmem:[#allocation12 + $0x484] ss:$48 sps:$4 sm:$0xff]  }
 0x1e5   :  { %4347 = vmatprep.mubr.msk.f32.mxu1 %vm597_vm1, %v6464_v44  ;;  %4351 = vmatprep.mubr.msk.f32.mxu0 %vm597_vm1, %v6464_v44  ;;  %v5535_v44 = vld [vmem:[#allocation12 + $0x6c] ss:$48 sps:$4 sm:$0xff]  }
 0x1e6   :  { %4957 = vmatpush1.bf16.msra.mxu1 %v5478_v46  ;;  %5010 = vmatpush1.bf16.msra.mxu0 %v5479_v53  ;;  %v5532_v46 = vld [vmem:[#allocation12 + $0x64] ss:$48 sps:$4 sm:$0xff]   ;;  %v5530_v53 = vld [vmem:[#allocation12 + $0x60] ss:$48 sps:$4 sm:$0xff]  }
 0x1e7   :  { %4959 = vmatprep.subr.bf16.mxu1 %v5480_v56  ;;  %5011 = vmatprep.subr.bf16.mxu0 %v6165_v38  ;;  %v5538_v56 = vld [vmem:[#allocation12 + $0xc4] ss:$48 sps:$4 sm:$0xff]  }
 0x1e8   :  { %1207 = vmatmul.mubr.f32.gmra.mrb[16].mxu1 %v6436_v8  ;;  %1293 = vmatmul.mubr.f32.gmra.mrb[24].mxu0 %v6436_v8  ;;  %v1463_v8 = vsel %vm1447_vm3, %v1458_v45, %v1462_v49  ;;  %v5599_v45 = vld [vmem:[#allocation12 + $0x488] ss:$48 sps:$4 sm:$0xff]  }
 0x1e9   :  { %4352 = vmatprep.mubr.msk.f32.mxu1 %vm597_vm1, %v1453_v61  ;;  %4356 = vmatprep.mubr.msk.f32.mxu0 %vm597_vm1, %v1453_v61  ;;  %v5545_v61 = vld [vmem:[#allocation12 + $0x128] ss:$48 sps:$4 sm:$0xff]  }
 0x1ea   :  { %4961 = vmatpush1.bf16.msra.mxu1 %v5482_v32  ;;  %5013 = vmatpush1.bf16.msra.mxu0 %v5483_v59  ;;  %v5536_v32 = vld [vmem:[#allocation12 + $0xc0] ss:$48 sps:$4 sm:$0xff]   ;;  %v5544_v59 = vld [vmem:[#allocation12 + $0x124] ss:$48 sps:$4 sm:$0xff]   ;;  %v5605_v49 = vld [vmem:[#allocation12 + $0x4e8] ss:$48 sps:$4 sm:$0xff]  }
 0x1eb   :  { %4963 = vmatprep.subr.bf16.mxu1 %v5484_v60  ;;  %5014 = vmatprep.subr.bf16.mxu0 %v6165_v38  ;;  %v5542_v60 = vld [vmem:[#allocation12 + $0x120] ss:$48 sps:$4 sm:$0xff]  }
 0x1ee   :  { %4965 = vmatpush1.bf16.msra.mxu1 %v5486_v63  ;;  %5016 = vmatpush1.bf16.msra.mxu0 %v5487_v1  ;;  %v5547_v63 = vld [vmem:[#allocation12 + $0x12c] ss:$48 sps:$4 sm:$0xff]   ;;  %v5550_v1 = vld [vmem:[#allocation12 + $0x184] ss:$48 sps:$4 sm:$0xff]  }
 0x1ef   :  { %4967 = vmatprep.subr.bf16.mxu1 %v5488_v2  ;;  %5017 = vmatprep.subr.bf16.mxu0 %v6165_v38  ;;  %v5553_v2 = vld [vmem:[#allocation12 + $0x18c] ss:$48 sps:$4 sm:$0xff]  }
 0x1f2   :  { %4969 = vmatpush1.bf16.msra.mxu1 %v5490_v3  ;;  %5019 = vmatpush1.bf16.msra.mxu0 %v5491_v4  ;;  %v5548_v3 = vld [vmem:[#allocation12 + $0x180] ss:$48 sps:$4 sm:$0xff]   ;;  %v5551_v4 = vld [vmem:[#allocation12 + $0x188] ss:$48 sps:$4 sm:$0xff]  }
 0x1f3   :  { %4971 = vmatprep.subr.bf16.mxu1 %v5492_v15  ;;  %5020 = vmatprep.subr.bf16.mxu0 %v6165_v38  ;;  %v5556_v15 = vld [vmem:[#allocation12 + $0x1e4] ss:$48 sps:$4 sm:$0xff]  }
 0x1f6   :  { %4973 = vmatpush1.bf16.msra.mxu1 %v5494_v35  ;;  %5022 = vmatpush1.bf16.msra.mxu0 %v5495_v5  ;;  %v5559_v35 = vld [vmem:[#allocation12 + $0x1ec] ss:$48 sps:$4 sm:$0xff]   ;;  %v5554_v5 = vld [vmem:[#allocation12 + $0x1e0] ss:$48 sps:$4 sm:$0xff]  }
 0x1f7   :  { %4975 = vmatprep.subr.bf16.mxu1 %v5496_v6  ;;  %5023 = vmatprep.subr.bf16.mxu0 %v6165_v38  ;;  %v5557_v6 = vld [vmem:[#allocation12 + $0x1e8] ss:$48 sps:$4 sm:$0xff]  }
 0x1fa   :  { %4977 = vmatpush1.bf16.msra.mxu1 %v5498_v7  ;;  %5025 = vmatpush1.bf16.msra.mxu0 %v5499_v9  ;;  %v5562_v7 = vld [vmem:[#allocation12 + $0x244] ss:$48 sps:$4 sm:$0xff]   ;;  %v5565_v9 = vld [vmem:[#allocation12 + $0x24c] ss:$48 sps:$4 sm:$0xff]  }
 0x1fb   :  { %4979 = vmatprep.subr.bf16.mxu1 %v5500_v10  ;;  %5026 = vmatprep.subr.bf16.mxu0 %v6165_v38  ;;  %v5560_v10 = vld [vmem:[#allocation12 + $0x240] ss:$48 sps:$4 sm:$0xff]  }
 0x1fe   :  { %4981 = vmatpush1.bf16.msra.mxu1 %v5502_v11  ;;  %5028 = vmatpush1.bf16.msra.mxu0 %v5503_v12  ;;  %v5563_v11 = vld [vmem:[#allocation12 + $0x248] ss:$48 sps:$4 sm:$0xff]   ;;  %v5568_v12 = vld [vmem:[#allocation12 + $0x2a4] ss:$48 sps:$4 sm:$0xff]  }
 0x1ff   :  { %4983 = vmatprep.subr.bf16.mxu1 %v5504_v13  ;;  %5029 = vmatprep.subr.bf16.mxu0 %v6165_v38  ;;  %v5571_v13 = vld [vmem:[#allocation12 + $0x2ac] ss:$48 sps:$4 sm:$0xff]  }
 0x202   :  { %4985 = vmatpush1.bf16.msra.mxu1 %v5506_v14  ;;  %5031 = vmatpush1.bf16.msra.mxu0 %v5507_v16  ;;  %v5566_v14 = vld [vmem:[#allocation12 + $0x2a0] ss:$48 sps:$4 sm:$0xff]   ;;  %v5569_v16 = vld [vmem:[#allocation12 + $0x2a8] ss:$48 sps:$4 sm:$0xff]  }
 0x203   :  { %4987 = vmatprep.subr.bf16.mxu1 %v5508_v17  ;;  %5032 = vmatprep.subr.bf16.mxu0 %v6165_v38  ;;  %v5574_v17 = vld [vmem:[#allocation12 + $0x304] ss:$48 sps:$4 sm:$0xff]  }
 0x206   :  { %4989 = vmatpush1.bf16.msra.mxu1 %v5510_v18  ;;  %5034 = vmatpush1.bf16.msra.mxu0 %v5511_v19  ;;  %v5577_v18 = vld [vmem:[#allocation12 + $0x30c] ss:$48 sps:$4 sm:$0xff]   ;;  %v5572_v19 = vld [vmem:[#allocation12 + $0x300] ss:$48 sps:$4 sm:$0xff]  }
 0x207   :  { %4991 = vmatprep.subr.bf16.mxu1 %v5512_v20  ;;  %5035 = vmatprep.subr.bf16.mxu0 %v6165_v38  ;;  %v5575_v20 = vld [vmem:[#allocation12 + $0x308] ss:$48 sps:$4 sm:$0xff]  }
 0x20a   :  { %4993 = vmatpush1.bf16.msra.mxu1 %v5514_v21  ;;  %5037 = vmatpush1.bf16.msra.mxu0 %v5515_v23  ;;  %v5580_v21 = vld [vmem:[#allocation12 + $0x364] ss:$48 sps:$4 sm:$0xff]   ;;  %v5583_v23 = vld [vmem:[#allocation12 + $0x36c] ss:$48 sps:$4 sm:$0xff]  }
 0x20b   :  { %4995 = vmatprep.subr.bf16.mxu1 %v5516_v25  ;;  %5038 = vmatprep.subr.bf16.mxu0 %v6165_v38  ;;  %v5578_v25 = vld [vmem:[#allocation12 + $0x360] ss:$48 sps:$4 sm:$0xff]  }
 0x20e   :  { %4997 = vmatpush1.bf16.msra.mxu1 %v5518_v26  ;;  %5040 = vmatpush1.bf16.msra.mxu0 %v5519_v28  ;;  %v5581_v26 = vld [vmem:[#allocation12 + $0x368] ss:$48 sps:$4 sm:$0xff]   ;;  %v5586_v28 = vld [vmem:[#allocation12 + $0x3c4] ss:$48 sps:$4 sm:$0xff]  }
 0x20f   :  { %4999 = vmatprep.subr.bf16.mxu1 %v5520_v29  ;;  %5041 = vmatprep.subr.bf16.mxu0 %v6165_v38  ;;  %v5589_v29 = vld [vmem:[#allocation12 + $0x3cc] ss:$48 sps:$4 sm:$0xff]  }
 0x212   :  { %5001 = vmatpush1.bf16.msra.mxu1 %v5522_v33  ;;  %5043 = vmatpush1.bf16.msra.mxu0 %v5523_v34  ;;  %v5587_v33 = vld [vmem:[#allocation12 + $0x3c8] ss:$48 sps:$4 sm:$0xff]   ;;  %v5592_v34 = vld [vmem:[#allocation12 + $0x424] ss:$48 sps:$4 sm:$0xff]  }
 0x213   :  { %3439 = vmatprep.subr.bf16.mxu1 %v5526_v50  ;;  %3545 = vmatprep.subr.bf16.mxu0 %v5529_v51  ;;  %v5608_v50 = vld [vmem:[#allocation12 + $0x540] ss:$48 sps:$4 sm:$0xff]   ;;  %v5611_v51 = vld [vmem:[#allocation12 + $0x548] ss:$48 sps:$4 sm:$0xff]  }
 0x215   :  { %1543 = vmatmul.mubr.f32.vlgmr.msra.gmra.mrb[10].mxu1 %v1450_v39  ;;  %1632 = vmatmul.mubr.f32.vlgmr.msra.gmra.mrb[26].mxu0 %v1450_v39  ;;  %v5593_v39 = vld [vmem:[#allocation12 + $0x428] ss:$48 sps:$4 sm:$0xff]  }
 0x216   :  { %4353 = vmatprep.mubr.msk.f32.mxu1 %vm597_vm1, %v6459_v42  ;;  %4357 = vmatprep.mubr.msk.f32.mxu0 %vm597_vm1, %v6459_v42  ;;  %v1465_v42 = vsel %vm1447_vm3, %v1460_v48, %v1464_v54  ;;  %v5533_v48 = vld [vmem:[#allocation12 + $0x68] ss:$48 sps:$4 sm:$0xff]   ;;  %v5604_v54 = vld [vmem:[#allocation12 + $0x4e4] ss:$48 sps:$4 sm:$0xff]  }
 0x217   :  { %3546 = vmatpush1.bf16.msra.mxu0 %v5527_v52  ;;  %v5619_v52 = vld [vmem:[#allocation12 + $0x5ac] ss:$48 sps:$4 sm:$0xff]  }
 0x218   :  { %3547 = vmatprep.subr.bf16.mxu0 %v5535_v44  ;;  %v5617_v44 = vld [vmem:[#allocation12 + $0x5a8] ss:$48 sps:$4 sm:$0xff]  }
 0x219   :  { %1549 = vmatmul.mubr.f32.gmra.mrb[12].mxu1 %v1455_v43  ;;  %1637 = vmatmul.mubr.f32.gmra.mrb[28].mxu0 %v1455_v43  ;;  %v5596_v43 = vld [vmem:[#allocation12 + $0x480] ss:$48 sps:$4 sm:$0xff]  }
 0x21a   :  { %4354 = vmatprep.mubr.msk.f32.mxu1 %vm597_vm1, %v6474_v55  ;;  %4358 = vmatprep.mubr.msk.f32.mxu0 %vm597_vm1, %v6474_v55  ;;  %v5524_v55 = vld [vmem:[#allocation12] ss:$48 sps:$4 sm:$0xff]  }
 0x21b   :  { %3440 = vmatpush1.bf16.msra.mxu1 %v5524_v55  ;;  %3548 = vmatpush1.bf16.msra.mxu0 %v5533_v48  ;;  %v5616_v55 = vld [vmem:[#allocation12 + $0x5a4] ss:$48 sps:$4 sm:$0xff]   ;;  %v5625_v48 = vld [vmem:[#allocation12 + $0x60c] ss:$48 sps:$4 sm:$0xff]  }
 0x21c   :  { %3441 = vmatprep.subr.bf16.mxu1 %v5532_v46  ;;  %3549 = vmatprep.subr.bf16.mxu0 %v5541_v57  ;;  %v5614_v46 = vld [vmem:[#allocation12 + $0x5a0] ss:$48 sps:$4 sm:$0xff]  }
 0x21d   :  { %1555 = vmatmul.mubr.f32.gmra.mrb[14].mxu1 %v1459_v62  ;;  %1642 = vmatmul.mubr.f32.gmra.mrb[30].mxu0 %v1459_v62  ;;  %v5602_v62 = vld [vmem:[#allocation12 + $0x4e0] ss:$48 sps:$4 sm:$0xff]  }
 0x21e   :  { %4355 = vmatprep.mubr.msk.f32.mxu1 %vm597_vm1, %v1465_v42  ;;  %4359 = vmatprep.mubr.msk.f32.mxu0 %vm597_vm1, %v1465_v42  ;;  %v5610_v42 = vld [vmem:[#allocation12 + $0x544] ss:$48 sps:$4 sm:$0xff]  }
 0x21f   :  { %3442 = vmatpush1.bf16.msra.mxu1 %v5530_v53  ;;  %3550 = vmatpush1.bf16.msra.mxu0 %v5539_v58  ;;  %v5622_v53 = vld [vmem:[#allocation12 + $0x604] ss:$48 sps:$4 sm:$0xff]  }
 0x220   :  { %3443 = vmatprep.subr.bf16.mxu1 %v5538_v56  ;;  %3551 = vmatprep.subr.bf16.mxu0 %v5547_v63 }
 0x221   :  { %1561 = vmatmul.mubr.f32.gmra.mrb[16].mxu1 %v1463_v8  ;;  %1647 = vmatmul.mubr.f32.gmra.mrb[32].mxu0 %v1463_v8  ;;  %v5613_v8 = vld [vmem:[#allocation12 + $0x54c] ss:$48 sps:$4 sm:$0xff]  }
 0x223   :  { %3444 = vmatpush1.bf16.msra.mxu1 %v5536_v32  ;;  %3552 = vmatpush1.bf16.msra.mxu0 %v5545_v61 }
 0x224   :  { %3445 = vmatprep.subr.bf16.mxu1 %v5544_v59  ;;  %3553 = vmatprep.subr.bf16.mxu0 %v5553_v2 }
 0x227   :  { %3446 = vmatpush1.bf16.msra.mxu1 %v5542_v60  ;;  %3554 = vmatpush1.bf16.msra.mxu0 %v5551_v4 }
 0x228   :  { %3447 = vmatprep.subr.bf16.mxu1 %v5550_v1  ;;  %3555 = vmatprep.subr.bf16.mxu0 %v5559_v35 }
 0x22b   :  { %3448 = vmatpush1.bf16.msra.mxu1 %v5548_v3  ;;  %3556 = vmatpush1.bf16.msra.mxu0 %v5557_v6 }
 0x22c   :  { %3449 = vmatprep.subr.bf16.mxu1 %v5556_v15  ;;  %3557 = vmatprep.subr.bf16.mxu0 %v5565_v9 }
 0x22f   :  { %3450 = vmatpush1.bf16.msra.mxu1 %v5554_v5  ;;  %3558 = vmatpush1.bf16.msra.mxu0 %v5563_v11 }
 0x230   :  { %3451 = vmatprep.subr.bf16.mxu1 %v5562_v7  ;;  %3559 = vmatprep.subr.bf16.mxu0 %v5571_v13  ;;  %v1676_v13 = vsub.s32 2, %v6418_v24 }
 0x233   :  { %3452 = vmatpush1.bf16.msra.mxu1 %v5560_v10  ;;  %3560 = vmatpush1.bf16.msra.mxu0 %v5569_v16 }
 0x234   :  { %3453 = vmatprep.subr.bf16.mxu1 %v5568_v12  ;;  %3561 = vmatprep.subr.bf16.mxu0 %v5577_v18  ;;  %v1664_v12 = vld [vmem:[#allocation10] sm:$0x7] }
 0x235   :  { %v1673_v18 = vrot.slane %v1664_v12, %v572_v30 }
 0x237   :  { %3454 = vmatpush1.bf16.msra.mxu1 %v5566_v14  ;;  %3562 = vmatpush1.bf16.msra.mxu0 %v5575_v20  ;;  %v1669_v14 = vrot.slane %v1664_v12, %v568_v27  ;;  %v1677_v20 = vrot.slane %v1664_v12, %v1676_v13  ;;  %v5632_v13 = vld [vmem:[#allocation12 + $0x6c0] ss:$48 sps:$4 sm:$0xff]  }
 0x238   :  { %3455 = vmatprep.subr.bf16.mxu1 %v5574_v17  ;;  %3563 = vmatprep.subr.bf16.mxu0 %v5583_v23 }
 0x23b   :  { %3456 = vmatpush1.bf16.msra.mxu1 %v5572_v19  ;;  %3564 = vmatpush1.bf16.msra.mxu0 %v5581_v26 }
 0x23c   :  { %3457 = vmatprep.subr.bf16.mxu1 %v5580_v21  ;;  %3565 = vmatprep.subr.bf16.mxu0 %v5589_v29 }
 0x23f   :  { %3458 = vmatpush1.bf16.msra.mxu1 %v5578_v25  ;;  %3566 = vmatpush1.bf16.msra.mxu0 %v5587_v33 }
 0x240   :  { %3459 = vmatprep.subr.bf16.mxu1 %v5586_v28  ;;  %3567 = vmatprep.subr.bf16.mxu0 %v5595_v36 }
 0x243   :  { %3460 = vmatpush1.bf16.msra.mxu1 %v5584_v31  ;;  %3568 = vmatpush1.bf16.msra.mxu0 %v5593_v39 }
 0x244   :  { %3461 = vmatprep.subr.bf16.mxu1 %v5592_v34  ;;  %3569 = vmatprep.subr.bf16.mxu0 %v5601_v41 }
 0x247   :  { %3462 = vmatpush1.bf16.msra.mxu1 %v5590_v37  ;;  %3570 = vmatpush1.bf16.msra.mxu0 %v5599_v45 }
 0x248   :  { %3463 = vmatprep.subr.bf16.mxu1 %v5598_v40  ;;  %3571 = vmatprep.subr.bf16.mxu0 %v5607_v47 }
 0x24b   :  { %3464 = vmatpush1.bf16.msra.mxu1 %v5596_v43  ;;  %3572 = vmatpush1.bf16.msra.mxu0 %v5605_v49 }
 0x24c   :  { %3465 = vmatprep.subr.bf16.mxu1 %v5604_v54  ;;  %3573 = vmatprep.subr.bf16.mxu0 %v5613_v8 }
 0x24f   :  { %3466 = vmatpush1.bf16.msra.mxu1 %v5602_v62  ;;  %3574 = vmatpush1.bf16.msra.mxu0 %v5611_v51  ;;  %v5620_v51 = vld [vmem:[#allocation12 + $0x600] ss:$48 sps:$4 sm:$0xff]  }
 0x250   :  { %3467 = vmatprep.subr.bf16.mxu1 %v5610_v42  ;;  %3575 = vmatprep.subr.bf16.mxu0 %v5619_v52 }
 0x253   :  { %3468 = vmatpush1.bf16.msra.mxu1 %v5608_v50  ;;  %3576 = vmatpush1.bf16.msra.mxu0 %v5617_v44  ;;  %v5628_v44 = vld [vmem:[#allocation12 + $0x664] ss:$48 sps:$4 sm:$0xff]  }
 0x254   :  { %3469 = vmatprep.subr.bf16.mxu1 %v5616_v55  ;;  %3598 = vmatprep.subr.bf16.mxu0 %v5625_v48  ;;  %v5623_v55 = vld [vmem:[#allocation12 + $0x608] ss:$48 sps:$4 sm:$0xff]  }
 0x257   :  { %3470 = vmatpush1.bf16.msra.mxu1 %v5614_v46 }
 0x258   :  { %3492 = vmatprep.subr.bf16.mxu1 %v5622_v53  ;;  %v5631_v53 = vld [vmem:[#allocation12 + $0x66c] ss:$48 sps:$4 sm:$0xff]  }
 0x277   :  { %v1096_v56 = vpop.f32.mrb[10].mxu0 }
 0x278   :  { %v1098_v57 = vpop.f32.mrb[11].mxu0 }
 0x27b   :  { %v1101_v32 = vpop.f32.mrb[12].mxu0 }
 0x27c   :  { %v1103_v58 = vpop.f32.mrb[13].mxu0 }
 0x27f   :  { %v1106_v59 = vpop.f32.mrb[14].mxu0 }
 0x280   :  { %v1108_v60 = vpop.f32.mrb[15].mxu0 }
 0x283   :  { %v1111_v61 = vpop.f32.mrb[16].mxu0 }
 0x284   :  { %v1113_v63 = vpop.f32.mrb[17].mxu0 }
 0x2af   :  { %v1279_v1 = vpop.f32.mrb[18].mxu0 }
 0x2b0   :  { %v1280_v2 = vadd.f32 %v1279_v1, %v1096_v56  ;;  %v1281_v3 = vpop.f32.mrb[19].mxu0  ;;  %v5626_v1 = vld [vmem:[#allocation12 + $0x660] ss:$48 sps:$4 sm:$0xff]  }
 0x2b3   :  { %v1284_v4 = vpop.f32.mrb[20].mxu0 }
 0x2b4   :  { %v1285_v15 = vadd.f32 %v1284_v4, %v1101_v32  ;;  %v1286_v35 = vpop.f32.mrb[21].mxu0 }
 0x2b5   :  { %v5634_v35 = vld [vmem:[#allocation12 + $0x6c4] ss:$48 sps:$4 sm:$0xff]  }
 0x2b7   :  { %v1289_v5 = vpop.f32.mrb[22].mxu0 }
 0x2b8   :  { %v1290_v6 = vadd.f32 %v1289_v5, %v1106_v59  ;;  %v1291_v7 = vpop.f32.mrb[23].mxu0  ;;  %v5637_v5 = vld [vmem:[#allocation12 + $0x6cc] ss:$48 sps:$4 sm:$0xff]  }
 0x2bb   :  { %v1294_v9 = vpop.f32.mrb[24].mxu0 }
 0x2bc   :  { %v1295_v10 = vadd.f32 %v1294_v9, %v1111_v61  ;;  %v1296_v11 = vpop.f32.mrb[25].mxu0 }
 0x2e8   :  { %v1544_v16 = vpop.f32.mrb[10].mxu1  ;;  %v1633_v17 = vpop.f32.mrb[26].mxu0 }
 0x2e9   :  { %v1654_v19 = vadd.f32 %v1633_v17, %v1280_v2  ;;  %v1546_v21 = vpop.f32.mrb[11].mxu1  ;;  %v1635_v23 = vpop.f32.mrb[27].mxu0  ;;  %v1681_v25 = vadd.f32 %v1669_v14, %v1544_v16  ;;  %v5629_v2 = vld [vmem:[#allocation12 + $0x668] ss:$48 sps:$4 sm:$0xff]   ;;  %v5640_v17 = vld [vmem:[#allocation12 + $0x724] ss:$48 sps:$4 sm:$0xff]  }
 0x2ea   :  { %v1682_v26 = vadd.f32 %v1673_v18, %v1546_v21  ;;  %v5646_v21 = vld [vmem:[#allocation12 + $0x784] ss:$48 sps:$4 sm:$0xff]   ;;  %v5649_v23 = vld [vmem:[#allocation12 + $0x78c] ss:$48 sps:$4 sm:$0xff]  }
 0x2eb   :  { %v1683_v31 = vadd.f32 %v1677_v20, %v1654_v19  ;;  %v1693_v27 = vmax.f32 %v1681_v25, 0.0  ;;  %v5638_v19 = vld [vmem:[#allocation12 + $0x720] ss:$48 sps:$4 sm:$0xff]   ;;  %v6166_v25 = vmov 0  }
 0x2ec   :  { %v1550_v28 = vpop.f32.mrb[12].mxu1  ;;  %v1638_v29 = vpop.f32.mrb[28].mxu0  ;;  %v1694_v43 = vmax.f32 %v1682_v26, 0.0  ;;  %v5644_v26 = vld [vmem:[#allocation12 + $0x780] ss:$48 sps:$4 sm:$0xff]  }
 0x2ed   :  { %v1684_v33 = vadd.f32 %v1669_v14, %v1550_v28  ;;  %v1657_v34 = vadd.f32 %v1638_v29, %v1285_v15  ;;  %v1552_v36 = vpop.f32.mrb[13].mxu1  ;;  %v1640_v37 = vpop.f32.mrb[29].mxu0  ;;  %v1695_v54 = vmax.f32 %v1683_v31, 0.0  ;;  %v5647_v28 = vld [vmem:[#allocation12 + $0x788] ss:$48 sps:$4 sm:$0xff]  }
 0x2ee   :  { %v1685_v39 = vadd.f32 %v1673_v18, %v1552_v36  ;;  %v5652_v29 = vld [vmem:[#allocation12 + $0x7e4] ss:$48 sps:$4 sm:$0xff]   ;;  %v5655_v31 = vld [vmem:[#allocation12 + $0x7ec] ss:$48 sps:$4 sm:$0xff]  }
 0x2ef   :  { %v1696_v40 = vmax.f32 %v1684_v33, 0.0  ;;  %v1686_v41 = vadd.f32 %v1677_v20, %v1657_v34  ;;  %v5650_v33 = vld [vmem:[#allocation12 + $0x7e0] ss:$48 sps:$4 sm:$0xff]   ;;  %v5653_v34 = vld [vmem:[#allocation12 + $0x7e8] ss:$48 sps:$4 sm:$0xff]  }
 0x2f0   :  { %v1697_v24 = vmax.f32 %v1685_v39, 0.0  ;;  %v1556_v30 = vpop.f32.mrb[14].mxu1  ;;  %v1643_v45 = vpop.f32.mrb[30].mxu0  ;;  %v5658_v36 = vld [vmem:[#allocation12 + $0x844] ss:$48 sps:$4 sm:$0xff]  }
 0x2f1   :  { %v6560_v47 = vpack.c.bf16 %v1696_v40, %v1693_v27  ;;  %v1698_v62 = vmax.f32 %v1686_v41, 0.0  ;;  %v1660_v49 = vadd.f32 %v1643_v45, %v1290_v6  ;;  %v1558_v42 = vpop.f32.mrb[15].mxu1  ;;  %v1645_v8 = vpop.f32.mrb[31].mxu0  ;;  %v1687_v46 = vadd.f32 %v1669_v14, %v1556_v30  ;;  %v5661_v37 = vld [vmem:[#allocation12 + $0x84c] ss:$48 sps:$4 sm:$0xff]  }
 0x2f2   :  { %v6562_v50 = vpack.c.bf16 %v1697_v24, %v1694_v43  ;;  %v1688_v48 = vadd.f32 %v1673_v18, %v1558_v42  ;;  %v5656_v39 = vld [vmem:[#allocation12 + $0x840] ss:$48 sps:$4 sm:$0xff]   ;;  %v5659_v27 = vld [vmem:[#allocation12 + $0x848] ss:$48 sps:$4 sm:$0xff]   ;;  %v5664_v40 = vld [vmem:[#allocation12 + $0x8a4] ss:$48 sps:$4 sm:$0xff]  }
 0x2f3   :  { %v6564_v52 = vpack.c.bf16 %v1698_v62, %v1695_v54  ;;  %v1689_v32 = vadd.f32 %v1677_v20, %v1660_v49  ;;  %v1699_v3 = vmax.f32 %v1687_v46, 0.0  ;;  %v5667_v41 = vld [vmem:[#allocation12 + $0x8ac] ss:$48 sps:$4 sm:$0xff]   ;;  %v5662_v43 = vld [vmem:[#allocation12 + $0x8a0] ss:$48 sps:$4 sm:$0xff]  }
 0x2f4   :  { %v1562_v56 = vpop.f32.mrb[16].mxu1  ;;  %v1648_v57 = vpop.f32.mrb[32].mxu0  ;;  %3471 = vmatprep.mubr.bf16.mxu1 %v6562_v50  ;;  %3577 = vmatprep.mubr.bf16.mxu0 %v6562_v50  ;;  %v1700_v6 = vmax.f32 %v1688_v48, 0.0  ;;  %v5665_v24 = vld [vmem:[#allocation12 + $0x8a8] ss:$48 sps:$4 sm:$0xff]  }
 0x2f5   :  { %v1690_v58 = vadd.f32 %v1669_v14, %v1562_v56  ;;  %v1663_v59 = vadd.f32 %v1648_v57, %v1295_v10  ;;  %v1564_v60 = vpop.f32.mrb[17].mxu1  ;;  %v1650_v61 = vpop.f32.mrb[33].mxu0  ;;  %3472 = vmatmul.mubr.bf16.vlgmr.msra.gmra.mrb[20].mxu1 %v6560_v47  ;;  %3578 = vmatmul.mubr.bf16.vlgmr.msra.gmra.mrb[36].mxu0 %v6560_v47  ;;  %v1701_v9 = vmax.f32 %v1689_v32, 0.0  ;;  %v5635_v14 = vld [vmem:[#allocation12 + $0x6c8] ss:$48 sps:$4 sm:$0xff]  }
 0x2f6   :  { %v1691_v63 = vadd.f32 %v1673_v18, %v1564_v60  ;;  %3493 = vmatpush1.bf16.msra.mxu1 %v5620_v51  ;;  %3599 = vmatpush1.bf16.msra.mxu0 %v5623_v55  ;;  %v5643_v18 = vld [vmem:[#allocation12 + $0x72c] ss:$48 sps:$4 sm:$0xff]   ;;  %v5670_v30 = vld [vmem:[#allocation12 + $0x14] ss:$48 sps:$4 sm:$0xff]   ;;  %v5668_v54 = vld [vmem:[#allocation12 + $0x10] ss:$48 sps:$4 sm:$0xff]  }
 0x2f7   :  { %v1702_v4 = vmax.f32 %v1690_v58, 0.0  ;;  %v1692_v15 = vadd.f32 %v1677_v20, %v1663_v59  ;;  %3494 = vmatprep.subr.bf16.mxu1 %v5628_v44  ;;  %3600 = vmatprep.subr.bf16.mxu0 %v5631_v53  ;;  %v5641_v20 = vld [vmem:[#allocation12 + $0x728] ss:$48 sps:$4 sm:$0xff]   ;;  %v5673_v45 = vld [vmem:[#allocation12 + $0x1c] ss:$48 sps:$4 sm:$0xff]  }
 0x2f8   :  { %v1703_v7 = vmax.f32 %v1691_v63, 0.0  ;;  %v5671_v62 = vld [vmem:[#allocation12 + $0x18] ss:$48 sps:$4 sm:$0xff]   ;;  %v5676_v49 = vld [vmem:[#allocation12 + $0x74] ss:$48 sps:$4 sm:$0xff]  }
 0x2f9   :  { %v6570_v10 = vpack.c.bf16 %v1702_v4, %v1699_v3  ;;  %v1704_v11 = vmax.f32 %v1692_v15, 0.0  ;;  %v5679_v42 = vld [vmem:[#allocation12 + $0x7c] ss:$48 sps:$4 sm:$0xff]   ;;  %v5674_v8 = vld [vmem:[#allocation12 + $0x70] ss:$48 sps:$4 sm:$0xff]  }
 0x2fa   :  { %v6572_v12 = vpack.c.bf16 %v1703_v7, %v1700_v6  ;;  %3495 = vmatpush1.bf16.msra.mxu1 %v5626_v1  ;;  %3601 = vmatpush1.bf16.msra.mxu0 %v5629_v2  ;;  %v5677_v51 = vld [vmem:[#allocation12 + $0x78] ss:$48 sps:$4 sm:$0xff]   ;;  %v5682_v55 = vld [vmem:[#allocation12 + $0xd4] ss:$48 sps:$4 sm:$0xff]   ;;  %v5685_v46 = vld [vmem:[#allocation12 + $0xdc] ss:$48 sps:$4 sm:$0xff]  }
 0x2fb   :  { %v6574_v16 = vpack.c.bf16 %v1704_v11, %v1701_v9  ;;  %3496 = vmatprep.subr.bf16.mxu1 %v5634_v35  ;;  %3602 = vmatprep.subr.bf16.mxu0 %v5637_v5  ;;  %v5680_v44 = vld [vmem:[#allocation12 + $0xd0] ss:$48 sps:$4 sm:$0xff]   ;;  %v5683_v53 = vld [vmem:[#allocation12 + $0xd8] ss:$48 sps:$4 sm:$0xff]   ;;  %v5688_v48 = vld [vmem:[#allocation12 + $0x134] ss:$48 sps:$4 sm:$0xff]  }
 0x2fc   :  { %3481 = vmatprep.mubr.bf16.mxu1 %v6572_v12  ;;  %3587 = vmatprep.mubr.bf16.mxu0 %v6572_v12  ;;  %v5691_v56 = vld [vmem:[#allocation12 + $0x13c] ss:$48 sps:$4 sm:$0xff]   ;;  %v5686_v57 = vld [vmem:[#allocation12 + $0x130] ss:$48 sps:$4 sm:$0xff]   ;;  %v5689_v32 = vld [vmem:[#allocation12 + $0x138] ss:$48 sps:$4 sm:$0xff]  }
 0x2fd   :  { %3482 = vmatmul.mubr.bf16.gmra.mrb[24].mxu1 %v6570_v10  ;;  %3588 = vmatmul.mubr.bf16.gmra.mrb[40].mxu0 %v6570_v10  ;;  %v5694_v58 = vld [vmem:[#allocation12 + $0x194] ss:$48 sps:$4 sm:$0xff]   ;;  %v5697_v59 = vld [vmem:[#allocation12 + $0x19c] ss:$48 sps:$4 sm:$0xff]   ;;  %v5692_v60 = vld [vmem:[#allocation12 + $0x190] ss:$48 sps:$4 sm:$0xff]  }
 0x2fe   :  { %3497 = vmatpush1.bf16.msra.mxu1 %v5632_v13  ;;  %3603 = vmatpush1.bf16.msra.mxu0 %v5635_v14  ;;  %v5695_v61 = vld [vmem:[#allocation12 + $0x198] ss:$48 sps:$4 sm:$0xff]   ;;  %v5700_v63 = vld [vmem:[#allocation12 + $0x1f4] ss:$48 sps:$4 sm:$0xff]   ;;  %v5703_v1 = vld [vmem:[#allocation12 + $0x1fc] ss:$48 sps:$4 sm:$0xff]  }
 0x2ff   :  { %3498 = vmatprep.subr.bf16.mxu1 %v5640_v17  ;;  %3604 = vmatprep.subr.bf16.mxu0 %v5643_v18  ;;  %v5698_v2 = vld [vmem:[#allocation12 + $0x1f0] ss:$48 sps:$4 sm:$0xff]   ;;  %v5701_v3 = vld [vmem:[#allocation12 + $0x1f8] ss:$48 sps:$4 sm:$0xff]   ;;  %v5706_v4 = vld [vmem:[#allocation12 + $0x254] ss:$48 sps:$4 sm:$0xff]  }
 0x300   :  { %3524 = vmatprep.mubr.bf16.mxu1 %v6166_v25  ;;  %3630 = vmatprep.mubr.bf16.mxu0 %v6166_v25  ;;  %v5709_v15 = vld [vmem:[#allocation12 + $0x25c] ss:$48 sps:$4 sm:$0xff]   ;;  %v5704_v35 = vld [vmem:[#allocation12 + $0x250] ss:$48 sps:$4 sm:$0xff]   ;;  %v5707_v5 = vld [vmem:[#allocation12 + $0x258] ss:$48 sps:$4 sm:$0xff]  }
 0x301   :  { %v5712_v6 = vld [vmem:[#allocation12 + $0x2b4] ss:$48 sps:$4 sm:$0xff]   ;;  %v5715_v7 = vld [vmem:[#allocation12 + $0x2bc] ss:$48 sps:$4 sm:$0xff]   ;;  %v5710_v9 = vld [vmem:[#allocation12 + $0x2b0] ss:$48 sps:$4 sm:$0xff]  }
 0x302   :  { %3499 = vmatpush1.bf16.msra.mxu1 %v5638_v19  ;;  %3605 = vmatpush1.bf16.msra.mxu0 %v5641_v20  ;;  %v5713_v11 = vld [vmem:[#allocation12 + $0x2b8] ss:$48 sps:$4 sm:$0xff]   ;;  %v5718_v13 = vld [vmem:[#allocation12 + $0x314] ss:$48 sps:$4 sm:$0xff]   ;;  %v5721_v14 = vld [vmem:[#allocation12 + $0x31c] ss:$48 sps:$4 sm:$0xff]  }
 0x303   :  { %3500 = vmatprep.subr.bf16.mxu1 %v5646_v21  ;;  %3606 = vmatprep.subr.bf16.mxu0 %v5649_v23  ;;  %v5716_v17 = vld [vmem:[#allocation12 + $0x310] ss:$48 sps:$4 sm:$0xff]   ;;  %v5719_v18 = vld [vmem:[#allocation12 + $0x318] ss:$48 sps:$4 sm:$0xff]   ;;  %v5724_v19 = vld [vmem:[#allocation12 + $0x374] ss:$48 sps:$4 sm:$0xff]  }
 0x304   :  { %v5727_v20 = vld [vmem:[#allocation12 + $0x37c] ss:$48 sps:$4 sm:$0xff]   ;;  %v5722_v21 = vld [vmem:[#allocation12 + $0x370] ss:$48 sps:$4 sm:$0xff]   ;;  %v5725_v23 = vld [vmem:[#allocation12 + $0x378] ss:$48 sps:$4 sm:$0xff]  }
 0x306   :  { %3501 = vmatpush1.bf16.msra.mxu1 %v5644_v26  ;;  %3607 = vmatpush1.bf16.msra.mxu0 %v5647_v28  ;;  %v5730_v26 = vld [vmem:[#allocation12 + $0x3d4] ss:$48 sps:$4 sm:$0xff]   ;;  %v5733_v28 = vld [vmem:[#allocation12 + $0x3dc] ss:$48 sps:$4 sm:$0xff]  }
 0x307   :  { %3502 = vmatprep.subr.bf16.mxu1 %v5652_v29  ;;  %3608 = vmatprep.subr.bf16.mxu0 %v5655_v31  ;;  %v5728_v29 = vld [vmem:[#allocation12 + $0x3d0] ss:$48 sps:$4 sm:$0xff]   ;;  %v5731_v31 = vld [vmem:[#allocation12 + $0x3d8] ss:$48 sps:$4 sm:$0xff]  }
 0x30a   :  { %3503 = vmatpush1.bf16.msra.mxu1 %v5650_v33  ;;  %3609 = vmatpush1.bf16.msra.mxu0 %v5653_v34  ;;  %v5736_v33 = vld [vmem:[#allocation12 + $0x434] ss:$48 sps:$4 sm:$0xff]   ;;  %v5739_v34 = vld [vmem:[#allocation12 + $0x43c] ss:$48 sps:$4 sm:$0xff]  }
 0x30b   :  { %3504 = vmatprep.subr.bf16.mxu1 %v5658_v36  ;;  %3610 = vmatprep.subr.bf16.mxu0 %v5661_v37  ;;  %v5734_v36 = vld [vmem:[#allocation12 + $0x430] ss:$48 sps:$4 sm:$0xff]   ;;  %v5737_v37 = vld [vmem:[#allocation12 + $0x438] ss:$48 sps:$4 sm:$0xff]  }
 0x30e   :  { %3505 = vmatpush1.bf16.msra.mxu1 %v5656_v39  ;;  %3611 = vmatpush1.bf16.msra.mxu0 %v5659_v27  ;;  %v5742_v39 = vld [vmem:[#allocation12 + $0x494] ss:$48 sps:$4 sm:$0xff]   ;;  %v5745_v27 = vld [vmem:[#allocation12 + $0x49c] ss:$48 sps:$4 sm:$0xff]  }
 0x30f   :  { %3506 = vmatprep.subr.bf16.mxu1 %v5664_v40  ;;  %3612 = vmatprep.subr.bf16.mxu0 %v5667_v41  ;;  %v5740_v40 = vld [vmem:[#allocation12 + $0x490] ss:$48 sps:$4 sm:$0xff]   ;;  %v5743_v41 = vld [vmem:[#allocation12 + $0x498] ss:$48 sps:$4 sm:$0xff]  }
 0x312   :  { %3507 = vmatpush1.bf16.msra.mxu1 %v5662_v43  ;;  %3613 = vmatpush1.bf16.msra.mxu0 %v5665_v24  ;;  %v5748_v43 = vld [vmem:[#allocation12 + $0x4f4] ss:$48 sps:$4 sm:$0xff]   ;;  %v5751_v24 = vld [vmem:[#allocation12 + $0x4fc] ss:$48 sps:$4 sm:$0xff]  }
 0x313   :  { %3651 = vmatprep.subr.bf16.mxu1 %v5670_v30  ;;  %3757 = vmatprep.subr.bf16.mxu0 %v5673_v45  ;;  %v5746_v30 = vld [vmem:[#allocation12 + $0x4f0] ss:$48 sps:$4 sm:$0xff]   ;;  %v5749_v45 = vld [vmem:[#allocation12 + $0x4f8] ss:$48 sps:$4 sm:$0xff]  }
 0x315   :  { %3525 = vmatmul.mubr.bf16.vlgmr.msra.gmra.mrb[20].mxu1 %v6564_v52  ;;  %3631 = vmatmul.mubr.bf16.vlgmr.msra.gmra.mrb[36].mxu0 %v6564_v52 }
 0x316   :  { %3652 = vmatpush1.bf16.msra.mxu1 %v5668_v54  ;;  %3758 = vmatpush1.bf16.msra.mxu0 %v5671_v62  ;;  %v5754_v54 = vld [vmem:[#allocation12 + $0x554] ss:$48 sps:$4 sm:$0xff]   ;;  %v5757_v62 = vld [vmem:[#allocation12 + $0x55c] ss:$48 sps:$4 sm:$0xff]  }
 0x317   :  { %3653 = vmatprep.subr.bf16.mxu1 %v5676_v49  ;;  %3759 = vmatprep.subr.bf16.mxu0 %v5679_v42  ;;  %v5752_v49 = vld [vmem:[#allocation12 + $0x550] ss:$48 sps:$4 sm:$0xff]   ;;  %v5755_v42 = vld [vmem:[#allocation12 + $0x558] ss:$48 sps:$4 sm:$0xff]  }
 0x318   :  { %3534 = vmatprep.mubr.bf16.mxu1 %v6166_v25  ;;  %3640 = vmatprep.mubr.bf16.mxu0 %v6166_v25 }
 0x31a   :  { %3654 = vmatpush1.bf16.msra.mxu1 %v5674_v8  ;;  %3760 = vmatpush1.bf16.msra.mxu0 %v5677_v51  ;;  %v5760_v8 = vld [vmem:[#allocation12 + $0x5b4] ss:$48 sps:$4 sm:$0xff]   ;;  %v5763_v51 = vld [vmem:[#allocation12 + $0x5bc] ss:$48 sps:$4 sm:$0xff]  }
 0x31b   :  { %3655 = vmatprep.subr.bf16.mxu1 %v5682_v55  ;;  %3761 = vmatprep.subr.bf16.mxu0 %v5685_v46  ;;  %v5758_v55 = vld [vmem:[#allocation12 + $0x5b0] ss:$48 sps:$4 sm:$0xff]   ;;  %v5761_v46 = vld [vmem:[#allocation12 + $0x5b8] ss:$48 sps:$4 sm:$0xff]  }
 0x31d   :  { %3535 = vmatmul.mubr.bf16.gmra.mrb[24].mxu1 %v6574_v16  ;;  %3641 = vmatmul.mubr.bf16.gmra.mrb[40].mxu0 %v6574_v16 }
 0x31e   :  { %3656 = vmatpush1.bf16.msra.mxu1 %v5680_v44  ;;  %3683 = vmatprep.mubr.bf16.mxu1 %v6562_v50  ;;  %v5766_v44 = vld [vmem:[#allocation12 + $0x614] ss:$48 sps:$4 sm:$0xff]  }
 0x31f   :  { %3762 = vmatpush1.bf16.msra.mxu0 %v5683_v53  ;;  %3789 = vmatprep.mubr.bf16.mxu0 %v6562_v50  ;;  %v5769_v53 = vld [vmem:[#allocation12 + $0x61c] ss:$48 sps:$4 sm:$0xff]  }
 0x320   :  { %3657 = vmatprep.subr.bf16.mxu1 %v5688_v48  ;;  %3763 = vmatprep.subr.bf16.mxu0 %v5691_v56  ;;  %v5764_v48 = vld [vmem:[#allocation12 + $0x610] ss:$48 sps:$4 sm:$0xff]   ;;  %v5767_v56 = vld [vmem:[#allocation12 + $0x618] ss:$48 sps:$4 sm:$0xff]  }
 0x322   :  { %3658 = vmatpush1.bf16.msra.mxu1 %v5686_v57  ;;  %v5772_v57 = vld [vmem:[#allocation12 + $0x674] ss:$48 sps:$4 sm:$0xff]  }
 0x323   :  { %3764 = vmatpush1.bf16.msra.mxu0 %v5689_v32  ;;  %3659 = vmatprep.subr.bf16.mxu1 %v5694_v58  ;;  %v5775_v32 = vld [vmem:[#allocation12 + $0x67c] ss:$48 sps:$4 sm:$0xff]   ;;  %v5770_v58 = vld [vmem:[#allocation12 + $0x670] ss:$48 sps:$4 sm:$0xff]  }
 0x324   :  { %3765 = vmatprep.subr.bf16.mxu0 %v5697_v59  ;;  %v5773_v59 = vld [vmem:[#allocation12 + $0x678] ss:$48 sps:$4 sm:$0xff]  }
 0x326   :  { %3660 = vmatpush1.bf16.msra.mxu1 %v5692_v60  ;;  %v5778_v60 = vld [vmem:[#allocation12 + $0x6d4] ss:$48 sps:$4 sm:$0xff]  }
 0x327   :  { %3766 = vmatpush1.bf16.msra.mxu0 %v5695_v61  ;;  %3661 = vmatprep.subr.bf16.mxu1 %v5700_v63  ;;  %v5781_v61 = vld [vmem:[#allocation12 + $0x6dc] ss:$48 sps:$4 sm:$0xff]   ;;  %v5776_v63 = vld [vmem:[#allocation12 + $0x6d0] ss:$48 sps:$4 sm:$0xff]  }
 0x328   :  { %3767 = vmatprep.subr.bf16.mxu0 %v5703_v1  ;;  %v5779_v1 = vld [vmem:[#allocation12 + $0x6d8] ss:$48 sps:$4 sm:$0xff]  }
 0x32a   :  { %3662 = vmatpush1.bf16.msra.mxu1 %v5698_v2  ;;  %v5784_v2 = vld [vmem:[#allocation12 + $0x734] ss:$48 sps:$4 sm:$0xff]  }
 0x32b   :  { %3768 = vmatpush1.bf16.msra.mxu0 %v5701_v3  ;;  %3663 = vmatprep.subr.bf16.mxu1 %v5706_v4  ;;  %v5787_v3 = vld [vmem:[#allocation12 + $0x73c] ss:$48 sps:$4 sm:$0xff]   ;;  %v5782_v4 = vld [vmem:[#allocation12 + $0x730] ss:$48 sps:$4 sm:$0xff]  }
 0x32c   :  { %3769 = vmatprep.subr.bf16.mxu0 %v5709_v15  ;;  %v5785_v15 = vld [vmem:[#allocation12 + $0x738] ss:$48 sps:$4 sm:$0xff]  }
 0x32e   :  { %3664 = vmatpush1.bf16.msra.mxu1 %v5704_v35  ;;  %v5790_v35 = vld [vmem:[#allocation12 + $0x794] ss:$48 sps:$4 sm:$0xff]  }
 0x32f   :  { %3770 = vmatpush1.bf16.msra.mxu0 %v5707_v5  ;;  %3665 = vmatprep.subr.bf16.mxu1 %v5712_v6  ;;  %v5793_v5 = vld [vmem:[#allocation12 + $0x79c] ss:$48 sps:$4 sm:$0xff]   ;;  %v5788_v6 = vld [vmem:[#allocation12 + $0x790] ss:$48 sps:$4 sm:$0xff]  }
 0x330   :  { %3771 = vmatprep.subr.bf16.mxu0 %v5715_v7  ;;  %v5791_v7 = vld [vmem:[#allocation12 + $0x798] ss:$48 sps:$4 sm:$0xff]  }
 0x332   :  { %3666 = vmatpush1.bf16.msra.mxu1 %v5710_v9  ;;  %v5796_v9 = vld [vmem:[#allocation12 + $0x7f4] ss:$48 sps:$4 sm:$0xff]  }
 0x333   :  { %3772 = vmatpush1.bf16.msra.mxu0 %v5713_v11  ;;  %3667 = vmatprep.subr.bf16.mxu1 %v5718_v13  ;;  %v5799_v11 = vld [vmem:[#allocation12 + $0x7fc] ss:$48 sps:$4 sm:$0xff]   ;;  %v5794_v13 = vld [vmem:[#allocation12 + $0x7f0] ss:$48 sps:$4 sm:$0xff]  }
 0x334   :  { %3773 = vmatprep.subr.bf16.mxu0 %v5721_v14  ;;  %v5797_v14 = vld [vmem:[#allocation12 + $0x7f8] ss:$48 sps:$4 sm:$0xff]  }
 0x336   :  { %3668 = vmatpush1.bf16.msra.mxu1 %v5716_v17  ;;  %v5802_v17 = vld [vmem:[#allocation12 + $0x854] ss:$48 sps:$4 sm:$0xff]  }
 0x337   :  { %3774 = vmatpush1.bf16.msra.mxu0 %v5719_v18  ;;  %3669 = vmatprep.subr.bf16.mxu1 %v5724_v19  ;;  %v5805_v18 = vld [vmem:[#allocation12 + $0x85c] ss:$48 sps:$4 sm:$0xff]   ;;  %v5800_v19 = vld [vmem:[#allocation12 + $0x850] ss:$48 sps:$4 sm:$0xff]  }
 0x338   :  { %3775 = vmatprep.subr.bf16.mxu0 %v5727_v20  ;;  %v5803_v20 = vld [vmem:[#allocation12 + $0x858] ss:$48 sps:$4 sm:$0xff]  }
 0x33a   :  { %3670 = vmatpush1.bf16.msra.mxu1 %v5722_v21  ;;  %v5808_v21 = vld [vmem:[#allocation12 + $0x8b4] ss:$48 sps:$4 sm:$0xff]  }
 0x33b   :  { %3776 = vmatpush1.bf16.msra.mxu0 %v5725_v23  ;;  %3671 = vmatprep.subr.bf16.mxu1 %v5730_v26  ;;  %v5811_v23 = vld [vmem:[#allocation12 + $0x8bc] ss:$48 sps:$4 sm:$0xff]   ;;  %v5806_v26 = vld [vmem:[#allocation12 + $0x8b0] ss:$48 sps:$4 sm:$0xff]  }
 0x33c   :  { %3777 = vmatprep.subr.bf16.mxu0 %v5733_v28  ;;  %v5809_v28 = vld [vmem:[#allocation12 + $0x8b8] ss:$48 sps:$4 sm:$0xff]  }
 0x33e   :  { %3672 = vmatpush1.bf16.msra.mxu1 %v5728_v29  ;;  %v5814_v29 = vld [vmem:[#allocation12 + $0x24] ss:$48 sps:$4 sm:$0xff]  }
 0x33f   :  { %3778 = vmatpush1.bf16.msra.mxu0 %v5731_v31  ;;  %3673 = vmatprep.subr.bf16.mxu1 %v5736_v33  ;;  %v5817_v31 = vld [vmem:[#allocation12 + $0x2c] ss:$48 sps:$4 sm:$0xff]   ;;  %v5812_v33 = vld [vmem:[#allocation12 + $0x20] ss:$48 sps:$4 sm:$0xff]  }
 0x340   :  { %3779 = vmatprep.subr.bf16.mxu0 %v5739_v34  ;;  %v5815_v34 = vld [vmem:[#allocation12 + $0x28] ss:$48 sps:$4 sm:$0xff]  }
 0x342   :  { %3674 = vmatpush1.bf16.msra.mxu1 %v5734_v36  ;;  %v5820_v36 = vld [vmem:[#allocation12 + $0x84] ss:$48 sps:$4 sm:$0xff]  }
 0x343   :  { %3780 = vmatpush1.bf16.msra.mxu0 %v5737_v37  ;;  %3675 = vmatprep.subr.bf16.mxu1 %v5742_v39  ;;  %v5823_v37 = vld [vmem:[#allocation12 + $0x8c] ss:$48 sps:$4 sm:$0xff]   ;;  %v5818_v39 = vld [vmem:[#allocation12 + $0x80] ss:$48 sps:$4 sm:$0xff]  }
 0x344   :  { %3781 = vmatprep.subr.bf16.mxu0 %v5745_v27  ;;  %v5821_v27 = vld [vmem:[#allocation12 + $0x88] ss:$48 sps:$4 sm:$0xff]  }
 0x346   :  { %3676 = vmatpush1.bf16.msra.mxu1 %v5740_v40  ;;  %v5826_v40 = vld [vmem:[#allocation12 + $0xe4] ss:$48 sps:$4 sm:$0xff]  }
 0x347   :  { %3782 = vmatpush1.bf16.msra.mxu0 %v5743_v41  ;;  %3677 = vmatprep.subr.bf16.mxu1 %v5748_v43  ;;  %v5829_v41 = vld [vmem:[#allocation12 + $0xec] ss:$48 sps:$4 sm:$0xff]   ;;  %v5824_v43 = vld [vmem:[#allocation12 + $0xe0] ss:$48 sps:$4 sm:$0xff]  }
 0x348   :  { %3783 = vmatprep.subr.bf16.mxu0 %v5751_v24  ;;  %v5827_v24 = vld [vmem:[#allocation12 + $0xe8] ss:$48 sps:$4 sm:$0xff]  }
 0x34a   :  { %3678 = vmatpush1.bf16.msra.mxu1 %v5746_v30  ;;  %v5832_v30 = vld [vmem:[#allocation12 + $0x144] ss:$48 sps:$4 sm:$0xff]  }
 0x34b   :  { %3784 = vmatpush1.bf16.msra.mxu0 %v5749_v45  ;;  %3679 = vmatprep.subr.bf16.mxu1 %v5754_v54  ;;  %v5835_v45 = vld [vmem:[#allocation12 + $0x14c] ss:$48 sps:$4 sm:$0xff]   ;;  %v5830_v54 = vld [vmem:[#allocation12 + $0x140] ss:$48 sps:$4 sm:$0xff]  }
 0x34c   :  { %3785 = vmatprep.subr.bf16.mxu0 %v5757_v62  ;;  %v5833_v62 = vld [vmem:[#allocation12 + $0x148] ss:$48 sps:$4 sm:$0xff]  }
 0x34e   :  { %3680 = vmatpush1.bf16.msra.mxu1 %v5752_v49  ;;  %v5838_v49 = vld [vmem:[#allocation12 + $0x1a4] ss:$48 sps:$4 sm:$0xff]  }
 0x34f   :  { %3786 = vmatpush1.bf16.msra.mxu0 %v5755_v42  ;;  %3681 = vmatprep.subr.bf16.mxu1 %v5760_v8  ;;  %v5841_v42 = vld [vmem:[#allocation12 + $0x1ac] ss:$48 sps:$4 sm:$0xff]   ;;  %v5836_v8 = vld [vmem:[#allocation12 + $0x1a0] ss:$48 sps:$4 sm:$0xff]  }
 0x350   :  { %3787 = vmatprep.subr.bf16.mxu0 %v5763_v51  ;;  %v5839_v51 = vld [vmem:[#allocation12 + $0x1a8] ss:$48 sps:$4 sm:$0xff]  }
 0x352   :  { %3682 = vmatpush1.bf16.msra.mxu1 %v5758_v55  ;;  %v5844_v55 = vld [vmem:[#allocation12 + $0x204] ss:$48 sps:$4 sm:$0xff]  }
 0x353   :  { %3788 = vmatpush1.bf16.msra.mxu0 %v5761_v46  ;;  %3704 = vmatprep.subr.bf16.mxu1 %v5766_v44  ;;  %v5847_v46 = vld [vmem:[#allocation12 + $0x20c] ss:$48 sps:$4 sm:$0xff]   ;;  %v5842_v44 = vld [vmem:[#allocation12 + $0x200] ss:$48 sps:$4 sm:$0xff]  }
 0x354   :  { %3810 = vmatprep.subr.bf16.mxu0 %v5769_v53  ;;  %v5845_v53 = vld [vmem:[#allocation12 + $0x208] ss:$48 sps:$4 sm:$0xff]  }
 0x355   :  { %3684 = vmatmul.mubr.bf16.vlgmr.msra.gmra.mrb[28].mxu1 %v6560_v47 }
 0x356   :  { %3790 = vmatmul.mubr.bf16.vlgmr.msra.gmra.mrb[44].mxu0 %v6560_v47  ;;  %3693 = vmatprep.mubr.bf16.mxu1 %v6572_v12 }
 0x357   :  { %3705 = vmatpush1.bf16.msra.mxu1 %v5764_v48  ;;  %3799 = vmatprep.mubr.bf16.mxu0 %v6572_v12  ;;  %v5850_v48 = vld [vmem:[#allocation12 + $0x264] ss:$48 sps:$4 sm:$0xff]  }
 0x358   :  { %3811 = vmatpush1.bf16.msra.mxu0 %v5767_v56  ;;  %3706 = vmatprep.subr.bf16.mxu1 %v5772_v57  ;;  %v5853_v56 = vld [vmem:[#allocation12 + $0x26c] ss:$48 sps:$4 sm:$0xff]   ;;  %v5851_v57 = vld [vmem:[#allocation12 + $0x268] ss:$48 sps:$4 sm:$0xff]  }
 0x359   :  { %3812 = vmatprep.subr.bf16.mxu0 %v5775_v32  ;;  %v5856_v32 = vld [vmem:[#allocation12 + $0x2c4] ss:$48 sps:$4 sm:$0xff]  }
 0x35b   :  { %3707 = vmatpush1.bf16.msra.mxu1 %v5770_v58  ;;  %v5859_v58 = vld [vmem:[#allocation12 + $0x2cc] ss:$48 sps:$4 sm:$0xff]  }
 0x35c   :  { %3813 = vmatpush1.bf16.msra.mxu0 %v5773_v59  ;;  %3708 = vmatprep.subr.bf16.mxu1 %v5778_v60  ;;  %v5854_v59 = vld [vmem:[#allocation12 + $0x2c0] ss:$48 sps:$4 sm:$0xff]   ;;  %v5857_v60 = vld [vmem:[#allocation12 + $0x2c8] ss:$48 sps:$4 sm:$0xff]  }
 0x35d   :  { %3694 = vmatmul.mubr.bf16.gmra.mrb[32].mxu1 %v6570_v10  ;;  %3814 = vmatprep.subr.bf16.mxu0 %v5781_v61  ;;  %v5862_v61 = vld [vmem:[#allocation12 + $0x324] ss:$48 sps:$4 sm:$0xff]  }
 0x35e   :  { %3800 = vmatmul.mubr.bf16.gmra.mrb[48].mxu0 %v6570_v10  ;;  %3736 = vmatprep.mubr.bf16.mxu1 %v6166_v25 }
 0x35f   :  { %3709 = vmatpush1.bf16.msra.mxu1 %v5776_v63  ;;  %3842 = vmatprep.mubr.bf16.mxu0 %v6166_v25  ;;  %v5865_v63 = vld [vmem:[#allocation12 + $0x32c] ss:$48 sps:$4 sm:$0xff]  }
 0x360   :  { %3815 = vmatpush1.bf16.msra.mxu0 %v5779_v1  ;;  %3710 = vmatprep.subr.bf16.mxu1 %v5784_v2  ;;  %v5860_v1 = vld [vmem:[#allocation12 + $0x320] ss:$48 sps:$4 sm:$0xff]   ;;  %v5863_v2 = vld [vmem:[#allocation12 + $0x328] ss:$48 sps:$4 sm:$0xff]  }
 0x361   :  { %3816 = vmatprep.subr.bf16.mxu0 %v5787_v3  ;;  %v5868_v3 = vld [vmem:[#allocation12 + $0x384] ss:$48 sps:$4 sm:$0xff]  }
 0x363   :  { %3711 = vmatpush1.bf16.msra.mxu1 %v5782_v4  ;;  %v5871_v4 = vld [vmem:[#allocation12 + $0x38c] ss:$48 sps:$4 sm:$0xff]  }
 0x364   :  { %3817 = vmatpush1.bf16.msra.mxu0 %v5785_v15  ;;  %3712 = vmatprep.subr.bf16.mxu1 %v5790_v35  ;;  %v5866_v15 = vld [vmem:[#allocation12 + $0x380] ss:$48 sps:$4 sm:$0xff]   ;;  %v5869_v35 = vld [vmem:[#allocation12 + $0x388] ss:$48 sps:$4 sm:$0xff]  }
 0x365   :  { %3818 = vmatprep.subr.bf16.mxu0 %v5793_v5  ;;  %v5874_v5 = vld [vmem:[#allocation12 + $0x3e4] ss:$48 sps:$4 sm:$0xff]  }
 0x367   :  { %3713 = vmatpush1.bf16.msra.mxu1 %v5788_v6  ;;  %v5877_v6 = vld [vmem:[#allocation12 + $0x3ec] ss:$48 sps:$4 sm:$0xff]  }
 0x368   :  { %3819 = vmatpush1.bf16.msra.mxu0 %v5791_v7  ;;  %3714 = vmatprep.subr.bf16.mxu1 %v5796_v9  ;;  %v5872_v7 = vld [vmem:[#allocation12 + $0x3e0] ss:$48 sps:$4 sm:$0xff]   ;;  %v5875_v9 = vld [vmem:[#allocation12 + $0x3e8] ss:$48 sps:$4 sm:$0xff]  }
 0x369   :  { %3820 = vmatprep.subr.bf16.mxu0 %v5799_v11  ;;  %v5880_v11 = vld [vmem:[#allocation12 + $0x444] ss:$48 sps:$4 sm:$0xff]  }
 0x36b   :  { %3715 = vmatpush1.bf16.msra.mxu1 %v5794_v13  ;;  %v5883_v13 = vld [vmem:[#allocation12 + $0x44c] ss:$48 sps:$4 sm:$0xff]  }
 0x36c   :  { %3821 = vmatpush1.bf16.msra.mxu0 %v5797_v14  ;;  %3716 = vmatprep.subr.bf16.mxu1 %v5802_v17  ;;  %v5878_v14 = vld [vmem:[#allocation12 + $0x440] ss:$48 sps:$4 sm:$0xff]   ;;  %v5881_v17 = vld [vmem:[#allocation12 + $0x448] ss:$48 sps:$4 sm:$0xff]  }
 0x36d   :  { %3822 = vmatprep.subr.bf16.mxu0 %v5805_v18  ;;  %v5886_v18 = vld [vmem:[#allocation12 + $0x4a4] ss:$48 sps:$4 sm:$0xff]  }
 0x36f   :  { %3717 = vmatpush1.bf16.msra.mxu1 %v5800_v19  ;;  %v5889_v19 = vld [vmem:[#allocation12 + $0x4ac] ss:$48 sps:$4 sm:$0xff]  }
 0x370   :  { %3823 = vmatpush1.bf16.msra.mxu0 %v5803_v20  ;;  %3718 = vmatprep.subr.bf16.mxu1 %v5808_v21  ;;  %v5884_v20 = vld [vmem:[#allocation12 + $0x4a0] ss:$48 sps:$4 sm:$0xff]   ;;  %v5887_v21 = vld [vmem:[#allocation12 + $0x4a8] ss:$48 sps:$4 sm:$0xff]  }
 0x371   :  { %3824 = vmatprep.subr.bf16.mxu0 %v5811_v23  ;;  %v5892_v23 = vld [vmem:[#allocation12 + $0x504] ss:$48 sps:$4 sm:$0xff]  }
 0x373   :  { %3719 = vmatpush1.bf16.msra.mxu1 %v5806_v26  ;;  %v5895_v26 = vld [vmem:[#allocation12 + $0x50c] ss:$48 sps:$4 sm:$0xff]  }
 0x374   :  { %3825 = vmatpush1.bf16.msra.mxu0 %v5809_v28  ;;  %3863 = vmatprep.subr.bf16.mxu1 %v5814_v29  ;;  %v5890_v28 = vld [vmem:[#allocation12 + $0x500] ss:$48 sps:$4 sm:$0xff]   ;;  %v5893_v29 = vld [vmem:[#allocation12 + $0x508] ss:$48 sps:$4 sm:$0xff]  }
 0x375   :  { %3969 = vmatprep.subr.bf16.mxu0 %v5817_v31  ;;  %v5898_v31 = vld [vmem:[#allocation12 + $0x564] ss:$48 sps:$4 sm:$0xff]  }
 0x376   :  { %3737 = vmatmul.mubr.bf16.vlgmr.msra.gmra.mrb[28].mxu1 %v6564_v52 }
 0x377   :  { %3843 = vmatmul.mubr.bf16.vlgmr.msra.gmra.mrb[44].mxu0 %v6564_v52  ;;  %3864 = vmatpush1.bf16.msra.mxu1 %v5812_v33  ;;  %v5901_v33 = vld [vmem:[#allocation12 + $0x56c] ss:$48 sps:$4 sm:$0xff]  }
 0x378   :  { %3970 = vmatpush1.bf16.msra.mxu0 %v5815_v34  ;;  %3865 = vmatprep.subr.bf16.mxu1 %v5820_v36  ;;  %v5896_v34 = vld [vmem:[#allocation12 + $0x560] ss:$48 sps:$4 sm:$0xff]   ;;  %v5899_v36 = vld [vmem:[#allocation12 + $0x568] ss:$48 sps:$4 sm:$0xff]  }
 0x379   :  { %3971 = vmatprep.subr.bf16.mxu0 %v5823_v37  ;;  %3746 = vmatprep.mubr.bf16.mxu1 %v6166_v25  ;;  %v5904_v37 = vld [vmem:[#allocation12 + $0x5c4] ss:$48 sps:$4 sm:$0xff]  }
 0x37a   :  { %3852 = vmatprep.mubr.bf16.mxu0 %v6166_v25 }
 0x37b   :  { %3866 = vmatpush1.bf16.msra.mxu1 %v5818_v39  ;;  %v5907_v39 = vld [vmem:[#allocation12 + $0x5cc] ss:$48 sps:$4 sm:$0xff]  }
 0x37c   :  { %3972 = vmatpush1.bf16.msra.mxu0 %v5821_v27  ;;  %3867 = vmatprep.subr.bf16.mxu1 %v5826_v40  ;;  %v5902_v27 = vld [vmem:[#allocation12 + $0x5c0] ss:$48 sps:$4 sm:$0xff]   ;;  %v5905_v40 = vld [vmem:[#allocation12 + $0x5c8] ss:$48 sps:$4 sm:$0xff]  }
 0x37d   :  { %3973 = vmatprep.subr.bf16.mxu0 %v5829_v41  ;;  %v5910_v41 = vld [vmem:[#allocation12 + $0x624] ss:$48 sps:$4 sm:$0xff]  }
 0x37e   :  { %3747 = vmatmul.mubr.bf16.gmra.mrb[32].mxu1 %v6574_v16 }
 0x37f   :  { %3853 = vmatmul.mubr.bf16.gmra.mrb[48].mxu0 %v6574_v16  ;;  %3868 = vmatpush1.bf16.msra.mxu1 %v5824_v43  ;;  %v5913_v43 = vld [vmem:[#allocation12 + $0x62c] ss:$48 sps:$4 sm:$0xff]  }
 0x380   :  { %3895 = vmatprep.mubr.bf16.mxu1 %v6562_v50  ;;  %3974 = vmatpush1.bf16.msra.mxu0 %v5827_v24  ;;  %v5908_v24 = vld [vmem:[#allocation12 + $0x620] ss:$48 sps:$4 sm:$0xff]  }
 0x381   :  { %4001 = vmatprep.mubr.bf16.mxu0 %v6562_v50  ;;  %3869 = vmatprep.subr.bf16.mxu1 %v5832_v30  ;;  %v5848_v50 = vld [vmem:[#allocation12 + $0x260] ss:$48 sps:$4 sm:$0xff]   ;;  %v5911_v30 = vld [vmem:[#allocation12 + $0x628] ss:$48 sps:$4 sm:$0xff]  }
 0x382   :  { %3975 = vmatprep.subr.bf16.mxu0 %v5835_v45  ;;  %v5916_v45 = vld [vmem:[#allocation12 + $0x684] ss:$48 sps:$4 sm:$0xff]  }
 0x383   :  { %3870 = vmatpush1.bf16.msra.mxu1 %v5830_v54  ;;  %v5919_v54 = vld [vmem:[#allocation12 + $0x68c] ss:$48 sps:$4 sm:$0xff]  }
 0x384   :  { %3976 = vmatpush1.bf16.msra.mxu0 %v5833_v62  ;;  %3871 = vmatprep.subr.bf16.mxu1 %v5838_v49  ;;  %v5914_v62 = vld [vmem:[#allocation12 + $0x680] ss:$48 sps:$4 sm:$0xff]   ;;  %v5917_v49 = vld [vmem:[#allocation12 + $0x688] ss:$48 sps:$4 sm:$0xff]  }
 0x385   :  { %3977 = vmatprep.subr.bf16.mxu0 %v5841_v42  ;;  %v5922_v42 = vld [vmem:[#allocation12 + $0x6e4] ss:$48 sps:$4 sm:$0xff]  }
 0x387   :  { %3872 = vmatpush1.bf16.msra.mxu1 %v5836_v8  ;;  %v5925_v8 = vld [vmem:[#allocation12 + $0x6ec] ss:$48 sps:$4 sm:$0xff]  }
 0x388   :  { %3978 = vmatpush1.bf16.msra.mxu0 %v5839_v51  ;;  %3873 = vmatprep.subr.bf16.mxu1 %v5844_v55  ;;  %v5920_v51 = vld [vmem:[#allocation12 + $0x6e0] ss:$48 sps:$4 sm:$0xff]   ;;  %v5923_v55 = vld [vmem:[#allocation12 + $0x6e8] ss:$48 sps:$4 sm:$0xff]  }
 0x389   :  { %3979 = vmatprep.subr.bf16.mxu0 %v5847_v46  ;;  %v5928_v46 = vld [vmem:[#allocation12 + $0x744] ss:$48 sps:$4 sm:$0xff]  }
 0x38b   :  { %3874 = vmatpush1.bf16.msra.mxu1 %v5842_v44  ;;  %v5929_v44 = vld [vmem:[#allocation12 + $0x748] ss:$48 sps:$4 sm:$0xff]  }
 0x38c   :  { %3980 = vmatpush1.bf16.msra.mxu0 %v5845_v53  ;;  %3875 = vmatprep.subr.bf16.mxu1 %v5850_v48  ;;  %v5934_v53 = vld [vmem:[#allocation12 + $0x7a4] ss:$48 sps:$4 sm:$0xff]   ;;  %v5937_v48 = vld [vmem:[#allocation12 + $0x7ac] ss:$48 sps:$4 sm:$0xff]  }
 0x38d   :  { %3981 = vmatprep.subr.bf16.mxu0 %v5853_v56  ;;  %v5932_v56 = vld [vmem:[#allocation12 + $0x7a0] ss:$48 sps:$4 sm:$0xff]  }
 0x38f   :  { %3876 = vmatpush1.bf16.msra.mxu1 %v5848_v50  ;;  %v5935_v50 = vld [vmem:[#allocation12 + $0x7a8] ss:$48 sps:$4 sm:$0xff]  }
 0x390   :  { %3982 = vmatpush1.bf16.msra.mxu0 %v5851_v57  ;;  %3877 = vmatprep.subr.bf16.mxu1 %v5856_v32  ;;  %v5940_v57 = vld [vmem:[#allocation12 + $0x804] ss:$48 sps:$4 sm:$0xff]   ;;  %v5938_v32 = vld [vmem:[#allocation12 + $0x800] ss:$48 sps:$4 sm:$0xff]  }
 0x391   :  { %3983 = vmatprep.subr.bf16.mxu0 %v5859_v58  ;;  %v5941_v58 = vld [vmem:[#allocation12 + $0x808] ss:$48 sps:$4 sm:$0xff]  }
 0x393   :  { %3878 = vmatpush1.bf16.msra.mxu1 %v5854_v59  ;;  %v5946_v59 = vld [vmem:[#allocation12 + $0x864] ss:$48 sps:$4 sm:$0xff]  }
 0x394   :  { %3984 = vmatpush1.bf16.msra.mxu0 %v5857_v60  ;;  %3879 = vmatprep.subr.bf16.mxu1 %v5862_v61  ;;  %v5949_v60 = vld [vmem:[#allocation12 + $0x86c] ss:$48 sps:$4 sm:$0xff]   ;;  %v5944_v61 = vld [vmem:[#allocation12 + $0x860] ss:$48 sps:$4 sm:$0xff]  }
 0x395   :  { %3985 = vmatprep.subr.bf16.mxu0 %v5865_v63  ;;  %v5947_v63 = vld [vmem:[#allocation12 + $0x868] ss:$48 sps:$4 sm:$0xff]  }
 0x397   :  { %3880 = vmatpush1.bf16.msra.mxu1 %v5860_v1  ;;  %v5952_v1 = vld [vmem:[#allocation12 + $0x8c4] ss:$48 sps:$4 sm:$0xff]  }
 0x398   :  { %3986 = vmatpush1.bf16.msra.mxu0 %v5863_v2  ;;  %3881 = vmatprep.subr.bf16.mxu1 %v5868_v3  ;;  %v5955_v2 = vld [vmem:[#allocation12 + $0x8cc] ss:$48 sps:$4 sm:$0xff]   ;;  %v5950_v3 = vld [vmem:[#allocation12 + $0x8c0] ss:$48 sps:$4 sm:$0xff]  }
 0x399   :  { %3987 = vmatprep.subr.bf16.mxu0 %v5871_v4  ;;  %v5953_v4 = vld [vmem:[#allocation12 + $0x8c8] ss:$48 sps:$4 sm:$0xff]  }
 0x39b   :  { %3882 = vmatpush1.bf16.msra.mxu1 %v5866_v15 }
 0x39c   :  { %3988 = vmatpush1.bf16.msra.mxu0 %v5869_v35  ;;  %3883 = vmatprep.subr.bf16.mxu1 %v5874_v5 }
 0x39d   :  { %3989 = vmatprep.subr.bf16.mxu0 %v5877_v6 }
 0x39f   :  { %3884 = vmatpush1.bf16.msra.mxu1 %v5872_v7 }
 0x3a0   :  { %3990 = vmatpush1.bf16.msra.mxu0 %v5875_v9  ;;  %3885 = vmatprep.subr.bf16.mxu1 %v5880_v11 }
 0x3a1   :  { %3991 = vmatprep.subr.bf16.mxu0 %v5883_v13 }
 0x3a3   :  { %3886 = vmatpush1.bf16.msra.mxu1 %v5878_v14 }
 0x3a4   :  { %3992 = vmatpush1.bf16.msra.mxu0 %v5881_v17  ;;  %3887 = vmatprep.subr.bf16.mxu1 %v5886_v18 }
 0x3a5   :  { %3993 = vmatprep.subr.bf16.mxu0 %v5889_v19 }
 0x3a7   :  { %3888 = vmatpush1.bf16.msra.mxu1 %v5884_v20 }
 0x3a8   :  { %3994 = vmatpush1.bf16.msra.mxu0 %v5887_v21  ;;  %3889 = vmatprep.subr.bf16.mxu1 %v5892_v23  ;;  %v4181_v21 = vld [vmem:[#allocation15] sm:$0xff]  ;;  %v4182_v23 = vld [vmem:[#allocation15 + $0x8] sm:$0xff] }
 0x3a9   :  { %3995 = vmatprep.subr.bf16.mxu0 %v5895_v26  ;;  %v5045_v26 = vpack.c.bf16 %v4182_v23, %v4181_v21 }
 0x3ab   :  { %3890 = vmatpush1.bf16.msra.mxu1 %v5890_v28  ;;  %v4183_v28 = vld [vmem:[#allocation15 + $0x10] sm:$0xff] }
 0x3ac   :  { %3996 = vmatpush1.bf16.msra.mxu0 %v5893_v29  ;;  %3891 = vmatprep.subr.bf16.mxu1 %v5898_v31  ;;  %v4184_v29 = vld [vmem:[#allocation15 + $0x18] sm:$0xff] }
 0x3ad   :  { %3997 = vmatprep.subr.bf16.mxu0 %v5901_v33  ;;  %v5048_v31 = vpack.c.bf16 %v4184_v29, %v4183_v28  ;;  %v4185_v33 = vld [vmem:[#allocation15 + $0x20] sm:$0xff] }
 0x3af   :  { %3892 = vmatpush1.bf16.msra.mxu1 %v5896_v34  ;;  %v4186_v34 = vld [vmem:[#allocation15 + $0x28] sm:$0xff] }
 0x3b0   :  { %3998 = vmatpush1.bf16.msra.mxu0 %v5899_v36  ;;  %3893 = vmatprep.subr.bf16.mxu1 %v5904_v37  ;;  %v5051_v36 = vpack.c.bf16 %v4186_v34, %v4185_v33  ;;  %v4187_v37 = vld [vmem:[#allocation15 + $0x30] sm:$0xff] }
 0x3b1   :  { %3999 = vmatprep.subr.bf16.mxu0 %v5907_v39  ;;  %v4188_v39 = vld [vmem:[#allocation15 + $0x38] sm:$0xff] }
 0x3b3   :  { %3894 = vmatpush1.bf16.msra.mxu1 %v5902_v27  ;;  %v5054_v27 = vpack.c.bf16 %v4188_v39, %v4187_v37 }
 0x3b4   :  { %4000 = vmatpush1.bf16.msra.mxu0 %v5905_v40  ;;  %3916 = vmatprep.subr.bf16.mxu1 %v5910_v41  ;;  %v4189_v40 = vld [vmem:[#allocation15 + $0x40] sm:$0xff]  ;;  %v4190_v41 = vld [vmem:[#allocation15 + $0x48] sm:$0xff] }
 0x3b5   :  { %4022 = vmatprep.subr.bf16.mxu0 %v5913_v43  ;;  %v5057_v43 = vpack.c.bf16 %v4190_v41, %v4189_v40 }
 0x3b6   :  { %3896 = vmatmul.mubr.bf16.vlgmr.msra.gmra.mrb[36].mxu1 %v6560_v47 }
 0x3b7   :  { %4002 = vmatmul.mubr.bf16.vlgmr.msra.gmra.mrb[52].mxu0 %v6560_v47  ;;  %3905 = vmatprep.mubr.bf16.mxu1 %v6572_v12  ;;  %v5931_v47 = vld [vmem:[#allocation12 + $0x74c] ss:$48 sps:$4 sm:$0xff]  }
 0x3b8   :  { %3917 = vmatpush1.bf16.msra.mxu1 %v5908_v24  ;;  %4011 = vmatprep.mubr.bf16.mxu0 %v6572_v12  ;;  %v5926_v12 = vld [vmem:[#allocation12 + $0x740] ss:$48 sps:$4 sm:$0xff]  }
 0x3b9   :  { %4023 = vmatpush1.bf16.msra.mxu0 %v5911_v30  ;;  %3918 = vmatprep.subr.bf16.mxu1 %v5916_v45  ;;  %v4191_v24 = vld [vmem:[#allocation15 + $0x50] sm:$0xff]  ;;  %v4192_v30 = vld [vmem:[#allocation15 + $0x58] sm:$0xff] }
 0x3ba   :  { %4024 = vmatprep.subr.bf16.mxu0 %v5919_v54  ;;  %v5060_v45 = vpack.c.bf16 %v4192_v30, %v4191_v24  ;;  %v4193_v54 = vld [vmem:[#allocation15 + $0x60] sm:$0xff] }
 0x3bc   :  { %3919 = vmatpush1.bf16.msra.mxu1 %v5914_v62  ;;  %v4194_v62 = vld [vmem:[#allocation15 + $0x68] sm:$0xff] }
 0x3bd   :  { %4025 = vmatpush1.bf16.msra.mxu0 %v5917_v49  ;;  %3920 = vmatprep.subr.bf16.mxu1 %v5922_v42  ;;  %v5063_v49 = vpack.c.bf16 %v4194_v62, %v4193_v54  ;;  %v4195_v42 = vld [vmem:[#allocation15 + $0x70] sm:$0xff] }
 0x3be   :  { %3906 = vmatmul.mubr.bf16.gmra.mrb[40].mxu1 %v6570_v10  ;;  %4026 = vmatprep.subr.bf16.mxu0 %v5925_v8  ;;  %v4196_v8 = vld [vmem:[#allocation15 + $0x78] sm:$0xff] }
 0x3bf   :  { %4012 = vmatmul.mubr.bf16.gmra.mrb[56].mxu0 %v6570_v10  ;;  %3948 = vmatprep.mubr.bf16.mxu1 %v6166_v25  ;;  %v5943_v10 = vld [vmem:[#allocation12 + $0x80c] ss:$48 sps:$4 sm:$0xff]  }
 0x3c0   :  { %3921 = vmatpush1.bf16.msra.mxu1 %v5920_v51  ;;  %4054 = vmatprep.mubr.bf16.mxu0 %v6166_v25 }
 0x3c1   :  { %4027 = vmatpush1.bf16.msra.mxu0 %v5923_v55  ;;  %3922 = vmatprep.subr.bf16.mxu1 %v5928_v46 }
 0x3c2   :  { %4028 = vmatprep.subr.bf16.mxu0 %v5931_v47 }
 0x3c4   :  { %3923 = vmatpush1.bf16.msra.mxu1 %v5926_v12 }
 0x3c5   :  { %4029 = vmatpush1.bf16.msra.mxu0 %v5929_v44  ;;  %3924 = vmatprep.subr.bf16.mxu1 %v5934_v53  ;;  %v5066_v44 = vpack.c.bf16 %v4196_v8, %v4195_v42 }
 0x3c6   :  { %4030 = vmatprep.subr.bf16.mxu0 %v5937_v48 }
 0x3c8   :  { %3925 = vmatpush1.bf16.msra.mxu1 %v5932_v56 }
 0x3c9   :  { %4031 = vmatpush1.bf16.msra.mxu0 %v5935_v50  ;;  %3926 = vmatprep.subr.bf16.mxu1 %v5940_v57 }
 0x3ca   :  { %4032 = vmatprep.subr.bf16.mxu0 %v5943_v10 }
 0x3cc   :  { %3927 = vmatpush1.bf16.msra.mxu1 %v5938_v32 }
 0x3cd   :  { %4033 = vmatpush1.bf16.msra.mxu0 %v5941_v58  ;;  %3928 = vmatprep.subr.bf16.mxu1 %v5946_v59 }
 0x3ce   :  { %4034 = vmatprep.subr.bf16.mxu0 %v5949_v60 }
 0x3d0   :  { %3929 = vmatpush1.bf16.msra.mxu1 %v5944_v61 }
 0x3d1   :  { %4035 = vmatpush1.bf16.msra.mxu0 %v5947_v63  ;;  %3930 = vmatprep.subr.bf16.mxu1 %v5952_v1 }
 0x3d2   :  { %4036 = vmatprep.subr.bf16.mxu0 %v5955_v2 }
 0x3d4   :  { %3931 = vmatpush1.bf16.msra.mxu1 %v5950_v3 }
 0x3d5   :  { %4037 = vmatpush1.bf16.msra.mxu0 %v5953_v4  ;;  %5044 = vmatprep.subr.bf16.mxu1 %v6165_v38 }
 0x3d7   :  { %3949 = vmatmul.mubr.bf16.vlgmr.msra.gmra.mrb[36].mxu1 %v6564_v52 }
 0x3d8   :  { %4055 = vmatmul.mubr.bf16.vlgmr.msra.gmra.mrb[52].mxu0 %v6564_v52  ;;  %3958 = vmatprep.mubr.bf16.mxu1 %v6166_v25 }
 0x3d9   :  { %4064 = vmatprep.mubr.bf16.mxu0 %v6166_v25  ;;  %5046 = vmatpush3.bf16.msra.mxu1 %v5045_v26 }
 0x3da   :  { %5047 = vmatprep.subr.bf16.mxu1 %v6165_v38 }
 0x3dd   :  { %5049 = vmatpush3.bf16.msra.mxu1 %v5048_v31 }
 0x3de   :  { %5050 = vmatprep.subr.bf16.mxu1 %v6165_v38 }
 0x3df   :  { %3959 = vmatmul.mubr.bf16.gmra.mrb[40].mxu1 %v6574_v16 }
 0x3e0   :  { %4065 = vmatmul.mubr.bf16.gmra.mrb[56].mxu0 %v6574_v16  ;;  %4699 = vmatprep.mubr.msk.f32.mxu1 %vm6167_vm4, %v6164_v0 }
 0x3e1   :  { %5052 = vmatpush3.bf16.msra.mxu1 %v5051_v36 }
 0x3e2   :  { %5053 = vmatprep.subr.bf16.mxu1 %v6165_v38 }
 0x3e5   :  { %5055 = vmatpush3.bf16.msra.mxu1 %v5054_v27 }
 0x3e6   :  { %5056 = vmatprep.subr.bf16.mxu1 %v6165_v38 }
 0x3e8   :  { %v3526_v15 = vpop.f32.mrb[20].mxu1  ;;  %v3632_v35 = vpop.f32.mrb[36].mxu0 }
 0x3e9   :  { %4075 = vst [vmem:[#allocation3] sm:$0xff] %v3526_v15  ;;  %4077 = vst [vmem:[#allocation3 + $0x10] sm:$0xff] %v3632_v35  ;;  %v3528_v5 = vpop.f32.mrb[21].mxu1  ;;  %v3634_v6 = vpop.f32.mrb[37].mxu0  ;;  %5058 = vmatpush3.bf16.msra.mxu1 %v5057_v43 }
 0x3ea   :  { %4076 = vst [vmem:[#allocation3 + $0x8] sm:$0xff] %v3528_v5  ;;  %4078 = vst [vmem:[#allocation3 + $0x18] sm:$0xff] %v3634_v6  ;;  %v3530_v7 = vpop.f32.mrb[22].mxu1  ;;  %v3636_v9 = vpop.f32.mrb[38].mxu0  ;;  %5059 = vmatprep.subr.bf16.mxu1 %v6165_v38 }
 0x3eb   :  { %v3532_v11 = vpop.f32.mrb[23].mxu1  ;;  %v3638_v52 = vpop.f32.mrb[39].mxu0 }
 0x3ed   :  { %5061 = vmatpush3.bf16.msra.mxu1 %v5060_v45 }
 0x3ee   :  { %5062 = vmatprep.subr.bf16.mxu1 %v6165_v38 }
 0x3f0   :  { %v3536_v13 = vpop.f32.mrb[24].mxu1  ;;  %v3642_v14 = vpop.f32.mrb[40].mxu0  ;;  %v4123_v61 = vld [vmem:[#allocation3] ss:$0 sm:$0xff]  ;;  %v4126_v2 = vld [vmem:[#allocation3 + $0x12] ss:$0 sm:$0xff] }
 0x3f1   :  { %4099 = vst [vmem:[#allocation3 + $0xc0] sm:$0xff] %v3536_v13  ;;  %4101 = vst [vmem:[#allocation3 + $0xd0] sm:$0xff] %v3642_v14  ;;  %v3538_v25 = vpop.f32.mrb[25].mxu1  ;;  %v3644_v17 = vpop.f32.mrb[41].mxu0  ;;  %5064 = vmatpush3.bf16.msra.mxu1 %v5063_v49  ;;  %v4124_v63 = vld [vmem:[#allocation3 + $0x9] ss:$0 sm:$0xff] }
 0x3f2   :  { %4100 = vst [vmem:[#allocation3 + $0xc8] sm:$0xff] %v3538_v25  ;;  %4102 = vst [vmem:[#allocation3 + $0xd8] sm:$0xff] %v3644_v17  ;;  %v3540_v16 = vpop.f32.mrb[26].mxu1  ;;  %v3646_v18 = vpop.f32.mrb[42].mxu0  ;;  %5065 = vmatprep.subr.bf16.mxu1 %v6165_v38  ;;  %v4125_v1 = vadd.f32 %v4124_v63, %v4123_v61  ;;  %v4128_v15 = vld [vmem:[#allocation3 + $0x1b] ss:$0 sm:$0xff] }
 0x3f3   :  { %v3542_v19 = vpop.f32.mrb[27].mxu1  ;;  %v3648_v20 = vpop.f32.mrb[43].mxu0 }
 0x3f4   :  { %v4127_v3 = vadd.f32 %v4126_v2, %v4125_v1  ;;  %v4275_v2 = vand.u32 127, %v566_v22 }
 0x3f5   :  { %5067 = vmatpush3.bf16.msra.mxu1 %v5066_v44 }
 0x3f6   :  { %v4129_v5 = vadd.f32 %v4128_v15, %v4127_v3  ;;  %v4649_v3 = vld [vmem:[#allocation16] ss:$0 sm:$0xff]  ;;  %vm4277_vm5 = vcmp.ge.s32.totalorder %v4275_v2, 4  ;;  %vm4278_vm6 = vcmp.lt.s32.totalorder %v4275_v2, 14  ;;  %vm4308_vm7 = vcmp.eq.s32.totalorder %v4275_v2, 14 }
 0x3f7   :  { %vm4276_vm8 = vcmp.lt.s32.totalorder %v4275_v2, 4  ;;  %vm6630_vm10 = vmand %vm4277_vm5, %vm4278_vm6 }
 0x3f8   :  { %v4147_v38 = vld [vmem:[#allocation3 + $0xc0] ss:$0 sm:$0xff]  ;;  %v4150_v9 = vld [vmem:[#allocation3 + $0xd2] ss:$0 sm:$0xff] }
 0x3f9   :  { %v4148_v4 = vld [vmem:[#allocation3 + $0xc9] ss:$0 sm:$0xff]  ;;  %v4152_v16 = vld [vmem:[#allocation3 + $0xdb] ss:$0 sm:$0xff] }
 0x3fa   :  { %v4149_v6 = vadd.f32 %v4148_v4, %v4147_v38 }
 0x3fc   :  { %v4151_v52 = vadd.f32 %v4150_v9, %v4149_v6 }
 0x3fe   :  { %v4153_v21 = vadd.f32 %v4152_v16, %v4151_v52 }
 0x449   :  { %v3738_v51 = vpop.f32.mrb[28].mxu1 }
 0x44a   :  { %4079 = vst [vmem:[#allocation3 + $0x20] sm:$0xff] %v3738_v51  ;;  %v3844_v55 = vpop.f32.mrb[44].mxu0  ;;  %v3740_v46 = vpop.f32.mrb[29].mxu1 }
 0x44b   :  { %4081 = vst [vmem:[#allocation3 + $0x30] sm:$0xff] %v3844_v55  ;;  %4080 = vst [vmem:[#allocation3 + $0x28] sm:$0xff] %v3740_v46  ;;  %v3846_v47 = vpop.f32.mrb[45].mxu0  ;;  %v3742_v12 = vpop.f32.mrb[30].mxu1 }
 0x44c   :  { %4082 = vst [vmem:[#allocation3 + $0x38] sm:$0xff] %v3846_v47  ;;  %v3848_v53 = vpop.f32.mrb[46].mxu0  ;;  %v3744_v48 = vpop.f32.mrb[31].mxu1 }
 0x44d   :  { %v3850_v0 = vpop.f32.mrb[47].mxu0 }
 0x451   :  { %v3748_v56 = vpop.f32.mrb[32].mxu1  ;;  %v4130_v35 = vld [vmem:[#allocation3 + $0x24] ss:$0 sm:$0xff] }
 0x452   :  { %4103 = vst [vmem:[#allocation3 + $0xe0] sm:$0xff] %v3748_v56  ;;  %v3854_v50 = vpop.f32.mrb[48].mxu0  ;;  %v3750_v57 = vpop.f32.mrb[33].mxu1  ;;  %v4131_v7 = vadd.f32 %v4130_v35, %v4129_v5  ;;  %v4132_v11 = vld [vmem:[#allocation3 + $0x2d] ss:$0 sm:$0xff] }
 0x453   :  { %4105 = vst [vmem:[#allocation3 + $0xf0] sm:$0xff] %v3854_v50  ;;  %4104 = vst [vmem:[#allocation3 + $0xe8] sm:$0xff] %v3750_v57  ;;  %v3856_v10 = vpop.f32.mrb[49].mxu0  ;;  %v3752_v32 = vpop.f32.mrb[34].mxu1  ;;  %v4134_v28 = vld [vmem:[#allocation3 + $0x36] ss:$0 sm:$0xff] }
 0x454   :  { %4106 = vst [vmem:[#allocation3 + $0xf8] sm:$0xff] %v3856_v10  ;;  %v3858_v58 = vpop.f32.mrb[50].mxu0  ;;  %v3754_v59 = vpop.f32.mrb[35].mxu1  ;;  %v4133_v14 = vadd.f32 %v4132_v11, %v4131_v7  ;;  %v4136_v36 = vld [vmem:[#allocation3 + $0x3f] ss:$0 sm:$0xff] }
 0x455   :  { %v3860_v60 = vpop.f32.mrb[51].mxu0 }
 0x456   :  { %v4135_v31 = vadd.f32 %v4134_v28, %v4133_v14  ;;  %v4648_v60 = vld [vmem:[#allocation13] ss:$0 sm:$0xff] }
 0x458   :  { %v4137_v39 = vadd.f32 %v4136_v36, %v4135_v31 }
 0x459   :  { %v4154_v18 = vld [vmem:[#allocation3 + $0xe4] ss:$0 sm:$0xff] }
 0x45a   :  { %v4155_v33 = vadd.f32 %v4154_v18, %v4153_v21  ;;  %v4156_v34 = vld [vmem:[#allocation3 + $0xed] ss:$0 sm:$0xff]  ;;  %v4158_v42 = vld [vmem:[#allocation3 + $0xf6] ss:$0 sm:$0xff] }
 0x45b   :  { %v4160_v12 = vld [vmem:[#allocation3 + $0xff] ss:$0 sm:$0xff] }
 0x45c   :  { %v4157_v27 = vadd.f32 %v4156_v34, %v4155_v33 }
 0x45e   :  { %v4159_v51 = vadd.f32 %v4158_v42, %v4157_v27 }
 0x460   :  { %v4161_v53 = vadd.f32 %v4160_v12, %v4159_v51 }
 0x4aa   :  { %v3950_v13 = vpop.f32.mrb[36].mxu1 }
 0x4ab   :  { %v4056_v25 = vpop.f32.mrb[52].mxu0  ;;  %v3952_v17 = vpop.f32.mrb[37].mxu1 }
 0x4ac   :  { %v4058_v19 = vpop.f32.mrb[53].mxu0  ;;  %v3954_v20 = vpop.f32.mrb[38].mxu1 }
 0x4ad   :  { %4095 = vst [vmem:[#allocation3 + $0xa0] sm:$0xff] %v3954_v20  ;;  %v4060_v23 = vpop.f32.mrb[54].mxu0  ;;  %v3956_v26 = vpop.f32.mrb[39].mxu1 }
 0x4ae   :  { %4097 = vst [vmem:[#allocation3 + $0xb0] sm:$0xff] %v4060_v23  ;;  %4096 = vst [vmem:[#allocation3 + $0xa8] sm:$0xff] %v3956_v26  ;;  %v4062_v29 = vpop.f32.mrb[55].mxu0 }
 0x4af   :  { %4098 = vst [vmem:[#allocation3 + $0xb8] sm:$0xff] %v4062_v29 }
 0x4b2   :  { %v3960_v37 = vpop.f32.mrb[40].mxu1 }
 0x4b3   :  { %v4066_v40 = vpop.f32.mrb[56].mxu0  ;;  %v3962_v41 = vpop.f32.mrb[41].mxu1 }
 0x4b4   :  { %v4138_v43 = vld [vmem:[#allocation3 + $0xa0] ss:$0 sm:$0xff]  ;;  %v4068_v24 = vpop.f32.mrb[57].mxu0  ;;  %v3964_v30 = vpop.f32.mrb[42].mxu1 }
 0x4b5   :  { %v4139_v45 = vadd.f32 %v4138_v43, %v4137_v39  ;;  %v4140_v54 = vld [vmem:[#allocation3 + $0xa9] ss:$0 sm:$0xff]  ;;  %4119 = vst [vmem:[#allocation3 + $0x160] sm:$0xff] %v3964_v30  ;;  %v4070_v62 = vpop.f32.mrb[58].mxu0  ;;  %v3966_v49 = vpop.f32.mrb[43].mxu1 }
 0x4b6   :  { %4121 = vst [vmem:[#allocation3 + $0x170] sm:$0xff] %v4070_v62  ;;  %4120 = vst [vmem:[#allocation3 + $0x168] sm:$0xff] %v3966_v49  ;;  %v4072_v8 = vpop.f32.mrb[59].mxu0  ;;  %v4142_v46 = vld [vmem:[#allocation3 + $0xb2] ss:$0 sm:$0xff] }
 0x4b7   :  { %v4141_v55 = vadd.f32 %v4140_v54, %v4139_v45  ;;  %4122 = vst [vmem:[#allocation3 + $0x178] sm:$0xff] %v4072_v8  ;;  %v4144_v44 = vld [vmem:[#allocation3 + $0xbb] ss:$0 sm:$0xff] }
 0x4b9   :  { %v4143_v47 = vadd.f32 %v4142_v46, %v4141_v55 }
 0x4bb   :  { %v4145_v48 = vadd.f32 %v4144_v44, %v4143_v47 }
 0x4bc   :  { %v4162_v0 = vld [vmem:[#allocation3 + $0x160] ss:$0 sm:$0xff] }
 0x4bd   :  { %4146 = vst [vmem:[#allocation4] sm:$0x1] %v4145_v48  ;;  %v4163_v56 = vadd.f32 %v4162_v0, %v4161_v53  ;;  %v4164_v50 = vld [vmem:[#allocation3 + $0x169] ss:$0 sm:$0xff]  ;;  %v4166_v10 = vld [vmem:[#allocation3 + $0x172] ss:$0 sm:$0xff] }
 0x4be   :  { %v4168_v58 = vld [vmem:[#allocation3 + $0x17b] ss:$0 sm:$0xff] }
 0x4bf   :  { %v4165_v57 = vadd.f32 %v4164_v50, %v4163_v56 }
 0x4c1   :  { %v4167_v32 = vadd.f32 %v4166_v10, %v4165_v57 }
 0x4c3   :  { %v4169_v59 = vadd.f32 %v4168_v58, %v4167_v32 }
 0x4c5   :  { %4170 = vst [vmem:[#allocation4 + $0x1] sm:$0x1] %v4169_v59 }
 0x4cc   :  { %v4171_v61 = vld [vmem:[#allocation4] sm:$0x3] }
 0x4cd   :  { %v4179_v63 = vadd.f32 %v4648_v60, %v4171_v61 }
 0x4cf   :  { %v4180_v1 = vmax.f32 %v4179_v63, 0.0 }
 0x4d1   :  { %4700 = vmatmul.mubr.f32.vlgmr.msra.gmra.mrb[18].mxu1 %v4180_v1 }
 0x5a4   :  { %v4270_v38 = vpop.f32.mrb[18].mxu1 }
 0x5a5   :  { %v4271_v4 = vadd.f32 %v4649_v3, %v4270_v38  ;;  %v4701_v15 = vpop.f32.mrb[19].mxu1 }
 0x5a7   :  { %v4309_v5 = vsel %vm4308_vm7, %v4271_v4, 0.0  ;;  %v4280_v6 = vsel %vm4276_vm8, %v4271_v4, -1e+30  ;;  %v4294_v22 = vsel %vm6630_vm10, %v4271_v4, -1e+30 }
 0x5a8   :  { %v4282_v7 = vsel %vm4281_vm9, %v4280_v6, -inf  ;;  %v4295_v9 = vsel %vm4281_vm9, %v4294_v22, -inf }
 0x5a9   :  { %4283 = vmax.xlane.f32.xlu0 %v4282_v7 }
 0x5ad   :  { %4296 = vmax.xlane.f32.xlu0 %v4295_v9 }
 0x636   :  { %v4284_v11 = vpop.xlane.xlu0 %4283 }
 0x637   :  { %v4285_v52 = vsub.f32 %v4280_v6, %v4284_v11 }
 0x639   :  { %v4286_v13 = vmul.f32 1.442695, %v4285_v52 }
 0x63a   :  { %v4297_v14 = vpop.xlane.xlu0 %4296 }
 0x63b   :  { %5956 = vpow2.f32 %v4286_v13  ;;  %v4298_v25 = vsub.f32 %v4294_v22, %v4297_v14 }
 0x63d   :  { %v4299_v17 = vmul.f32 1.442695, %v4298_v25 }
 0x63f   :  { %5958 = vpow2.f32 %v4299_v17 }
 0x645   :  { %v5957_v16 = vpop.eup %5956 }
 0x646   :  { %v4288_v18 = vsel %vm4276_vm8, %v5957_v16, 0.0 }
 0x647   :  { %v4289_v19 = vsel %vm4281_vm9, %v4288_v18, 0.0 }
 0x648   :  { %4290 = vadd.xlane.f32.xlu1 %v4289_v19 }
 0x649   :  { %v5959_v20 = vpop.eup %5958 }
 0x64a   :  { %v4301_v21 = vsel %vm6630_vm10, %v5959_v20, 0.0 }
 0x64b   :  { %v4302_v23 = vsel %vm4281_vm9, %v4301_v21, 0.0 }
 0x64c   :  { %4303 = vadd.xlane.f32.xlu1 %v4302_v23 }
 0x6d5   :  { %v4291_v26 = vpop.xlane.xlu1 %4290 }
 0x6d6   :  { %5960 = vrcp.f32 %v4291_v26 }
 0x6d9   :  { %v4304_v28 = vpop.xlane.xlu1 %4303 }
 0x6da   :  { %5962 = vrcp.f32 %v4304_v28 }
 0x6e0   :  { %v5961_v29 = vpop.eup %5960 }
 0x6e1   :  { %v4293_v33 = vmul.f32 %v5961_v29, %v4288_v18 }
 0x6e4   :  { %v5963_v31 = vpop.eup %5962 }
 0x6e5   :  { %v4306_v34 = vmul.f32 %v5963_v31, %v4301_v21 }
 0x6e7   :  { %v4307_v36 = vadd.f32 %v4306_v34, %v4293_v33 }
 0x6e9   :  { %v4310_v37 = vadd.f32 %v4309_v5, %v4307_v36 }
 0x6eb   :  { %4311 = vst [vmem:[%s6656_s9] sm:$0x3] %v4310_v37 }
 0x6ec   :  { %4316 = vsyncpa [#allocation6], 1 }
 0x6ed   :  { %4317 = vsyncpa [#allocation8], 1 }
 0x6ee   :  { %4318 = vsyncpa [#allocation11], 1 }
 0x6ef   :  { %4319 = vsyncpa [#allocation14], 1 }
 0x6f0   :  { %4320 = vsyncpa [#allocation17], 1 }

</bundles_post_ra>
